<compile_context>
chip_gen: v6e
topology: v6e:2x2x1
jax: 0.10.0
libtpu: 0.0.40
codegen_flags: <defaults>
</compile_context>

<pallas_src>
import functools

import jax
import jax.numpy as jnp
from jax.experimental import pallas as pl
from jax.experimental.pallas import tpu as pltpu


# --------------------------------------------------------------------------
# helpers
# --------------------------------------------------------------------------
def _round_up(x, m):
    return (x + m - 1) // m * m


# Default tile sizes (clamped per problem).  Fit comfortably in VMEM on
# v5e / v6e (128 MiB) and v7x (64 MiB) with double buffering (< ~3 MiB total).
_TM, _TK, _TN = 512, 512, 128
_VMEM_LIMIT = 32 * 1024 * 1024


# --------------------------------------------------------------------------
# Tiled GEMM kernel:  out = act(A @ W + bias)
#   A: (Mp, Kp) bf16, W: (Kp, Cp) bf16, bias: (1, Cp) f32, out: (Mp, Cp) f32
# --------------------------------------------------------------------------
def _gemm_kernel(a_ref, w_ref, b_ref, o_ref, acc_ref, *, activation):
    @pl.when(pl.program_id(2) == 0)
    def _():
        acc_ref[...] = jnp.zeros_like(acc_ref)

    acc_ref[...] += jnp.dot(a_ref[...], w_ref[...],
                            preferred_element_type=jnp.float32)

    @pl.when(pl.program_id(2) == pl.num_programs(2) - 1)
    def _():
        y = acc_ref[...] + b_ref[...]
        if activation == "relu":
            y = jnp.maximum(y, 0.0)
        elif activation == "sigmoid":
            y = jax.nn.sigmoid(y)
        o_ref[...] = y


def pallas_conv_gemm(a, w, bias, *, activation=None):
    """a: (M, K), w: (K, Cout), bias: (Cout,).  Returns (M, Cp) f32 where
    Cp = round_up(Cout, 128); caller slices the channel padding."""
    M, K = a.shape
    K2, Cout = w.shape
    assert K == K2
    Cp = _round_up(Cout, 128)

    tn = _TN
    tm = min(_TM, _round_up(M, 8))
    Mp = _round_up(M, tm)
    if K <= _TK:                       # single K tile (block == full dim is legal)
        tk, Kp = K, K
    else:
        tk = _TK
        Kp = _round_up(K, tk)

    a_p = a.astype(jnp.bfloat16)
    if (Mp, Kp) != (M, K):
        a_p = jnp.pad(a_p, ((0, Mp - M), (0, Kp - K)))
    w_p = w.astype(jnp.bfloat16)
    if (Kp, Cp) != (K, Cout):
        w_p = jnp.pad(w_p, ((0, Kp - K), (0, Cp - Cout)))
    b_p = bias.astype(jnp.float32).reshape(1, Cout)
    if Cp != Cout:
        b_p = jnp.pad(b_p, ((0, 0), (0, Cp - Cout)))

    grid = (Mp // tm, Cp // tn, Kp // tk)

    out = pl.pallas_call(
        functools.partial(_gemm_kernel, activation=activation),
        out_shape=jax.ShapeDtypeStruct((Mp, Cp), jnp.float32),
        grid_spec=pltpu.PrefetchScalarGridSpec(
            num_scalar_prefetch=0,
            grid=grid,
            in_specs=[
                pl.BlockSpec((tm, tk), lambda i, j, k: (i, k)),
                pl.BlockSpec((tk, tn), lambda i, j, k: (k, j)),
                pl.BlockSpec((1, tn), lambda i, j, k: (0, j)),
            ],
            out_specs=pl.BlockSpec((tm, tn), lambda i, j, k: (i, j)),
            scratch_shapes=[pltpu.VMEM((tm, tn), jnp.float32)],
        ),
        compiler_params=pltpu.CompilerParams(
            dimension_semantics=("parallel", "parallel", "arbitrary"),
            vmem_limit_bytes=_VMEM_LIMIT,
        ),
        cost_estimate=pl.CostEstimate(
            flops=2 * Mp * Kp * Cp,
            transcendentals=Mp * Cp if activation == "sigmoid" else 0,
            bytes_accessed=2 * Mp * Kp + 2 * Kp * Cp + 4 * Cp + 4 * Mp * Cp,
        ),
    )(a_p, w_p, b_p)
    return out[:M]                     # (M, Cp) f32, channel padding kept


# --------------------------------------------------------------------------
# BatchNorm (training-mode batch stats) + activation, two Pallas passes.
#   Pass 1: per-channel sum / sum-of-squares over all M rows.
#   Pass 2: normalize with full-M stats + activation.
# Zero-padded rows / zero-weight padded channels contribute 0 to both sums,
# so dividing by the true M keeps stats exact.
# --------------------------------------------------------------------------
def _bn_stats_kernel(y_ref, sum_ref, sq_ref):
    @pl.when(pl.program_id(0) == 0)
    def _():
        sum_ref[...] = jnp.zeros_like(sum_ref)
        sq_ref[...] = jnp.zeros_like(sq_ref)

    y = y_ref[...]
    sum_ref[...] += jnp.sum(y, axis=0, keepdims=True)
    sq_ref[...] += jnp.sum(y * y, axis=0, keepdims=True)


def _bn_apply_kernel(y_ref, sum_ref, sq_ref, o_ref, *, inv_m, activation):
    mean = sum_ref[...] * inv_m
    var = jnp.maximum(sq_ref[...] * inv_m - mean * mean, 0.0)   # biased var
    y = (y_ref[...] - mean) * jax.lax.rsqrt(var + 1e-5)
    if activation == "relu":
        y = jnp.maximum(y, 0.0)
    o_ref[...] = y


def pallas_batchnorm_act(y, *, activation="relu"):
    """y: (M, Cp) f32 with Cp a multiple of 128.  Returns (M, Cp) f32."""
    M, Cp = y.shape
    tm = min(_TM, _round_up(M, 8))
    Mp = _round_up(M, tm)
    y_p = jnp.pad(y, ((0, Mp - M), (0, 0))) if Mp != M else y
    grid_m = Mp // tm

    sums, sqs = pl.pallas_call(
        _bn_stats_kernel,
        out_shape=(jax.ShapeDtypeStruct((1, Cp), jnp.float32),
                   jax.ShapeDtypeStruct((1, Cp), jnp.float32)),
        grid_spec=pltpu.PrefetchScalarGridSpec(
            num_scalar_prefetch=0,
            grid=(grid_m,),
            in_specs=[pl.BlockSpec((tm, Cp), lambda i: (i, 0))],
            out_specs=[pl.BlockSpec((1, Cp), lambda i: (0, 0)),
                       pl.BlockSpec((1, Cp), lambda i: (0, 0))],
        ),
        compiler_params=pltpu.CompilerParams(
            dimension_semantics=("arbitrary",),
            vmem_limit_bytes=_VMEM_LIMIT,
        ),
    )(y_p)

    out = pl.pallas_call(
        functools.partial(_bn_apply_kernel, inv_m=1.0 / M, activation=activation),
        out_shape=jax.ShapeDtypeStruct((Mp, Cp), jnp.float32),
        grid_spec=pltpu.PrefetchScalarGridSpec(
            num_scalar_prefetch=0,
            grid=(grid_m,),
            in_specs=[pl.BlockSpec((tm, Cp), lambda i: (i, 0)),
                      pl.BlockSpec((1, Cp), lambda i: (0, 0)),
                      pl.BlockSpec((1, Cp), lambda i: (0, 0))],
            out_specs=pl.BlockSpec((tm, Cp), lambda i: (i, 0)),
        ),
        compiler_params=pltpu.CompilerParams(
            dimension_semantics=("parallel",),
            vmem_limit_bytes=_VMEM_LIMIT,
        ),
    )(y_p, sums, sqs)
    return out[:M]


# --------------------------------------------------------------------------
# Conv2d (kernel 4, stride 2, padding 1) via im2col + tiled GEMM.
# --------------------------------------------------------------------------
def conv2d(x_nhwc, w_oihw, bias, *, stride, pad, use_bn, activation):
    N, H, W, Cin = x_nhwc.shape
    Cout = w_oihw.shape[0]
    kh = kw = 4

    xb = x_nhwc.astype(jnp.bfloat16)                     # bf16 patches: half HBM bytes
    xp = jnp.pad(xb, ((0, 0), (pad, pad), (pad, pad), (0, 0)))
    Hp, Wp = H + 2 * pad, W + 2 * pad
    Ho = (Hp - kh) // stride + 1
    Wo = (Wp - kw) // stride + 1

    cols = [xp[:, i:i + (Ho - 1) * stride + 1:stride,
               j:j + (Wo - 1) * stride + 1:stride, :]
            for i in range(kh) for j in range(kw)]
    a = jnp.concatenate(cols, axis=-1).reshape(N * Ho * Wo, kh * kw * Cin)

    # weight rows ordered (i, j, cin) to match the patch feature ordering
    wm = jnp.transpose(w_oihw, (2, 3, 1, 0)).reshape(kh * kw * Cin, Cout)

    if use_bn:
        # conv bias cancels under BatchNorm -> skip it (keeps padded rows zero)
        y = pallas_conv_gemm(a, wm, jnp.zeros((Cout,), jnp.float32),
                             activation=None)
        y = pallas_batchnorm_act(y, activation=activation)
    else:
        y = pallas_conv_gemm(a, wm, bias, activation=activation)

    Cp = y.shape[1]
    return y.reshape(N, Ho, Wo, Cp)[..., :Cout]


# --------------------------------------------------------------------------
# ConvTranspose2d (kernel 4, stride 2, padding 1) via 4-phase decomposition:
# each output parity phase (py, px) is a stride-1 conv with a 2x2 sub-kernel.
# --------------------------------------------------------------------------
def conv_transpose2d(x_nhwc, w_iohw, bias, *, use_bn, activation):
    N, H, W, Cin = x_nhwc.shape
    Cout = w_iohw.shape[1]

    xb = x_nhwc.astype(jnp.bfloat16)
    xp = jnp.pad(xb, ((0, 0), (1, 1), (1, 1), (0, 0)))   # halo of 1 on all sides

    bias_gemm = jnp.zeros((Cout,), jnp.float32) if use_bn else bias
    act_gemm = None if use_bn else activation

    phase_outs = []
    for py in range(2):
        for px in range(2):
            # patches: 2x2 window at padded offset (y+py, x+px), ordering (a, b, cin)
            cols = [xp[:, py + a: py + a + H, px + b: px + b + W, :]
                    for a in range(2) for b in range(2)]
            a_mat = jnp.concatenate(cols, axis=-1).reshape(N * H * W, 4 * Cin)
            # matching 2x2 sub-kernel of the (flipped) transposed-conv weight
            w_sub = jnp.stack(
                [jnp.stack([w_iohw[:, :, 3 - py - 2 * a, 3 - px - 2 * b]
                            for b in range(2)], axis=0)
                 for a in range(2)], axis=0)             # (a, b, Cin, Cout)
            wm = w_sub.reshape(4 * Cin, Cout)
            phase_outs.append(
                pallas_conv_gemm(a_mat, wm, bias_gemm, activation=act_gemm))

    Cp = phase_outs[0].shape[1]
    ph = jnp.stack(phase_outs, axis=1).reshape(N, H, W, 2, 2, Cp)
    out = jnp.transpose(ph, (0, 1, 3, 2, 4, 5)).reshape(N, 2 * H, 2 * W, Cp)

    if use_bn:
        y = pallas_batchnorm_act(out.reshape(N * 2 * H * 2 * W, Cp),
                                 activation=activation)
        out = y.reshape(N, 2 * H, 2 * W, Cp)
    return out[..., :Cout]


# --------------------------------------------------------------------------
# Parameter init (deterministic, synthetic) and full forward
# --------------------------------------------------------------------------
def init_params(key, in_channels=1, out_channels=1):
    ks = jax.random.split(key, 12)

    def w(k, shape):
        return (0.05 * jax.random.normal(k, shape)).astype(jnp.float32)

    return {
        # encoder Conv2d weights: (Cout, Cin, 4, 4)
        "e1_w": w(ks[0], (64, in_channels, 4, 4)),   "e1_b": w(ks[1], (64,)),
        "e2_w": w(ks[2], (128, 64, 4, 4)),           "e2_b": w(ks[3], (128,)),
        "e3_w": w(ks[4], (256, 128, 4, 4)),          "e3_b": w(ks[5], (256,)),
        # decoder ConvTranspose2d weights: (Cin, Cout, 4, 4)
        "d1_w": w(ks[6], (256, 128, 4, 4)),          "d1_b": w(ks[7], (128,)),
        "d2_w": w(ks[8], (128, 64, 4, 4)),           "d2_b": w(ks[9], (64,)),
        "d3_w": w(ks[10], (64, out_channels, 4, 4)), "d3_b": w(ks[11], (out_channels,)),
    }


@jax.jit
def unet_generator_forward(x_nchw, params):
    x = jnp.transpose(x_nchw, (0, 2, 3, 1))  # NCHW -> NHWC
    # encoder: Conv-ReLU, Conv-BN-ReLU, Conv-BN-ReLU
    x = conv2d(x, params["e1_w"], params["e1_b"], stride=2, pad=1,
               use_bn=False, activation="relu")
    x = conv2d(x, params["e2_w"], params["e2_b"], stride=2, pad=1,
               use_bn=True, activation="relu")
    x = conv2d(x, params["e3_w"], params["e3_b"], stride=2, pad=1,
               use_bn=True, activation="relu")
    # decoder: ConvT-BN-ReLU, ConvT-BN-ReLU, ConvT-Sigmoid
    x = conv_transpose2d(x, params["d1_w"], params["d1_b"],
                         use_bn=True, activation="relu")
    x = conv_transpose2d(x, params["d2_w"], params["d2_b"],
                         use_bn=True, activation="relu")
    x = conv_transpose2d(x, params["d3_w"], params["d3_b"],
                         use_bn=False, activation="sigmoid")
    return jnp.transpose(x, (0, 3, 1, 2))  # NHWC -> NCHW


if __name__ == "__main__":
    key = jax.random.PRNGKey(0)
    k_x, k_p = jax.random.split(key)

    # small, forward-consistent shapes: batch=2, in_channels=1, 16x16 spatial
    x = jax.random.normal(k_x, (2, 1, 16, 16), dtype=jnp.float32)
    params = init_params(k_p, in_channels=1, out_channels=1)

    out = unet_generator_forward(x, params)
    out = jax.block_until_ready(out)

    assert out.shape == (2, 1, 16, 16), out.shape
    assert bool(jnp.all(jnp.isfinite(out)))
    assert bool(jnp.all((out >= 0.0) & (out <= 1.0)))  # sigmoid output range

    print("KERNEL_OK")
</pallas_src>

<mosaic_0001>
module attributes {stable_mosaic.version = 11 : i64} {
  func.func @_gemm_kernel(%arg0: i32, %arg1: i32, %arg2: i32, %arg3: memref<128x16xbf16, #tpu.memory_space<vmem>>, %arg4: memref<16x128xbf16, #tpu.memory_space<vmem>>, %arg5: memref<1x128xf32, #tpu.memory_space<vmem>>, %arg6: memref<128x128xf32, #tpu.memory_space<vmem>>, %arg7: memref<128x128xf32, #tpu.memory_space<vmem>>) attributes {dimension_semantics = [#tpu.dimension_semantics<parallel>, #tpu.dimension_semantics<parallel>, #tpu.dimension_semantics<arbitrary>], iteration_bounds = array<i64: 1, 1, 1>, scalar_prefetch = 0 : i64, scratch_operands = 1 : i64, tpu.core_type = #tpu.core_type<tc>, window_params = [{transform_indices = @transform_0, window_bounds = array<i64: 128, 16>}, {transform_indices = @transform_1, window_bounds = array<i64: 16, 128>}, {transform_indices = @transform_2, window_bounds = array<i64: 1, 128>}, {transform_indices = @transform_3, window_bounds = array<i64: 128, 128>}]} {
    %c0_i32 = arith.constant 0 : i32
    %0 = arith.cmpi eq, %arg2, %c0_i32 : i32
    %1 = arith.extui %0 : i1 to i32
    %c0_i32_0 = arith.constant 0 : i32
    %2 = arith.cmpi ne, %1, %c0_i32_0 : i32
    scf.if %2 {
      %cst_10 = arith.constant 0.000000e+00 : f32
      %12 = vector.broadcast %cst_10 : f32 to vector<128x128xf32>
      %c0_11 = arith.constant 0 : index
      %c0_12 = arith.constant 0 : index
      %13 = vector.load %arg7[%c0_11, %c0_12] : memref<128x128xf32, #tpu.memory_space<vmem>>, vector<128x128xf32>
      tpu.vector_store %arg7[%c0_11, %c0_12], %12 {strides = array<i32>} : memref<128x128xf32, #tpu.memory_space<vmem>>, vector<128x128xf32>,
    } else {
    }
    %c0 = arith.constant 0 : index
    %c0_1 = arith.constant 0 : index
    %3 = vector.load %arg7[%c0, %c0_1] : memref<128x128xf32, #tpu.memory_space<vmem>>, vector<128x128xf32>
    %c0_2 = arith.constant 0 : index
    %c0_3 = arith.constant 0 : index
    %4 = vector.load %arg3[%c0_2, %c0_3] : memref<128x16xbf16, #tpu.memory_space<vmem>>, vector<128x16xbf16>
    %c0_4 = arith.constant 0 : index
    %c0_5 = arith.constant 0 : index
    %5 = vector.load %arg4[%c0_4, %c0_5] : memref<16x128xbf16, #tpu.memory_space<vmem>>, vector<16x128xbf16>
    %cst = arith.constant dense<0.000000e+00> : vector<128x128xf32>
    %6 = tpu.matmul %4, %5, %cst {dimension_numbers = #tpu.dot_dimension_numbers<[1], [0], [0], [1], [0, 0, 1, 1], [], []>} : vector<128x16xbf16>, vector<16x128xbf16>, vector<128x128xf32> -> vector<128x128xf32>
    %7 = arith.addf %3, %6 : vector<128x128xf32>
    %c0_6 = arith.constant 0 : index
    %c0_7 = arith.constant 0 : index
    %8 = vector.load %arg7[%c0_6, %c0_7] : memref<128x128xf32, #tpu.memory_space<vmem>>, vector<128x128xf32>
    tpu.vector_store %arg7[%c0_6, %c0_7], %7 {strides = array<i32>} : memref<128x128xf32, #tpu.memory_space<vmem>>, vector<128x128xf32>,
    %c0_i32_8 = arith.constant 0 : i32
    %9 = arith.cmpi eq, %arg2, %c0_i32_8 : i32
    %10 = arith.extui %9 : i1 to i32
    %c0_i32_9 = arith.constant 0 : i32
    %11 = arith.cmpi ne, %10, %c0_i32_9 : i32
    scf.if %11 {
      %c0_10 = arith.constant 0 : index
      %c0_11 = arith.constant 0 : index
      %12 = vector.load %arg7[%c0_10, %c0_11] : memref<128x128xf32, #tpu.memory_space<vmem>>, vector<128x128xf32>
      %c0_12 = arith.constant 0 : index
      %c0_13 = arith.constant 0 : index
      %13 = vector.load %arg5[%c0_12, %c0_13] : memref<1x128xf32, #tpu.memory_space<vmem>>, vector<1x128xf32>
      %14 = vector.broadcast %13 : vector<1x128xf32> to vector<128x128xf32>
      %15 = arith.addf %12, %14 : vector<128x128xf32>
      %cst_14 = arith.constant 0.000000e+00 : f32
      %16 = vector.broadcast %cst_14 : f32 to vector<128x128xf32>
      %17 = arith.maximumf %15, %16 : vector<128x128xf32>
      %c0_15 = arith.constant 0 : index
      %c0_16 = arith.constant 0 : index
      %18 = vector.load %arg6[%c0_15, %c0_16] : memref<128x128xf32, #tpu.memory_space<vmem>>, vector<128x128xf32>
      tpu.vector_store %arg6[%c0_15, %c0_16], %17 {strides = array<i32>} : memref<128x128xf32, #tpu.memory_space<vmem>>, vector<128x128xf32>,
    } else {
    }
    return
  }
  func.func @transform_0(%arg0: i32, %arg1: i32, %arg2: i32) -> (i32, i32) {
    %c0_i32 = arith.constant 0 : i32
    return %arg0, %arg2 : i32, i32
  }
  func.func @transform_1(%arg0: i32, %arg1: i32, %arg2: i32) -> (i32, i32) {
    %c0_i32 = arith.constant 0 : i32
    return %arg2, %arg1 : i32, i32
  }
  func.func @transform_2(%arg0: i32, %arg1: i32, %arg2: i32) -> (i32, i32) {
    %c0_i32 = arith.constant 0 : i32
    %c0_i32_0 = arith.constant 0 : i32
    return %c0_i32, %arg1 : i32, i32
  }
  func.func @transform_3(%arg0: i32, %arg1: i32, %arg2: i32) -> (i32, i32) {
    %c0_i32 = arith.constant 0 : i32
    return %arg0, %arg1 : i32, i32
  }
}

module attributes {stable_mosaic.version = 11 : i64} {
  func.func @_gemm_kernel(%arg0: i32, %arg1: i32, %arg2: i32, %arg3: memref<32x512xbf16, #tpu.memory_space<vmem>>, %arg4: memref<512x128xbf16, #tpu.memory_space<vmem>>, %arg5: memref<1x128xf32, #tpu.memory_space<vmem>>, %arg6: memref<32x128xf32, #tpu.memory_space<vmem>>, %arg7: memref<32x128xf32, #tpu.memory_space<vmem>>) attributes {dimension_semantics = [#tpu.dimension_semantics<parallel>, #tpu.dimension_semantics<parallel>, #tpu.dimension_semantics<arbitrary>], iteration_bounds = array<i64: 1, 1, 2>, scalar_prefetch = 0 : i64, scratch_operands = 1 : i64, tpu.core_type = #tpu.core_type<tc>, window_params = [{transform_indices = @transform_0, window_bounds = array<i64: 32, 512>}, {transform_indices = @transform_1, window_bounds = array<i64: 512, 128>}, {transform_indices = @transform_2, window_bounds = array<i64: 1, 128>}, {transform_indices = @transform_3, window_bounds = array<i64: 32, 128>}]} {
    %c0_i32 = arith.constant 0 : i32
    %0 = arith.cmpi eq, %arg2, %c0_i32 : i32
    %1 = arith.extui %0 : i1 to i32
    %c0_i32_0 = arith.constant 0 : i32
    %2 = arith.cmpi ne, %1, %c0_i32_0 : i32
    scf.if %2 {
      %cst_9 = arith.constant 0.000000e+00 : f32
      %12 = vector.broadcast %cst_9 : f32 to vector<32x128xf32>
      %c0_10 = arith.constant 0 : index
      %c0_11 = arith.constant 0 : index
      %13 = vector.load %arg7[%c0_10, %c0_11] : memref<32x128xf32, #tpu.memory_space<vmem>>, vector<32x128xf32>
      tpu.vector_store %arg7[%c0_10, %c0_11], %12 {strides = array<i32>} : memref<32x128xf32, #tpu.memory_space<vmem>>, vector<32x128xf32>,
    } else {
    }
    %c0 = arith.constant 0 : index
    %c0_1 = arith.constant 0 : index
    %3 = vector.load %arg7[%c0, %c0_1] : memref<32x128xf32, #tpu.memory_space<vmem>>, vector<32x128xf32>
    %c0_2 = arith.constant 0 : index
    %c0_3 = arith.constant 0 : index
    %4 = vector.load %arg3[%c0_2, %c0_3] : memref<32x512xbf16, #tpu.memory_space<vmem>>, vector<32x512xbf16>
    %c0_4 = arith.constant 0 : index
    %c0_5 = arith.constant 0 : index
    %5 = vector.load %arg4[%c0_4, %c0_5] : memref<512x128xbf16, #tpu.memory_space<vmem>>, vector<512x128xbf16>
    %cst = arith.constant dense<0.000000e+00> : vector<32x128xf32>
    %6 = tpu.matmul %4, %5, %cst {dimension_numbers = #tpu.dot_dimension_numbers<[1], [0], [0], [1], [0, 0, 1, 1], [], []>} : vector<32x512xbf16>, vector<512x128xbf16>, vector<32x128xf32> -> vector<32x128xf32>
    %7 = arith.addf %3, %6 : vector<32x128xf32>
    %c0_6 = arith.constant 0 : index
    %c0_7 = arith.constant 0 : index
    %8 = vector.load %arg7[%c0_6, %c0_7] : memref<32x128xf32, #tpu.memory_space<vmem>>, vector<32x128xf32>
    tpu.vector_store %arg7[%c0_6, %c0_7], %7 {strides = array<i32>} : memref<32x128xf32, #tpu.memory_space<vmem>>, vector<32x128xf32>,
    %c1_i32 = arith.constant 1 : i32
    %9 = arith.cmpi eq, %arg2, %c1_i32 : i32
    %10 = arith.extui %9 : i1 to i32
    %c0_i32_8 = arith.constant 0 : i32
    %11 = arith.cmpi ne, %10, %c0_i32_8 : i32
    scf.if %11 {
      %c0_9 = arith.constant 0 : index
      %c0_10 = arith.constant 0 : index
      %12 = vector.load %arg7[%c0_9, %c0_10] : memref<32x128xf32, #tpu.memory_space<vmem>>, vector<32x128xf32>
      %c0_11 = arith.constant 0 : index
      %c0_12 = arith.constant 0 : index
      %13 = vector.load %arg5[%c0_11, %c0_12] : memref<1x128xf32, #tpu.memory_space<vmem>>, vector<1x128xf32>
      %14 = vector.broadcast %13 : vector<1x128xf32> to vector<32x128xf32>
      %15 = arith.addf %12, %14 : vector<32x128xf32>
      %c0_13 = arith.constant 0 : index
      %c0_14 = arith.constant 0 : index
      %16 = vector.load %arg6[%c0_13, %c0_14] : memref<32x128xf32, #tpu.memory_space<vmem>>, vector<32x128xf32>
      tpu.vector_store %arg6[%c0_13, %c0_14], %15 {strides = array<i32>} : memref<32x128xf32, #tpu.memory_space<vmem>>, vector<32x128xf32>,
    } else {
    }
    return
  }
  func.func @transform_0(%arg0: i32, %arg1: i32, %arg2: i32) -> (i32, i32) {
    %c0_i32 = arith.constant 0 : i32
    return %arg0, %arg2 : i32, i32
  }
  func.func @transform_1(%arg0: i32, %arg1: i32, %arg2: i32) -> (i32, i32) {
    %c0_i32 = arith.constant 0 : i32
    return %arg2, %arg1 : i32, i32
  }
  func.func @transform_2(%arg0: i32, %arg1: i32, %arg2: i32) -> (i32, i32) {
    %c0_i32 = arith.constant 0 : i32
    %c0_i32_0 = arith.constant 0 : i32
    return %c0_i32, %arg1 : i32, i32
  }
  func.func @transform_3(%arg0: i32, %arg1: i32, %arg2: i32) -> (i32, i32) {
    %c0_i32 = arith.constant 0 : i32
    return %arg0, %arg1 : i32, i32
  }
}

module attributes {stable_mosaic.version = 11 : i64} {
  func.func @_bn_stats_kernel(%arg0: i32, %arg1: memref<32x128xf32, #tpu.memory_space<vmem>>, %arg2: memref<1x128xf32, #tpu.memory_space<vmem>>, %arg3: memref<1x128xf32, #tpu.memory_space<vmem>>) attributes {dimension_semantics = [#tpu.dimension_semantics<arbitrary>], iteration_bounds = array<i64: 1>, scalar_prefetch = 0 : i64, scratch_operands = 0 : i64, tpu.core_type = #tpu.core_type<tc>, window_params = [{transform_indices = @transform_0, window_bounds = array<i64: 32, 128>}, {pipeline_mode = #tpu.pipeline_mode<synchronous>, transform_indices = @transform_1, window_bounds = array<i64: 1, 128>}, {pipeline_mode = #tpu.pipeline_mode<synchronous>, transform_indices = @transform_2, window_bounds = array<i64: 1, 128>}]} {
    %c0_i32 = arith.constant 0 : i32
    %0 = arith.cmpi eq, %arg0, %c0_i32 : i32
    %1 = arith.extui %0 : i1 to i32
    %c0_i32_0 = arith.constant 0 : i32
    %2 = arith.cmpi ne, %1, %c0_i32_0 : i32
    scf.if %2 {
      %cst_11 = arith.constant 0.000000e+00 : f32
      %15 = vector.broadcast %cst_11 : f32 to vector<1x128xf32>
      %c0_12 = arith.constant 0 : index
      %c0_13 = arith.constant 0 : index
      %16 = vector.load %arg2[%c0_12, %c0_13] : memref<1x128xf32, #tpu.memory_space<vmem>>, vector<1x128xf32>
      tpu.vector_store %arg2[%c0_12, %c0_13], %15 {strides = array<i32>} : memref<1x128xf32, #tpu.memory_space<vmem>>, vector<1x128xf32>,
      %cst_14 = arith.constant 0.000000e+00 : f32
      %17 = vector.broadcast %cst_14 : f32 to vector<1x128xf32>
      %c0_15 = arith.constant 0 : index
      %c0_16 = arith.constant 0 : index
      %18 = vector.load %arg3[%c0_15, %c0_16] : memref<1x128xf32, #tpu.memory_space<vmem>>, vector<1x128xf32>
      tpu.vector_store %arg3[%c0_15, %c0_16], %17 {strides = array<i32>} : memref<1x128xf32, #tpu.memory_space<vmem>>, vector<1x128xf32>,
    } else {
    }
    %c0 = arith.constant 0 : index
    %c0_1 = arith.constant 0 : index
    %3 = vector.load %arg1[%c0, %c0_1] : memref<32x128xf32, #tpu.memory_space<vmem>>, vector<32x128xf32>
    %c0_2 = arith.constant 0 : index
    %c0_3 = arith.constant 0 : index
    %4 = vector.load %arg2[%c0_2, %c0_3] : memref<1x128xf32, #tpu.memory_space<vmem>>, vector<1x128xf32>
    %cst = arith.constant dense<0.000000e+00> : vector<128xf32>
    %5 = vector.multi_reduction <add>, %3, %cst [0] : vector<32x128xf32> to vector<128xf32>
    %6 = vector.shape_cast %5 : vector<128xf32> to vector<1x128xf32>
    %7 = arith.addf %4, %6 : vector<1x128xf32>
    %c0_4 = arith.constant 0 : index
    %c0_5 = arith.constant 0 : index
    %8 = vector.load %arg2[%c0_4, %c0_5] : memref<1x128xf32, #tpu.memory_space<vmem>>, vector<1x128xf32>
    tpu.vector_store %arg2[%c0_4, %c0_5], %7 {strides = array<i32>} : memref<1x128xf32, #tpu.memory_space<vmem>>, vector<1x128xf32>,
    %c0_6 = arith.constant 0 : index
    %c0_7 = arith.constant 0 : index
    %9 = vector.load %arg3[%c0_6, %c0_7] : memref<1x128xf32, #tpu.memory_space<vmem>>, vector<1x128xf32>
    %10 = arith.mulf %3, %3 : vector<32x128xf32>
    %cst_8 = arith.constant dense<0.000000e+00> : vector<128xf32>
    %11 = vector.multi_reduction <add>, %10, %cst_8 [0] : vector<32x128xf32> to vector<128xf32>
    %12 = vector.shape_cast %11 : vector<128xf32> to vector<1x128xf32>
    %13 = arith.addf %9, %12 : vector<1x128xf32>
    %c0_9 = arith.constant 0 : index
    %c0_10 = arith.constant 0 : index
    %14 = vector.load %arg3[%c0_9, %c0_10] : memref<1x128xf32, #tpu.memory_space<vmem>>, vector<1x128xf32>
    tpu.vector_store %arg3[%c0_9, %c0_10], %13 {strides = array<i32>} : memref<1x128xf32, #tpu.memory_space<vmem>>, vector<1x128xf32>,
    return
  }
  func.func @transform_0(%arg0: i32) -> (i32, i32) {
    %c0_i32 = arith.constant 0 : i32
    %c0_i32_0 = arith.constant 0 : i32
    return %arg0, %c0_i32 : i32, i32
  }
  func.func @transform_1(%arg0: i32) -> (i32, i32) {
    %c0_i32 = arith.constant 0 : i32
    %c0_i32_0 = arith.constant 0 : i32
    %c0_i32_1 = arith.constant 0 : i32
    return %c0_i32, %c0_i32_0 : i32, i32
  }
  func.func @transform_2(%arg0: i32) -> (i32, i32) {
    %c0_i32 = arith.constant 0 : i32
    %c0_i32_0 = arith.constant 0 : i32
    %c0_i32_1 = arith.constant 0 : i32
    return %c0_i32, %c0_i32_0 : i32, i32
  }
}

module attributes {stable_mosaic.version = 11 : i64} {
  func.func @_bn_apply_kernel(%arg0: i32, %arg1: memref<32x128xf32, #tpu.memory_space<vmem>>, %arg2: memref<1x128xf32, #tpu.memory_space<vmem>>, %arg3: memref<1x128xf32, #tpu.memory_space<vmem>>, %arg4: memref<32x128xf32, #tpu.memory_space<vmem>>) attributes {dimension_semantics = [#tpu.dimension_semantics<parallel>], iteration_bounds = array<i64: 1>, scalar_prefetch = 0 : i64, scratch_operands = 0 : i64, tpu.core_type = #tpu.core_type<tc>, window_params = [{transform_indices = @transform_0, window_bounds = array<i64: 32, 128>}, {pipeline_mode = #tpu.pipeline_mode<synchronous>, transform_indices = @transform_1, window_bounds = array<i64: 1, 128>}, {pipeline_mode = #tpu.pipeline_mode<synchronous>, transform_indices = @transform_2, window_bounds = array<i64: 1, 128>}, {transform_indices = @transform_3, window_bounds = array<i64: 32, 128>}]} {
    %c0 = arith.constant 0 : index
    %c0_0 = arith.constant 0 : index
    %0 = vector.load %arg2[%c0, %c0_0] : memref<1x128xf32, #tpu.memory_space<vmem>>, vector<1x128xf32>
    %cst = arith.constant 3.125000e-02 : f32
    %1 = vector.broadcast %cst : f32 to vector<1x128xf32>
    %2 = arith.mulf %0, %1 : vector<1x128xf32>
    %c0_1 = arith.constant 0 : index
    %c0_2 = arith.constant 0 : index
    %3 = vector.load %arg3[%c0_1, %c0_2] : memref<1x128xf32, #tpu.memory_space<vmem>>, vector<1x128xf32>
    %cst_3 = arith.constant 3.125000e-02 : f32
    %4 = vector.broadcast %cst_3 : f32 to vector<1x128xf32>
    %5 = arith.mulf %3, %4 : vector<1x128xf32>
    %6 = arith.mulf %2, %2 : vector<1x128xf32>
    %7 = arith.subf %5, %6 : vector<1x128xf32>
    %cst_4 = arith.constant 0.000000e+00 : f32
    %8 = vector.broadcast %cst_4 : f32 to vector<1x128xf32>
    %9 = arith.maximumf %7, %8 : vector<1x128xf32>
    %c0_5 = arith.constant 0 : index
    %c0_6 = arith.constant 0 : index
    %10 = vector.load %arg1[%c0_5, %c0_6] : memref<32x128xf32, #tpu.memory_space<vmem>>, vector<32x128xf32>
    %11 = vector.broadcast %2 : vector<1x128xf32> to vector<32x128xf32>
    %12 = arith.subf %10, %11 : vector<32x128xf32>
    %cst_7 = arith.constant 9.99999974E-6 : f32
    %13 = vector.broadcast %cst_7 : f32 to vector<1x128xf32>
    %14 = arith.addf %9, %13 : vector<1x128xf32>
    %15 = math.rsqrt %14 : vector<1x128xf32>
    %16 = vector.broadcast %15 : vector<1x128xf32> to vector<32x128xf32>
    %17 = arith.mulf %12, %16 : vector<32x128xf32>
    %cst_8 = arith.constant 0.000000e+00 : f32
    %18 = vector.broadcast %cst_8 : f32 to vector<32x128xf32>
    %19 = arith.maximumf %17, %18 : vector<32x128xf32>
    %c0_9 = arith.constant 0 : index
    %c0_10 = arith.constant 0 : index
    %20 = vector.load %arg4[%c0_9, %c0_10] : memref<32x128xf32, #tpu.memory_space<vmem>>, vector<32x128xf32>
    tpu.vector_store %arg4[%c0_9, %c0_10], %19 {strides = array<i32>} : memref<32x128xf32, #tpu.memory_space<vmem>>, vector<32x128xf32>,
    return
  }
  func.func @transform_0(%arg0: i32) -> (i32, i32) {
    %c0_i32 = arith.constant 0 : i32
    %c0_i32_0 = arith.constant 0 : i32
    return %arg0, %c0_i32 : i32, i32
  }
  func.func @transform_1(%arg0: i32) -> (i32, i32) {
    %c0_i32 = arith.constant 0 : i32
    %c0_i32_0 = arith.constant 0 : i32
    %c0_i32_1 = arith.constant 0 : i32
    return %c0_i32, %c0_i32_0 : i32, i32
  }
  func.func @transform_2(%arg0: i32) -> (i32, i32) {
    %c0_i32 = arith.constant 0 : i32
    %c0_i32_0 = arith.constant 0 : i32
    %c0_i32_1 = arith.constant 0 : i32
    return %c0_i32, %c0_i32_0 : i32, i32
  }
  func.func @transform_3(%arg0: i32) -> (i32, i32) {
    %c0_i32 = arith.constant 0 : i32
    %c0_i32_0 = arith.constant 0 : i32
    return %arg0, %c0_i32 : i32, i32
  }
}

module attributes {stable_mosaic.version = 11 : i64} {
  func.func @_gemm_kernel(%arg0: i32, %arg1: i32, %arg2: i32, %arg3: memref<8x512xbf16, #tpu.memory_space<vmem>>, %arg4: memref<512x128xbf16, #tpu.memory_space<vmem>>, %arg5: memref<1x128xf32, #tpu.memory_space<vmem>>, %arg6: memref<8x128xf32, #tpu.memory_space<vmem>>, %arg7: memref<8x128xf32, #tpu.memory_space<vmem>>) attributes {dimension_semantics = [#tpu.dimension_semantics<parallel>, #tpu.dimension_semantics<parallel>, #tpu.dimension_semantics<arbitrary>], iteration_bounds = array<i64: 1, 2, 4>, scalar_prefetch = 0 : i64, scratch_operands = 1 : i64, tpu.core_type = #tpu.core_type<tc>, window_params = [{transform_indices = @transform_0, window_bounds = array<i64: 8, 512>}, {transform_indices = @transform_1, window_bounds = array<i64: 512, 128>}, {transform_indices = @transform_2, window_bounds = array<i64: 1, 128>}, {transform_indices = @transform_3, window_bounds = array<i64: 8, 128>}]} {
    %c0_i32 = arith.constant 0 : i32
    %0 = arith.cmpi eq, %arg2, %c0_i32 : i32
    %1 = arith.extui %0 : i1 to i32
    %c0_i32_0 = arith.constant 0 : i32
    %2 = arith.cmpi ne, %1, %c0_i32_0 : i32
    scf.if %2 {
      %cst_9 = arith.constant 0.000000e+00 : f32
      %12 = vector.broadcast %cst_9 : f32 to vector<8x128xf32>
      %c0_10 = arith.constant 0 : index
      %c0_11 = arith.constant 0 : index
      %13 = vector.load %arg7[%c0_10, %c0_11] : memref<8x128xf32, #tpu.memory_space<vmem>>, vector<8x128xf32>
      tpu.vector_store %arg7[%c0_10, %c0_11], %12 {strides = array<i32>} : memref<8x128xf32, #tpu.memory_space<vmem>>, vector<8x128xf32>,
    } else {
    }
    %c0 = arith.constant 0 : index
    %c0_1 = arith.constant 0 : index
    %3 = vector.load %arg7[%c0, %c0_1] : memref<8x128xf32, #tpu.memory_space<vmem>>, vector<8x128xf32>
    %c0_2 = arith.constant 0 : index
    %c0_3 = arith.constant 0 : index
    %4 = vector.load %arg3[%c0_2, %c0_3] : memref<8x512xbf16, #tpu.memory_space<vmem>>, vector<8x512xbf16>
    %c0_4 = arith.constant 0 : index
    %c0_5 = arith.constant 0 : index
    %5 = vector.load %arg4[%c0_4, %c0_5] : memref<512x128xbf16, #tpu.memory_space<vmem>>, vector<512x128xbf16>
    %cst = arith.constant dense<0.000000e+00> : vector<8x128xf32>
    %6 = tpu.matmul %4, %5, %cst {dimension_numbers = #tpu.dot_dimension_numbers<[1], [0], [0], [1], [0, 0, 1, 1], [], []>} : vector<8x512xbf16>, vector<512x128xbf16>, vector<8x128xf32> -> vector<8x128xf32>
    %7 = arith.addf %3, %6 : vector<8x128xf32>
    %c0_6 = arith.constant 0 : index
    %c0_7 = arith.constant 0 : index
    %8 = vector.load %arg7[%c0_6, %c0_7] : memref<8x128xf32, #tpu.memory_space<vmem>>, vector<8x128xf32>
    tpu.vector_store %arg7[%c0_6, %c0_7], %7 {strides = array<i32>} : memref<8x128xf32, #tpu.memory_space<vmem>>, vector<8x128xf32>,
    %c3_i32 = arith.constant 3 : i32
    %9 = arith.cmpi eq, %arg2, %c3_i32 : i32
    %10 = arith.extui %9 : i1 to i32
    %c0_i32_8 = arith.constant 0 : i32
    %11 = arith.cmpi ne, %10, %c0_i32_8 : i32
    scf.if %11 {
      %c0_9 = arith.constant 0 : index
      %c0_10 = arith.constant 0 : index
      %12 = vector.load %arg7[%c0_9, %c0_10] : memref<8x128xf32, #tpu.memory_space<vmem>>, vector<8x128xf32>
      %c0_11 = arith.constant 0 : index
      %c0_12 = arith.constant 0 : index
      %13 = vector.load %arg5[%c0_11, %c0_12] : memref<1x128xf32, #tpu.memory_space<vmem>>, vector<1x128xf32>
      %14 = vector.broadcast %13 : vector<1x128xf32> to vector<8x128xf32>
      %15 = arith.addf %12, %14 : vector<8x128xf32>
      %c0_13 = arith.constant 0 : index
      %c0_14 = arith.constant 0 : index
      %16 = vector.load %arg6[%c0_13, %c0_14] : memref<8x128xf32, #tpu.memory_space<vmem>>, vector<8x128xf32>
      tpu.vector_store %arg6[%c0_13, %c0_14], %15 {strides = array<i32>} : memref<8x128xf32, #tpu.memory_space<vmem>>, vector<8x128xf32>,
    } else {
    }
    return
  }
  func.func @transform_0(%arg0: i32, %arg1: i32, %arg2: i32) -> (i32, i32) {
    %c0_i32 = arith.constant 0 : i32
    return %arg0, %arg2 : i32, i32
  }
  func.func @transform_1(%arg0: i32, %arg1: i32, %arg2: i32) -> (i32, i32) {
    %c0_i32 = arith.constant 0 : i32
    return %arg2, %arg1 : i32, i32
  }
  func.func @transform_2(%arg0: i32, %arg1: i32, %arg2: i32) -> (i32, i32) {
    %c0_i32 = arith.constant 0 : i32
    %c0_i32_0 = arith.constant 0 : i32
    return %c0_i32, %arg1 : i32, i32
  }
  func.func @transform_3(%arg0: i32, %arg1: i32, %arg2: i32) -> (i32, i32) {
    %c0_i32 = arith.constant 0 : i32
    return %arg0, %arg1 : i32, i32
  }
}

module attributes {stable_mosaic.version = 11 : i64} {
  func.func @_bn_stats_kernel(%arg0: i32, %arg1: memref<8x256xf32, #tpu.memory_space<vmem>>, %arg2: memref<1x256xf32, #tpu.memory_space<vmem>>, %arg3: memref<1x256xf32, #tpu.memory_space<vmem>>) attributes {dimension_semantics = [#tpu.dimension_semantics<arbitrary>], iteration_bounds = array<i64: 1>, scalar_prefetch = 0 : i64, scratch_operands = 0 : i64, tpu.core_type = #tpu.core_type<tc>, window_params = [{transform_indices = @transform_0, window_bounds = array<i64: 8, 256>}, {pipeline_mode = #tpu.pipeline_mode<synchronous>, transform_indices = @transform_1, window_bounds = array<i64: 1, 256>}, {pipeline_mode = #tpu.pipeline_mode<synchronous>, transform_indices = @transform_2, window_bounds = array<i64: 1, 256>}]} {
    %c0_i32 = arith.constant 0 : i32
    %0 = arith.cmpi eq, %arg0, %c0_i32 : i32
    %1 = arith.extui %0 : i1 to i32
    %c0_i32_0 = arith.constant 0 : i32
    %2 = arith.cmpi ne, %1, %c0_i32_0 : i32
    scf.if %2 {
      %cst_11 = arith.constant 0.000000e+00 : f32
      %15 = vector.broadcast %cst_11 : f32 to vector<1x256xf32>
      %c0_12 = arith.constant 0 : index
      %c0_13 = arith.constant 0 : index
      %16 = vector.load %arg2[%c0_12, %c0_13] : memref<1x256xf32, #tpu.memory_space<vmem>>, vector<1x256xf32>
      tpu.vector_store %arg2[%c0_12, %c0_13], %15 {strides = array<i32>} : memref<1x256xf32, #tpu.memory_space<vmem>>, vector<1x256xf32>,
      %cst_14 = arith.constant 0.000000e+00 : f32
      %17 = vector.broadcast %cst_14 : f32 to vector<1x256xf32>
      %c0_15 = arith.constant 0 : index
      %c0_16 = arith.constant 0 : index
      %18 = vector.load %arg3[%c0_15, %c0_16] : memref<1x256xf32, #tpu.memory_space<vmem>>, vector<1x256xf32>
      tpu.vector_store %arg3[%c0_15, %c0_16], %17 {strides = array<i32>} : memref<1x256xf32, #tpu.memory_space<vmem>>, vector<1x256xf32>,
    } else {
    }
    %c0 = arith.constant 0 : index
    %c0_1 = arith.constant 0 : index
    %3 = vector.load %arg1[%c0, %c0_1] : memref<8x256xf32, #tpu.memory_space<vmem>>, vector<8x256xf32>
    %c0_2 = arith.constant 0 : index
    %c0_3 = arith.constant 0 : index
    %4 = vector.load %arg2[%c0_2, %c0_3] : memref<1x256xf32, #tpu.memory_space<vmem>>, vector<1x256xf32>
    %cst = arith.constant dense<0.000000e+00> : vector<256xf32>
    %5 = vector.multi_reduction <add>, %3, %cst [0] : vector<8x256xf32> to vector<256xf32>
    %6 = vector.shape_cast %5 : vector<256xf32> to vector<1x256xf32>
    %7 = arith.addf %4, %6 : vector<1x256xf32>
    %c0_4 = arith.constant 0 : index
    %c0_5 = arith.constant 0 : index
    %8 = vector.load %arg2[%c0_4, %c0_5] : memref<1x256xf32, #tpu.memory_space<vmem>>, vector<1x256xf32>
    tpu.vector_store %arg2[%c0_4, %c0_5], %7 {strides = array<i32>} : memref<1x256xf32, #tpu.memory_space<vmem>>, vector<1x256xf32>,
    %c0_6 = arith.constant 0 : index
    %c0_7 = arith.constant 0 : index
    %9 = vector.load %arg3[%c0_6, %c0_7] : memref<1x256xf32, #tpu.memory_space<vmem>>, vector<1x256xf32>
    %10 = arith.mulf %3, %3 : vector<8x256xf32>
    %cst_8 = arith.constant dense<0.000000e+00> : vector<256xf32>
    %11 = vector.multi_reduction <add>, %10, %cst_8 [0] : vector<8x256xf32> to vector<256xf32>
    %12 = vector.shape_cast %11 : vector<256xf32> to vector<1x256xf32>
    %13 = arith.addf %9, %12 : vector<1x256xf32>
    %c0_9 = arith.constant 0 : index
    %c0_10 = arith.constant 0 : index
    %14 = vector.load %arg3[%c0_9, %c0_10] : memref<1x256xf32, #tpu.memory_space<vmem>>, vector<1x256xf32>
    tpu.vector_store %arg3[%c0_9, %c0_10], %13 {strides = array<i32>} : memref<1x256xf32, #tpu.memory_space<vmem>>, vector<1x256xf32>,
    return
  }
  func.func @transform_0(%arg0: i32) -> (i32, i32) {
    %c0_i32 = arith.constant 0 : i32
    %c0_i32_0 = arith.constant 0 : i32
    return %arg0, %c0_i32 : i32, i32
  }
  func.func @transform_1(%arg0: i32) -> (i32, i32) {
    %c0_i32 = arith.constant 0 : i32
    %c0_i32_0 = arith.constant 0 : i32
    %c0_i32_1 = arith.constant 0 : i32
    return %c0_i32, %c0_i32_0 : i32, i32
  }
  func.func @transform_2(%arg0: i32) -> (i32, i32) {
    %c0_i32 = arith.constant 0 : i32
    %c0_i32_0 = arith.constant 0 : i32
    %c0_i32_1 = arith.constant 0 : i32
    return %c0_i32, %c0_i32_0 : i32, i32
  }
}

module attributes {stable_mosaic.version = 11 : i64} {
  func.func @_bn_apply_kernel(%arg0: i32, %arg1: memref<8x256xf32, #tpu.memory_space<vmem>>, %arg2: memref<1x256xf32, #tpu.memory_space<vmem>>, %arg3: memref<1x256xf32, #tpu.memory_space<vmem>>, %arg4: memref<8x256xf32, #tpu.memory_space<vmem>>) attributes {dimension_semantics = [#tpu.dimension_semantics<parallel>], iteration_bounds = array<i64: 1>, scalar_prefetch = 0 : i64, scratch_operands = 0 : i64, tpu.core_type = #tpu.core_type<tc>, window_params = [{transform_indices = @transform_0, window_bounds = array<i64: 8, 256>}, {pipeline_mode = #tpu.pipeline_mode<synchronous>, transform_indices = @transform_1, window_bounds = array<i64: 1, 256>}, {pipeline_mode = #tpu.pipeline_mode<synchronous>, transform_indices = @transform_2, window_bounds = array<i64: 1, 256>}, {transform_indices = @transform_3, window_bounds = array<i64: 8, 256>}]} {
    %c0 = arith.constant 0 : index
    %c0_0 = arith.constant 0 : index
    %0 = vector.load %arg2[%c0, %c0_0] : memref<1x256xf32, #tpu.memory_space<vmem>>, vector<1x256xf32>
    %cst = arith.constant 1.250000e-01 : f32
    %1 = vector.broadcast %cst : f32 to vector<1x256xf32>
    %2 = arith.mulf %0, %1 : vector<1x256xf32>
    %c0_1 = arith.constant 0 : index
    %c0_2 = arith.constant 0 : index
    %3 = vector.load %arg3[%c0_1, %c0_2] : memref<1x256xf32, #tpu.memory_space<vmem>>, vector<1x256xf32>
    %cst_3 = arith.constant 1.250000e-01 : f32
    %4 = vector.broadcast %cst_3 : f32 to vector<1x256xf32>
    %5 = arith.mulf %3, %4 : vector<1x256xf32>
    %6 = arith.mulf %2, %2 : vector<1x256xf32>
    %7 = arith.subf %5, %6 : vector<1x256xf32>
    %cst_4 = arith.constant 0.000000e+00 : f32
    %8 = vector.broadcast %cst_4 : f32 to vector<1x256xf32>
    %9 = arith.maximumf %7, %8 : vector<1x256xf32>
    %c0_5 = arith.constant 0 : index
    %c0_6 = arith.constant 0 : index
    %10 = vector.load %arg1[%c0_5, %c0_6] : memref<8x256xf32, #tpu.memory_space<vmem>>, vector<8x256xf32>
    %11 = vector.broadcast %2 : vector<1x256xf32> to vector<8x256xf32>
    %12 = arith.subf %10, %11 : vector<8x256xf32>
    %cst_7 = arith.constant 9.99999974E-6 : f32
    %13 = vector.broadcast %cst_7 : f32 to vector<1x256xf32>
    %14 = arith.addf %9, %13 : vector<1x256xf32>
    %15 = math.rsqrt %14 : vector<1x256xf32>
    %16 = vector.broadcast %15 : vector<1x256xf32> to vector<8x256xf32>
    %17 = arith.mulf %12, %16 : vector<8x256xf32>
    %cst_8 = arith.constant 0.000000e+00 : f32
    %18 = vector.broadcast %cst_8 : f32 to vector<8x256xf32>
    %19 = arith.maximumf %17, %18 : vector<8x256xf32>
    %c0_9 = arith.constant 0 : index
    %c0_10 = arith.constant 0 : index
    %20 = vector.load %arg4[%c0_9, %c0_10] : memref<8x256xf32, #tpu.memory_space<vmem>>, vector<8x256xf32>
    tpu.vector_store %arg4[%c0_9, %c0_10], %19 {strides = array<i32>} : memref<8x256xf32, #tpu.memory_space<vmem>>, vector<8x256xf32>,
    return
  }
  func.func @transform_0(%arg0: i32) -> (i32, i32) {
    %c0_i32 = arith.constant 0 : i32
    %c0_i32_0 = arith.constant 0 : i32
    return %arg0, %c0_i32 : i32, i32
  }
  func.func @transform_1(%arg0: i32) -> (i32, i32) {
    %c0_i32 = arith.constant 0 : i32
    %c0_i32_0 = arith.constant 0 : i32
    %c0_i32_1 = arith.constant 0 : i32
    return %c0_i32, %c0_i32_0 : i32, i32
  }
  func.func @transform_2(%arg0: i32) -> (i32, i32) {
    %c0_i32 = arith.constant 0 : i32
    %c0_i32_0 = arith.constant 0 : i32
    %c0_i32_1 = arith.constant 0 : i32
    return %c0_i32, %c0_i32_0 : i32, i32
  }
  func.func @transform_3(%arg0: i32) -> (i32, i32) {
    %c0_i32 = arith.constant 0 : i32
    %c0_i32_0 = arith.constant 0 : i32
    return %arg0, %c0_i32 : i32, i32
  }
}

module attributes {stable_mosaic.version = 11 : i64} {
  func.func @_gemm_kernel(%arg0: i32, %arg1: i32, %arg2: i32, %arg3: memref<8x512xbf16, #tpu.memory_space<vmem>>, %arg4: memref<512x128xbf16, #tpu.memory_space<vmem>>, %arg5: memref<1x128xf32, #tpu.memory_space<vmem>>, %arg6: memref<8x128xf32, #tpu.memory_space<vmem>>, %arg7: memref<8x128xf32, #tpu.memory_space<vmem>>) attributes {dimension_semantics = [#tpu.dimension_semantics<parallel>, #tpu.dimension_semantics<parallel>, #tpu.dimension_semantics<arbitrary>], iteration_bounds = array<i64: 1, 1, 2>, scalar_prefetch = 0 : i64, scratch_operands = 1 : i64, tpu.core_type = #tpu.core_type<tc>, window_params = [{transform_indices = @transform_0, window_bounds = array<i64: 8, 512>}, {transform_indices = @transform_1, window_bounds = array<i64: 512, 128>}, {transform_indices = @transform_2, window_bounds = array<i64: 1, 128>}, {transform_indices = @transform_3, window_bounds = array<i64: 8, 128>}]} {
    %c0_i32 = arith.constant 0 : i32
    %0 = arith.cmpi eq, %arg2, %c0_i32 : i32
    %1 = arith.extui %0 : i1 to i32
    %c0_i32_0 = arith.constant 0 : i32
    %2 = arith.cmpi ne, %1, %c0_i32_0 : i32
    scf.if %2 {
      %cst_9 = arith.constant 0.000000e+00 : f32
      %12 = vector.broadcast %cst_9 : f32 to vector<8x128xf32>
      %c0_10 = arith.constant 0 : index
      %c0_11 = arith.constant 0 : index
      %13 = vector.load %arg7[%c0_10, %c0_11] : memref<8x128xf32, #tpu.memory_space<vmem>>, vector<8x128xf32>
      tpu.vector_store %arg7[%c0_10, %c0_11], %12 {strides = array<i32>} : memref<8x128xf32, #tpu.memory_space<vmem>>, vector<8x128xf32>,
    } else {
    }
    %c0 = arith.constant 0 : index
    %c0_1 = arith.constant 0 : index
    %3 = vector.load %arg7[%c0, %c0_1] : memref<8x128xf32, #tpu.memory_space<vmem>>, vector<8x128xf32>
    %c0_2 = arith.constant 0 : index
    %c0_3 = arith.constant 0 : index
    %4 = vector.load %arg3[%c0_2, %c0_3] : memref<8x512xbf16, #tpu.memory_space<vmem>>, vector<8x512xbf16>
    %c0_4 = arith.constant 0 : index
    %c0_5 = arith.constant 0 : index
    %5 = vector.load %arg4[%c0_4, %c0_5] : memref<512x128xbf16, #tpu.memory_space<vmem>>, vector<512x128xbf16>
    %cst = arith.constant dense<0.000000e+00> : vector<8x128xf32>
    %6 = tpu.matmul %4, %5, %cst {dimension_numbers = #tpu.dot_dimension_numbers<[1], [0], [0], [1], [0, 0, 1, 1], [], []>} : vector<8x512xbf16>, vector<512x128xbf16>, vector<8x128xf32> -> vector<8x128xf32>
    %7 = arith.addf %3, %6 : vector<8x128xf32>
    %c0_6 = arith.constant 0 : index
    %c0_7 = arith.constant 0 : index
    %8 = vector.load %arg7[%c0_6, %c0_7] : memref<8x128xf32, #tpu.memory_space<vmem>>, vector<8x128xf32>
    tpu.vector_store %arg7[%c0_6, %c0_7], %7 {strides = array<i32>} : memref<8x128xf32, #tpu.memory_space<vmem>>, vector<8x128xf32>,
    %c1_i32 = arith.constant 1 : i32
    %9 = arith.cmpi eq, %arg2, %c1_i32 : i32
    %10 = arith.extui %9 : i1 to i32
    %c0_i32_8 = arith.constant 0 : i32
    %11 = arith.cmpi ne, %10, %c0_i32_8 : i32
    scf.if %11 {
      %c0_9 = arith.constant 0 : index
      %c0_10 = arith.constant 0 : index
      %12 = vector.load %arg7[%c0_9, %c0_10] : memref<8x128xf32, #tpu.memory_space<vmem>>, vector<8x128xf32>
      %c0_11 = arith.constant 0 : index
      %c0_12 = arith.constant 0 : index
      %13 = vector.load %arg5[%c0_11, %c0_12] : memref<1x128xf32, #tpu.memory_space<vmem>>, vector<1x128xf32>
      %14 = vector.broadcast %13 : vector<1x128xf32> to vector<8x128xf32>
      %15 = arith.addf %12, %14 : vector<8x128xf32>
      %c0_13 = arith.constant 0 : index
      %c0_14 = arith.constant 0 : index
      %16 = vector.load %arg6[%c0_13, %c0_14] : memref<8x128xf32, #tpu.memory_space<vmem>>, vector<8x128xf32>
      tpu.vector_store %arg6[%c0_13, %c0_14], %15 {strides = array<i32>} : memref<8x128xf32, #tpu.memory_space<vmem>>, vector<8x128xf32>,
    } else {
    }
    return
  }
  func.func @transform_0(%arg0: i32, %arg1: i32, %arg2: i32) -> (i32, i32) {
    %c0_i32 = arith.constant 0 : i32
    return %arg0, %arg2 : i32, i32
  }
  func.func @transform_1(%arg0: i32, %arg1: i32, %arg2: i32) -> (i32, i32) {
    %c0_i32 = arith.constant 0 : i32
    return %arg2, %arg1 : i32, i32
  }
  func.func @transform_2(%arg0: i32, %arg1: i32, %arg2: i32) -> (i32, i32) {
    %c0_i32 = arith.constant 0 : i32
    %c0_i32_0 = arith.constant 0 : i32
    return %c0_i32, %arg1 : i32, i32
  }
  func.func @transform_3(%arg0: i32, %arg1: i32, %arg2: i32) -> (i32, i32) {
    %c0_i32 = arith.constant 0 : i32
    return %arg0, %arg1 : i32, i32
  }
}

module attributes {stable_mosaic.version = 11 : i64} {
  func.func @_gemm_kernel(%arg0: i32, %arg1: i32, %arg2: i32, %arg3: memref<32x512xbf16, #tpu.memory_space<vmem>>, %arg4: memref<512x128xbf16, #tpu.memory_space<vmem>>, %arg5: memref<1x128xf32, #tpu.memory_space<vmem>>, %arg6: memref<32x128xf32, #tpu.memory_space<vmem>>, %arg7: memref<32x128xf32, #tpu.memory_space<vmem>>) attributes {dimension_semantics = [#tpu.dimension_semantics<parallel>, #tpu.dimension_semantics<parallel>, #tpu.dimension_semantics<arbitrary>], iteration_bounds = array<i64: 1, 1, 1>, scalar_prefetch = 0 : i64, scratch_operands = 1 : i64, tpu.core_type = #tpu.core_type<tc>, window_params = [{transform_indices = @transform_0, window_bounds = array<i64: 32, 512>}, {transform_indices = @transform_1, window_bounds = array<i64: 512, 128>}, {transform_indices = @transform_2, window_bounds = array<i64: 1, 128>}, {transform_indices = @transform_3, window_bounds = array<i64: 32, 128>}]} {
    %c0_i32 = arith.constant 0 : i32
    %0 = arith.cmpi eq, %arg2, %c0_i32 : i32
    %1 = arith.extui %0 : i1 to i32
    %c0_i32_0 = arith.constant 0 : i32
    %2 = arith.cmpi ne, %1, %c0_i32_0 : i32
    scf.if %2 {
      %cst_10 = arith.constant 0.000000e+00 : f32
      %12 = vector.broadcast %cst_10 : f32 to vector<32x128xf32>
      %c0_11 = arith.constant 0 : index
      %c0_12 = arith.constant 0 : index
      %13 = vector.load %arg7[%c0_11, %c0_12] : memref<32x128xf32, #tpu.memory_space<vmem>>, vector<32x128xf32>
      tpu.vector_store %arg7[%c0_11, %c0_12], %12 {strides = array<i32>} : memref<32x128xf32, #tpu.memory_space<vmem>>, vector<32x128xf32>,
    } else {
    }
    %c0 = arith.constant 0 : index
    %c0_1 = arith.constant 0 : index
    %3 = vector.load %arg7[%c0, %c0_1] : memref<32x128xf32, #tpu.memory_space<vmem>>, vector<32x128xf32>
    %c0_2 = arith.constant 0 : index
    %c0_3 = arith.constant 0 : index
    %4 = vector.load %arg3[%c0_2, %c0_3] : memref<32x512xbf16, #tpu.memory_space<vmem>>, vector<32x512xbf16>
    %c0_4 = arith.constant 0 : index
    %c0_5 = arith.constant 0 : index
    %5 = vector.load %arg4[%c0_4, %c0_5] : memref<512x128xbf16, #tpu.memory_space<vmem>>, vector<512x128xbf16>
    %cst = arith.constant dense<0.000000e+00> : vector<32x128xf32>
    %6 = tpu.matmul %4, %5, %cst {dimension_numbers = #tpu.dot_dimension_numbers<[1], [0], [0], [1], [0, 0, 1, 1], [], []>} : vector<32x512xbf16>, vector<512x128xbf16>, vector<32x128xf32> -> vector<32x128xf32>
    %7 = arith.addf %3, %6 : vector<32x128xf32>
    %c0_6 = arith.constant 0 : index
    %c0_7 = arith.constant 0 : index
    %8 = vector.load %arg7[%c0_6, %c0_7] : memref<32x128xf32, #tpu.memory_space<vmem>>, vector<32x128xf32>
    tpu.vector_store %arg7[%c0_6, %c0_7], %7 {strides = array<i32>} : memref<32x128xf32, #tpu.memory_space<vmem>>, vector<32x128xf32>,
    %c0_i32_8 = arith.constant 0 : i32
    %9 = arith.cmpi eq, %arg2, %c0_i32_8 : i32
    %10 = arith.extui %9 : i1 to i32
    %c0_i32_9 = arith.constant 0 : i32
    %11 = arith.cmpi ne, %10, %c0_i32_9 : i32
    scf.if %11 {
      %c0_10 = arith.constant 0 : index
      %c0_11 = arith.constant 0 : index
      %12 = vector.load %arg7[%c0_10, %c0_11] : memref<32x128xf32, #tpu.memory_space<vmem>>, vector<32x128xf32>
      %c0_12 = arith.constant 0 : index
      %c0_13 = arith.constant 0 : index
      %13 = vector.load %arg5[%c0_12, %c0_13] : memref<1x128xf32, #tpu.memory_space<vmem>>, vector<1x128xf32>
      %14 = vector.broadcast %13 : vector<1x128xf32> to vector<32x128xf32>
      %15 = arith.addf %12, %14 : vector<32x128xf32>
      %c0_14 = arith.constant 0 : index
      %c0_15 = arith.constant 0 : index
      %16 = vector.load %arg6[%c0_14, %c0_15] : memref<32x128xf32, #tpu.memory_space<vmem>>, vector<32x128xf32>
      tpu.vector_store %arg6[%c0_14, %c0_15], %15 {strides = array<i32>} : memref<32x128xf32, #tpu.memory_space<vmem>>, vector<32x128xf32>,
    } else {
    }
    return
  }
  func.func @transform_0(%arg0: i32, %arg1: i32, %arg2: i32) -> (i32, i32) {
    %c0_i32 = arith.constant 0 : i32
    return %arg0, %arg2 : i32, i32
  }
  func.func @transform_1(%arg0: i32, %arg1: i32, %arg2: i32) -> (i32, i32) {
    %c0_i32 = arith.constant 0 : i32
    return %arg2, %arg1 : i32, i32
  }
  func.func @transform_2(%arg0: i32, %arg1: i32, %arg2: i32) -> (i32, i32) {
    %c0_i32 = arith.constant 0 : i32
    %c0_i32_0 = arith.constant 0 : i32
    return %c0_i32, %arg1 : i32, i32
  }
  func.func @transform_3(%arg0: i32, %arg1: i32, %arg2: i32) -> (i32, i32) {
    %c0_i32 = arith.constant 0 : i32
    return %arg0, %arg1 : i32, i32
  }
}

module attributes {stable_mosaic.version = 11 : i64} {
  func.func @_bn_stats_kernel(%arg0: i32, %arg1: memref<128x128xf32, #tpu.memory_space<vmem>>, %arg2: memref<1x128xf32, #tpu.memory_space<vmem>>, %arg3: memref<1x128xf32, #tpu.memory_space<vmem>>) attributes {dimension_semantics = [#tpu.dimension_semantics<arbitrary>], iteration_bounds = array<i64: 1>, scalar_prefetch = 0 : i64, scratch_operands = 0 : i64, tpu.core_type = #tpu.core_type<tc>, window_params = [{transform_indices = @transform_0, window_bounds = array<i64: 128, 128>}, {pipeline_mode = #tpu.pipeline_mode<synchronous>, transform_indices = @transform_1, window_bounds = array<i64: 1, 128>}, {pipeline_mode = #tpu.pipeline_mode<synchronous>, transform_indices = @transform_2, window_bounds = array<i64: 1, 128>}]} {
    %c0_i32 = arith.constant 0 : i32
    %0 = arith.cmpi eq, %arg0, %c0_i32 : i32
    %1 = arith.extui %0 : i1 to i32
    %c0_i32_0 = arith.constant 0 : i32
    %2 = arith.cmpi ne, %1, %c0_i32_0 : i32
    scf.if %2 {
      %cst_11 = arith.constant 0.000000e+00 : f32
      %15 = vector.broadcast %cst_11 : f32 to vector<1x128xf32>
      %c0_12 = arith.constant 0 : index
      %c0_13 = arith.constant 0 : index
      %16 = vector.load %arg2[%c0_12, %c0_13] : memref<1x128xf32, #tpu.memory_space<vmem>>, vector<1x128xf32>
      tpu.vector_store %arg2[%c0_12, %c0_13], %15 {strides = array<i32>} : memref<1x128xf32, #tpu.memory_space<vmem>>, vector<1x128xf32>,
      %cst_14 = arith.constant 0.000000e+00 : f32
      %17 = vector.broadcast %cst_14 : f32 to vector<1x128xf32>
      %c0_15 = arith.constant 0 : index
      %c0_16 = arith.constant 0 : index
      %18 = vector.load %arg3[%c0_15, %c0_16] : memref<1x128xf32, #tpu.memory_space<vmem>>, vector<1x128xf32>
      tpu.vector_store %arg3[%c0_15, %c0_16], %17 {strides = array<i32>} : memref<1x128xf32, #tpu.memory_space<vmem>>, vector<1x128xf32>,
    } else {
    }
    %c0 = arith.constant 0 : index
    %c0_1 = arith.constant 0 : index
    %3 = vector.load %arg1[%c0, %c0_1] : memref<128x128xf32, #tpu.memory_space<vmem>>, vector<128x128xf32>
    %c0_2 = arith.constant 0 : index
    %c0_3 = arith.constant 0 : index
    %4 = vector.load %arg2[%c0_2, %c0_3] : memref<1x128xf32, #tpu.memory_space<vmem>>, vector<1x128xf32>
    %cst = arith.constant dense<0.000000e+00> : vector<128xf32>
    %5 = vector.multi_reduction <add>, %3, %cst [0] : vector<128x128xf32> to vector<128xf32>
    %6 = vector.shape_cast %5 : vector<128xf32> to vector<1x128xf32>
    %7 = arith.addf %4, %6 : vector<1x128xf32>
    %c0_4 = arith.constant 0 : index
    %c0_5 = arith.constant 0 : index
    %8 = vector.load %arg2[%c0_4, %c0_5] : memref<1x128xf32, #tpu.memory_space<vmem>>, vector<1x128xf32>
    tpu.vector_store %arg2[%c0_4, %c0_5], %7 {strides = array<i32>} : memref<1x128xf32, #tpu.memory_space<vmem>>, vector<1x128xf32>,
    %c0_6 = arith.constant 0 : index
    %c0_7 = arith.constant 0 : index
    %9 = vector.load %arg3[%c0_6, %c0_7] : memref<1x128xf32, #tpu.memory_space<vmem>>, vector<1x128xf32>
    %10 = arith.mulf %3, %3 : vector<128x128xf32>
    %cst_8 = arith.constant dense<0.000000e+00> : vector<128xf32>
    %11 = vector.multi_reduction <add>, %10, %cst_8 [0] : vector<128x128xf32> to vector<128xf32>
    %12 = vector.shape_cast %11 : vector<128xf32> to vector<1x128xf32>
    %13 = arith.addf %9, %12 : vector<1x128xf32>
    %c0_9 = arith.constant 0 : index
    %c0_10 = arith.constant 0 : index
    %14 = vector.load %arg3[%c0_9, %c0_10] : memref<1x128xf32, #tpu.memory_space<vmem>>, vector<1x128xf32>
    tpu.vector_store %arg3[%c0_9, %c0_10], %13 {strides = array<i32>} : memref<1x128xf32, #tpu.memory_space<vmem>>, vector<1x128xf32>,
    return
  }
  func.func @transform_0(%arg0: i32) -> (i32, i32) {
    %c0_i32 = arith.constant 0 : i32
    %c0_i32_0 = arith.constant 0 : i32
    return %arg0, %c0_i32 : i32, i32
  }
  func.func @transform_1(%arg0: i32) -> (i32, i32) {
    %c0_i32 = arith.constant 0 : i32
    %c0_i32_0 = arith.constant 0 : i32
    %c0_i32_1 = arith.constant 0 : i32
    return %c0_i32, %c0_i32_0 : i32, i32
  }
  func.func @transform_2(%arg0: i32) -> (i32, i32) {
    %c0_i32 = arith.constant 0 : i32
    %c0_i32_0 = arith.constant 0 : i32
    %c0_i32_1 = arith.constant 0 : i32
    return %c0_i32, %c0_i32_0 : i32, i32
  }
}

module attributes {stable_mosaic.version = 11 : i64} {
  func.func @_bn_apply_kernel(%arg0: i32, %arg1: memref<128x128xf32, #tpu.memory_space<vmem>>, %arg2: memref<1x128xf32, #tpu.memory_space<vmem>>, %arg3: memref<1x128xf32, #tpu.memory_space<vmem>>, %arg4: memref<128x128xf32, #tpu.memory_space<vmem>>) attributes {dimension_semantics = [#tpu.dimension_semantics<parallel>], iteration_bounds = array<i64: 1>, scalar_prefetch = 0 : i64, scratch_operands = 0 : i64, tpu.core_type = #tpu.core_type<tc>, window_params = [{transform_indices = @transform_0, window_bounds = array<i64: 128, 128>}, {pipeline_mode = #tpu.pipeline_mode<synchronous>, transform_indices = @transform_1, window_bounds = array<i64: 1, 128>}, {pipeline_mode = #tpu.pipeline_mode<synchronous>, transform_indices = @transform_2, window_bounds = array<i64: 1, 128>}, {transform_indices = @transform_3, window_bounds = array<i64: 128, 128>}]} {
    %c0 = arith.constant 0 : index
    %c0_0 = arith.constant 0 : index
    %0 = vector.load %arg2[%c0, %c0_0] : memref<1x128xf32, #tpu.memory_space<vmem>>, vector<1x128xf32>
    %cst = arith.constant 7.812500e-03 : f32
    %1 = vector.broadcast %cst : f32 to vector<1x128xf32>
    %2 = arith.mulf %0, %1 : vector<1x128xf32>
    %c0_1 = arith.constant 0 : index
    %c0_2 = arith.constant 0 : index
    %3 = vector.load %arg3[%c0_1, %c0_2] : memref<1x128xf32, #tpu.memory_space<vmem>>, vector<1x128xf32>
    %cst_3 = arith.constant 7.812500e-03 : f32
    %4 = vector.broadcast %cst_3 : f32 to vector<1x128xf32>
    %5 = arith.mulf %3, %4 : vector<1x128xf32>
    %6 = arith.mulf %2, %2 : vector<1x128xf32>
    %7 = arith.subf %5, %6 : vector<1x128xf32>
    %cst_4 = arith.constant 0.000000e+00 : f32
    %8 = vector.broadcast %cst_4 : f32 to vector<1x128xf32>
    %9 = arith.maximumf %7, %8 : vector<1x128xf32>
    %c0_5 = arith.constant 0 : index
    %c0_6 = arith.constant 0 : index
    %10 = vector.load %arg1[%c0_5, %c0_6] : memref<128x128xf32, #tpu.memory_space<vmem>>, vector<128x128xf32>
    %11 = vector.broadcast %2 : vector<1x128xf32> to vector<128x128xf32>
    %12 = arith.subf %10, %11 : vector<128x128xf32>
    %cst_7 = arith.constant 9.99999974E-6 : f32
    %13 = vector.broadcast %cst_7 : f32 to vector<1x128xf32>
    %14 = arith.addf %9, %13 : vector<1x128xf32>
    %15 = math.rsqrt %14 : vector<1x128xf32>
    %16 = vector.broadcast %15 : vector<1x128xf32> to vector<128x128xf32>
    %17 = arith.mulf %12, %16 : vector<128x128xf32>
    %cst_8 = arith.constant 0.000000e+00 : f32
    %18 = vector.broadcast %cst_8 : f32 to vector<128x128xf32>
    %19 = arith.maximumf %17, %18 : vector<128x128xf32>
    %c0_9 = arith.constant 0 : index
    %c0_10 = arith.constant 0 : index
    %20 = vector.load %arg4[%c0_9, %c0_10] : memref<128x128xf32, #tpu.memory_space<vmem>>, vector<128x128xf32>
    tpu.vector_store %arg4[%c0_9, %c0_10], %19 {strides = array<i32>} : memref<128x128xf32, #tpu.memory_space<vmem>>, vector<128x128xf32>,
    return
  }
  func.func @transform_0(%arg0: i32) -> (i32, i32) {
    %c0_i32 = arith.constant 0 : i32
    %c0_i32_0 = arith.constant 0 : i32
    return %arg0, %c0_i32 : i32, i32
  }
  func.func @transform_1(%arg0: i32) -> (i32, i32) {
    %c0_i32 = arith.constant 0 : i32
    %c0_i32_0 = arith.constant 0 : i32
    %c0_i32_1 = arith.constant 0 : i32
    return %c0_i32, %c0_i32_0 : i32, i32
  }
  func.func @transform_2(%arg0: i32) -> (i32, i32) {
    %c0_i32 = arith.constant 0 : i32
    %c0_i32_0 = arith.constant 0 : i32
    %c0_i32_1 = arith.constant 0 : i32
    return %c0_i32, %c0_i32_0 : i32, i32
  }
  func.func @transform_3(%arg0: i32) -> (i32, i32) {
    %c0_i32 = arith.constant 0 : i32
    %c0_i32_0 = arith.constant 0 : i32
    return %arg0, %c0_i32 : i32, i32
  }
}

module attributes {stable_mosaic.version = 11 : i64} {
  func.func @_gemm_kernel(%arg0: i32, %arg1: i32, %arg2: i32, %arg3: memref<128x256xbf16, #tpu.memory_space<vmem>>, %arg4: memref<256x128xbf16, #tpu.memory_space<vmem>>, %arg5: memref<1x128xf32, #tpu.memory_space<vmem>>, %arg6: memref<128x128xf32, #tpu.memory_space<vmem>>, %arg7: memref<128x128xf32, #tpu.memory_space<vmem>>) attributes {dimension_semantics = [#tpu.dimension_semantics<parallel>, #tpu.dimension_semantics<parallel>, #tpu.dimension_semantics<arbitrary>], iteration_bounds = array<i64: 1, 1, 1>, scalar_prefetch = 0 : i64, scratch_operands = 1 : i64, tpu.core_type = #tpu.core_type<tc>, window_params = [{transform_indices = @transform_0, window_bounds = array<i64: 128, 256>}, {transform_indices = @transform_1, window_bounds = array<i64: 256, 128>}, {transform_indices = @transform_2, window_bounds = array<i64: 1, 128>}, {transform_indices = @transform_3, window_bounds = array<i64: 128, 128>}]} {
    %c0_i32 = arith.constant 0 : i32
    %0 = arith.cmpi eq, %arg2, %c0_i32 : i32
    %1 = arith.extui %0 : i1 to i32
    %c0_i32_0 = arith.constant 0 : i32
    %2 = arith.cmpi ne, %1, %c0_i32_0 : i32
    scf.if %2 {
      %cst_10 = arith.constant 0.000000e+00 : f32
      %12 = vector.broadcast %cst_10 : f32 to vector<128x128xf32>
      %c0_11 = arith.constant 0 : index
      %c0_12 = arith.constant 0 : index
      %13 = vector.load %arg7[%c0_11, %c0_12] : memref<128x128xf32, #tpu.memory_space<vmem>>, vector<128x128xf32>
      tpu.vector_store %arg7[%c0_11, %c0_12], %12 {strides = array<i32>} : memref<128x128xf32, #tpu.memory_space<vmem>>, vector<128x128xf32>,
    } else {
    }
    %c0 = arith.constant 0 : index
    %c0_1 = arith.constant 0 : index
    %3 = vector.load %arg7[%c0, %c0_1] : memref<128x128xf32, #tpu.memory_space<vmem>>, vector<128x128xf32>
    %c0_2 = arith.constant 0 : index
    %c0_3 = arith.constant 0 : index
    %4 = vector.load %arg3[%c0_2, %c0_3] : memref<128x256xbf16, #tpu.memory_space<vmem>>, vector<128x256xbf16>
    %c0_4 = arith.constant 0 : index
    %c0_5 = arith.constant 0 : index
    %5 = vector.load %arg4[%c0_4, %c0_5] : memref<256x128xbf16, #tpu.memory_space<vmem>>, vector<256x128xbf16>
    %cst = arith.constant dense<0.000000e+00> : vector<128x128xf32>
    %6 = tpu.matmul %4, %5, %cst {dimension_numbers = #tpu.dot_dimension_numbers<[1], [0], [0], [1], [0, 0, 1, 1], [], []>} : vector<128x256xbf16>, vector<256x128xbf16>, vector<128x128xf32> -> vector<128x128xf32>
    %7 = arith.addf %3, %6 : vector<128x128xf32>
    %c0_6 = arith.constant 0 : index
    %c0_7 = arith.constant 0 : index
    %8 = vector.load %arg7[%c0_6, %c0_7] : memref<128x128xf32, #tpu.memory_space<vmem>>, vector<128x128xf32>
    tpu.vector_store %arg7[%c0_6, %c0_7], %7 {strides = array<i32>} : memref<128x128xf32, #tpu.memory_space<vmem>>, vector<128x128xf32>,
    %c0_i32_8 = arith.constant 0 : i32
    %9 = arith.cmpi eq, %arg2, %c0_i32_8 : i32
    %10 = arith.extui %9 : i1 to i32
    %c0_i32_9 = arith.constant 0 : i32
    %11 = arith.cmpi ne, %10, %c0_i32_9 : i32
    scf.if %11 {
      %c0_10 = arith.constant 0 : index
      %c0_11 = arith.constant 0 : index
      %12 = vector.load %arg7[%c0_10, %c0_11] : memref<128x128xf32, #tpu.memory_space<vmem>>, vector<128x128xf32>
      %c0_12 = arith.constant 0 : index
      %c0_13 = arith.constant 0 : index
      %13 = vector.load %arg5[%c0_12, %c0_13] : memref<1x128xf32, #tpu.memory_space<vmem>>, vector<1x128xf32>
      %14 = vector.broadcast %13 : vector<1x128xf32> to vector<128x128xf32>
      %15 = arith.addf %12, %14 : vector<128x128xf32>
      %16 = arith.negf %15 : vector<128x128xf32>
      %17 = math.exp %16 : vector<128x128xf32>
      %cst_14 = arith.constant 1.000000e+00 : f32
      %18 = vector.broadcast %cst_14 : f32 to vector<128x128xf32>
      %19 = arith.addf %18, %17 : vector<128x128xf32>
      %20 = arith.divf %18, %19 : vector<128x128xf32>
      %c0_15 = arith.constant 0 : index
      %c0_16 = arith.constant 0 : index
      %21 = vector.load %arg6[%c0_15, %c0_16] : memref<128x128xf32, #tpu.memory_space<vmem>>, vector<128x128xf32>
      tpu.vector_store %arg6[%c0_15, %c0_16], %20 {strides = array<i32>} : memref<128x128xf32, #tpu.memory_space<vmem>>, vector<128x128xf32>,
    } else {
    }
    return
  }
  func.func @transform_0(%arg0: i32, %arg1: i32, %arg2: i32) -> (i32, i32) {
    %c0_i32 = arith.constant 0 : i32
    return %arg0, %arg2 : i32, i32
  }
  func.func @transform_1(%arg0: i32, %arg1: i32, %arg2: i32) -> (i32, i32) {
    %c0_i32 = arith.constant 0 : i32
    return %arg2, %arg1 : i32, i32
  }
  func.func @transform_2(%arg0: i32, %arg1: i32, %arg2: i32) -> (i32, i32) {
    %c0_i32 = arith.constant 0 : i32
    %c0_i32_0 = arith.constant 0 : i32
    return %c0_i32, %arg1 : i32, i32
  }
  func.func @transform_3(%arg0: i32, %arg1: i32, %arg2: i32) -> (i32, i32) {
    %c0_i32 = arith.constant 0 : i32
    return %arg0, %arg1 : i32, i32
  }
}

</mosaic_0001>

<bundles_post_ra>
// kernel: unet_generator_forward.23
= control target key start
LH: loop header
LB: loop body
LE: loop exit
PB: predicated region body
PF: predicated region fallthrough
CT: control target
= control target key end

     0   :  { %vm115_vm0 = vcmask 130048   ;;  %s509_s1 = inlined_call_operand.vmem [shape: bf16[16,128], index: 1, kind: input, shape index: {}]   ;;  %s510_s0 = inlined_call_operand.vmem [shape: bf16[128,16], index: 0, kind: input, shape index: {}]   ;;  %s511_s2 = inlined_call_operand.vmem [shape: f32[1,128], index: 2, kind: input, shape index: {}]   ;;  %s512_s3 = inlined_call_operand.vmem [shape: f32[128,128], index: 3, kind: output, shape index: {}]  }
   0x1   :  { %v394_v0 = vld [vmem:[%s509_s1] sm:$0xff]   ;;  %v397_v3 = vld [vmem:[%s510_s0 + $0x8] sm:$0xff]   ;;  %v399_v5 = vld [vmem:[%s510_s0 + $0x10] sm:$0xff]  }
   0x2   :  { %v395_v1 = vld [vmem:[%s510_s0] sm:$0xff]   ;;  %374 = vmatprep.subr.bf16.mxu0 %v394_v0  ;;  %392 = vmatprep.subr.bf16.mxu1 %v394_v0  ;;  %v398_v4 = vld [vmem:[%s510_s0 + $0x28] sm:$0xff]   ;;  %v400_v6 = vld [vmem:[%s510_s0 + $0x30] sm:$0xff]  }
   0x3   :  { %v396_v2 = vld [vmem:[%s510_s0 + $0x20] sm:$0xff]   ;;  %375 = vmatpush3.bf16.msra.mxu0 %v394_v0  ;;  %393 = vmatpush3.bf16.msra.mxu1 %v394_v0  ;;  %v401_v7 = vld [vmem:[%s510_s0 + $0x18] sm:$0xff]  }
   0x4   :  { %376 = vmatprep.mubr.msk.bf16.mxu0 %vm115_vm0, %v395_v1  ;;  %384 = vmatprep.mubr.msk.bf16.mxu1 %vm115_vm0, %v396_v2  ;;  %v402_v8 = vld [vmem:[%s510_s0 + $0x38] sm:$0xff]   ;;  %v364_v9 = vld [vmem:[%s511_s2] ss:$0 sm:$0xff] }
   0x6   :  { %377 = vmatmul.mubr.msk.bf16.vlgmr.msra.gmra.mxu0 %vm115_vm0, %v397_v3  ;;  %385 = vmatmul.mubr.msk.bf16.vlgmr.msra.gmra.mxu1 %vm115_vm0, %v398_v4 }
   0x7   :  { %380 = vmatprep.mubr.msk.bf16.mxu0 %vm115_vm0, %v399_v5  ;;  %388 = vmatprep.mubr.msk.bf16.mxu1 %vm115_vm0, %v400_v6 }
   0xe   :  { %381 = vmatmul.mubr.msk.bf16.gmra.mxu0 %vm115_vm0, %v401_v7  ;;  %389 = vmatmul.mubr.msk.bf16.gmra.mxu1 %vm115_vm0, %v402_v8 }
  0xc6   :  { %v378_v10 = vpop.f32.mrf.mxu0  ;;  %v386_v11 = vpop.f32.mrf.mxu1 }
  0xc7   :  { %v297_v12 = vadd.f32 %v378_v10, %v364_v9  ;;  %v305_v13 = vadd.f32 %v386_v11, %v364_v9 }
  0xc8   :  { %v174_v14 = vpop.f32.mrf.mxu0  ;;  %v206_v15 = vpop.f32.mrf.mxu1 }
  0xc9   :  { %v313_v16 = vmax.f32 %v297_v12, 0.0  ;;  %v321_v17 = vmax.f32 %v305_v13, 0.0  ;;  %v295_v18 = vadd.f32 %v364_v9, %v174_v14  ;;  %v303_v19 = vadd.f32 %v364_v9, %v206_v15 }
  0xca   :  { %v379_v20 = vpop.f32.mrf.mxu0  ;;  %v387_v21 = vpop.f32.mrf.mxu1 }
  0xcb   :  { %329 = vst [vmem:[%s512_s3 + $0x10] sm:$0xff] %v313_v16  ;;  %337 = vst [vmem:[%s512_s3 + $0x50] sm:$0xff] %v321_v17  ;;  %v311_v22 = vmax.f32 %v295_v18, 0.0  ;;  %v319_v23 = vmax.f32 %v303_v19, 0.0  ;;  %v298_v24 = vadd.f32 %v379_v20, %v364_v9  ;;  %v306_v25 = vadd.f32 %v387_v21, %v364_v9 }
  0xcc   :  { %v177_v26 = vpop.f32.mrf.mxu0  ;;  %v209_v27 = vpop.f32.mrf.mxu1 }
  0xcd   :  { %327 = vst [vmem:[%s512_s3] sm:$0xff] %v311_v22  ;;  %335 = vst [vmem:[%s512_s3 + $0x40] sm:$0xff] %v319_v23  ;;  %v314_v28 = vmax.f32 %v298_v24, 0.0  ;;  %v322_v29 = vmax.f32 %v306_v25, 0.0  ;;  %v296_v30 = vadd.f32 %v364_v9, %v177_v26  ;;  %v304_v31 = vadd.f32 %v364_v9, %v209_v27 }
  0xce   :  { %v382_v32 = vpop.f32.mrf.mxu0  ;;  %v390_v33 = vpop.f32.mrf.mxu1 }
  0xcf   :  { %330 = vst [vmem:[%s512_s3 + $0x18] sm:$0xff] %v314_v28  ;;  %338 = vst [vmem:[%s512_s3 + $0x58] sm:$0xff] %v322_v29  ;;  %v312_v34 = vmax.f32 %v296_v30, 0.0  ;;  %v320_v35 = vmax.f32 %v304_v31, 0.0  ;;  %v301_v36 = vadd.f32 %v382_v32, %v364_v9  ;;  %v309_v37 = vadd.f32 %v390_v33, %v364_v9 }
  0xd0   :  { %v190_v38 = vpop.f32.mrf.mxu0  ;;  %v222_v39 = vpop.f32.mrf.mxu1 }
  0xd1   :  { %328 = vst [vmem:[%s512_s3 + $0x8] sm:$0xff] %v312_v34  ;;  %336 = vst [vmem:[%s512_s3 + $0x48] sm:$0xff] %v320_v35  ;;  %v317_v40 = vmax.f32 %v301_v36, 0.0  ;;  %v325_v41 = vmax.f32 %v309_v37, 0.0  ;;  %v299_v42 = vadd.f32 %v364_v9, %v190_v38  ;;  %v307_v43 = vadd.f32 %v364_v9, %v222_v39 }
  0xd2   :  { %v383_v44 = vpop.f32.mrf.mxu0  ;;  %v391_v45 = vpop.f32.mrf.mxu1 }
  0xd3   :  { %333 = vst [vmem:[%s512_s3 + $0x30] sm:$0xff] %v317_v40  ;;  %341 = vst [vmem:[%s512_s3 + $0x70] sm:$0xff] %v325_v41  ;;  %v315_v46 = vmax.f32 %v299_v42, 0.0  ;;  %v323_v47 = vmax.f32 %v307_v43, 0.0  ;;  %v302_v48 = vadd.f32 %v383_v44, %v364_v9  ;;  %v310_v49 = vadd.f32 %v391_v45, %v364_v9 }
  0xd4   :  { %v193_v50 = vpop.f32.mrf.mxu0  ;;  %v225_v51 = vpop.f32.mrf.mxu1 }
  0xd5   :  { %331 = vst [vmem:[%s512_s3 + $0x20] sm:$0xff] %v315_v46  ;;  %339 = vst [vmem:[%s512_s3 + $0x60] sm:$0xff] %v323_v47  ;;  %v318_v52 = vmax.f32 %v302_v48, 0.0  ;;  %v326_v53 = vmax.f32 %v310_v49, 0.0  ;;  %v300_v54 = vadd.f32 %v364_v9, %v193_v50  ;;  %v308_v55 = vadd.f32 %v364_v9, %v225_v51 }
  0xd7   :  { %334 = vst [vmem:[%s512_s3 + $0x38] sm:$0xff] %v318_v52  ;;  %342 = vst [vmem:[%s512_s3 + $0x78] sm:$0xff] %v326_v53  ;;  %v316_v56 = vmax.f32 %v300_v54, 0.0  ;;  %v324_v57 = vmax.f32 %v308_v55, 0.0 }
  0xd9   :  { %332 = vst [vmem:[%s512_s3 + $0x28] sm:$0xff] %v316_v56  ;;  %340 = vst [vmem:[%s512_s3 + $0x68] sm:$0xff] %v324_v57 }

// kernel: unet_generator_forward.24
= control target key start
LH: loop header
LB: loop body
LE: loop exit
PB: predicated region body
PF: predicated region fallthrough
CT: control target
= control target key end

     0   :  { %s1105_s12 = smov 0   ;;  %s1107_s13 = smov 0   ;;  %s1231_s0 = inlined_call_operand.vmem [shape: bf16[32,1024], index: 0, kind: input, shape index: {}]   ;;  %s1232_s1 = inlined_call_operand.vmem [shape: bf16[1024,128], index: 1, kind: input, shape index: {}]   ;;  %s1233_s2 = inlined_call_operand.vmem [shape: f32[1,128], index: 2, kind: input, shape index: {}]   ;;  %s1234_s3 = inlined_call_operand.vmem [shape: f32[32,128], index: 3, kind: output, shape index: {}]  }
   0x1   :  { %s1109_s14 = smov 0   ;;  %s1111_s15 = smov 0  }
   0x2   :  { %s1113_s16 = smov 0  }
   0x3 LB: > { %s25_s17 = sadd.s32 1, %s1078_s15  ;;  %p48_p1 = scmp.ne.s32.totalorder %s1070_s13, %s1066_s12  ;;  %s1082_s16 = sphi %s1113_s16, %s13_s16   ;;  %s1078_s15 = sphi %s1111_s15, %s1238_s15   ;;  %s1074_s14 = sphi %s1109_s14, %s1237_s14   ;;  %s1070_s13 = sphi %s1107_s13, %s1236_s13   ;;  %s1066_s12 = sphi %s1105_s12, %s1235_s12  }
   0x4   : > { %p26_p0 = scmp.ge.s32.totalorder %s25_s17, 2  ;;  %p49_p2 = scmp.eq.s32.totalorder %s1082_s16, 0 }
   0x5   : > { %s41_s19 = sadd.s32 1, %s1070_s13  ;;  %p847_p5 = scmp.ge.s32.totalorder %s1082_s16, 2 }
   0x6   : > { %s1240_s17 = smov (%p26_p0, %s25_s17), 0  ;;  %p50_p3 = por %p49_p2, %p48_p1 }
   0x7   : > { %s37_s18 = ssub.s32 %s1078_s15, %s1240_s17  ;;  %162 = sbr.rel (%p847_p5) target bundleno = 20 (0x14), region = 20 }
   0x8   : > { %p39_p4 = scmp.eq.s32.totalorder %s37_s18, 0 }
   0xa   : > { %s1140_s20 = scalar_select %p39_p4, %s1070_s13, %s41_s19  }
   0xc   : > { %165 = sbr.rel (!%p50_p3) target bundleno = 20 (0x14), region = 24  ;;  %s167_s21 = sand.u32 (%p50_p3), 1, %s1070_s13  }
   0xd   : > { %s902_s22 = sshll.u32 (%p50_p3), %s1078_s15, 4  ;;  %s848_s23 = sshll.u32 (%p50_p3), %s167_s21, 6 }
   0xe   : > { %s175_s26 = scalar_lea.vmem (%p50_p3), %s1231_s0, %s902_s22  ;;  %s169_s27 = scalar_lea.vmem (%p50_p3), [#allocation3], %s848_s23 }
   0xf   : > { %v188_v0 = vld [vmem:[%s175_s26] sm:$0xff] (%p50_p3)  ;;  %v190_v1 = vld [vmem:[%s175_s26 + $0x8] sm:$0xff] (%p50_p3) }
  0x10   : > { %v192_v2 = vld [vmem:[%s175_s26 + $0x20] sm:$0xff] (%p50_p3)  ;;  %189 = vst [vmem:[%s169_s27] sm:$0xff] (%p50_p3), %v188_v0  ;;  %191 = vst [vmem:[%s169_s27 + $0x8] sm:$0xff] (%p50_p3), %v190_v1  ;;  %v194_v3 = vld [vmem:[%s175_s26 + $0x28] sm:$0xff] (%p50_p3) }
  0x11   : > { %193 = vst [vmem:[%s169_s27 + $0x10] sm:$0xff] %v192_v2  ;;  %v196_v4 = vld [vmem:[%s175_s26 + $0x40] sm:$0xff]  ;;  %v198_v5 = vld [vmem:[%s175_s26 + $0x48] sm:$0xff]  ;;  %195 = vst [vmem:[%s169_s27 + $0x18] sm:$0xff] %v194_v3 }
  0x12   : > { %197 = vst [vmem:[%s169_s27 + $0x20] sm:$0xff] %v196_v4  ;;  %199 = vst [vmem:[%s169_s27 + $0x28] sm:$0xff] %v198_v5  ;;  %v200_v6 = vld [vmem:[%s175_s26 + $0x60] sm:$0xff]  ;;  %v202_v7 = vld [vmem:[%s175_s26 + $0x68] sm:$0xff] }
  0x13   : > { %201 = vst [vmem:[%s169_s27 + $0x30] sm:$0xff] %v200_v6  ;;  %203 = vst [vmem:[%s169_s27 + $0x38] sm:$0xff] %v202_v7 }
  0x14 PF: > { %p851_p6 = scmp.ge.s32.totalorder %s1082_s16, 1  ;;  %p220_p7 = scmp.lt.s32.totalorder %s1082_s16, 3 }
  0x16   : > { %p221_p8 = pnand %p851_p6, %p220_p7 }
  0x17   : > { %s227_s28 = sand.u32 (!%p221_p8), 1, %s1066_s12   ;;  %s853_s29 = sshll.u32 (!%p221_p8), %s1074_s14, 6 }
  0x18   : > { %224 = sbr.rel (%p221_p8) target bundleno = 296 (0x128), region = 51  ;;  %s852_s30 = sshll.u32 (!%p221_p8), %s227_s28, 6 }
  0x19   : > { %p267_p9 = scmp.lt.s32.totalorder (!%p221_p8), %s853_s29, 127  ;;  %s1157_s8 = scalar_lea.vmem (!%p221_p8), [#allocation3], %s852_s30 }
  0x1a   : > { %p855_p10 = scmp.ne.s32.totalorder (!%p221_p8), %s1074_s14, 0 }
  0x1d   : > { %s1242_s29 = smov (!%p267_p9, %s853_s29), 127  ;;  %291 = sbr.rel (%p855_p10) target bundleno = 37 (0x25), region = 59 }
  0x1e   : > { %s854_s4 = sshll.u32 %s1242_s29, 2 }
  0x1f   : > { %s1155_s7 = scalar_lea.vmem %s1232_s1, %s854_s4 }
  0x22   : > { %v1084_v8 = vmov 0.0  }
  0x23   : > { %292 = vst [vmem:[#allocation2 + $0x10] sm:$0xff] %v1084_v8  ;;  %293 = vst [vmem:[#allocation2] sm:$0xff] %v1084_v8 }
  0x24   : > { %294 = vst [vmem:[#allocation2 + $0x18] sm:$0xff] %v1084_v8  ;;  %295 = vst [vmem:[#allocation2 + $0x8] sm:$0xff] %v1084_v8 }
  0x25 PF: > { %v1000_v9 = vld [vmem:[%s1155_s7 + $0x78] sm:$0xff]   ;;  %v1004_v13 = vld [vmem:[%s1155_s7 + $0x70] sm:$0xff]   ;;  %v1008_v17 = vld [vmem:[%s1155_s7 + $0x68] sm:$0xff]   ;;  %p896_p11 = scmp.ne.s32.totalorder %s1074_s14, 1 }
  0x26   : > { %v1001_v10 = vld [vmem:[%s1155_s7 + $0xf8] sm:$0xff]   ;;  %903 = vmatprep.subr.bf16.mxu0 %v1000_v9  ;;  %v1005_v14 = vld [vmem:[%s1155_s7 + $0xf0] sm:$0xff]   ;;  %v1009_v18 = vld [vmem:[%s1155_s7 + $0xe8] sm:$0xff]  }
  0x27   : > { %v1002_v11 = vld [vmem:[%s1155_s7 + $0x38] sm:$0xff]   ;;  %931 = vmatprep.subr.bf16.mxu1 %v1001_v10  ;;  %v1006_v15 = vld [vmem:[%s1155_s7 + $0x30] sm:$0xff]   ;;  %v1010_v19 = vld [vmem:[%s1155_s7 + $0x28] sm:$0xff]  }
  0x28   : > { %v1003_v12 = vld [vmem:[%s1155_s7 + $0xb8] sm:$0xff]   ;;  %904 = vmatpush3.bf16.msra.mxu0 %v1002_v11  ;;  %v1007_v16 = vld [vmem:[%s1155_s7 + $0xb0] sm:$0xff]   ;;  %v1011_v20 = vld [vmem:[%s1155_s7 + $0xa8] sm:$0xff]  }
  0x29   : > { %932 = vmatpush3.bf16.msra.mxu1 %v1003_v12  ;;  %905 = vmatprep.subr.bf16.mxu0 %v1004_v13  ;;  %v1012_v21 = vld [vmem:[%s1155_s7 + $0x60] sm:$0xff]   ;;  %v1016_v25 = vld [vmem:[%s1155_s7 + $0x58] sm:$0xff]   ;;  %v1020_v29 = vld [vmem:[%s1155_s7 + $0x50] sm:$0xff]  }
  0x2a   : > { %933 = vmatprep.subr.bf16.mxu1 %v1005_v14  ;;  %v1013_v22 = vld [vmem:[%s1155_s7 + $0xe0] sm:$0xff]   ;;  %v1017_v26 = vld [vmem:[%s1155_s7 + $0xd8] sm:$0xff]   ;;  %v1021_v30 = vld [vmem:[%s1155_s7 + $0xd0] sm:$0xff]  }
  0x2b   : > { %v1014_v23 = vld [vmem:[%s1155_s7 + $0x20] sm:$0xff]   ;;  %v1018_v27 = vld [vmem:[%s1155_s7 + $0x18] sm:$0xff]   ;;  %v1022_v31 = vld [vmem:[%s1155_s7 + $0x10] sm:$0xff]  }
  0x2c   : > { %906 = vmatpush3.bf16.msra.mxu0 %v1006_v15  ;;  %v1015_v24 = vld [vmem:[%s1155_s7 + $0xa0] sm:$0xff]   ;;  %v1019_v28 = vld [vmem:[%s1155_s7 + $0x98] sm:$0xff]   ;;  %v1023_v32 = vld [vmem:[%s1155_s7 + $0x90] sm:$0xff]  }
  0x2d   : > { %934 = vmatpush3.bf16.msra.mxu1 %v1007_v16  ;;  %907 = vmatprep.subr.bf16.mxu0 %v1008_v17  ;;  %v1024_v33 = vld [vmem:[%s1155_s7 + $0x48] sm:$0xff]   ;;  %v1028_v37 = vld [vmem:[%s1155_s7 + $0x40] sm:$0xff]   ;;  %v296_v56 = vld [vmem:[#allocation2 + $0x10] sm:$0xff] }
  0x2e   : > { %935 = vmatprep.subr.bf16.mxu1 %v1009_v18  ;;  %v1025_v34 = vld [vmem:[%s1155_s7 + $0xc8] sm:$0xff]   ;;  %v1029_v38 = vld [vmem:[%s1155_s7 + $0xc0] sm:$0xff]   ;;  %v298_v10 = vld [vmem:[#allocation2 + $0x18] sm:$0xff] }
  0x2f   : > { %v1026_v35 = vld [vmem:[%s1155_s7 + $0x8] sm:$0xff]   ;;  %v1030_v39 = vld [vmem:[%s1155_s7] sm:$0xff]  }
  0x30   : > { %908 = vmatpush3.bf16.msra.mxu0 %v1010_v19  ;;  %v1027_v36 = vld [vmem:[%s1155_s7 + $0x88] sm:$0xff]   ;;  %v1031_v40 = vld [vmem:[%s1155_s7 + $0x80] sm:$0xff]  }
  0x31   : > { %936 = vmatpush3.bf16.msra.mxu1 %v1011_v20  ;;  %909 = vmatprep.subr.bf16.mxu0 %v1012_v21  ;;  %v1032_v41 = vld [vmem:[%s1157_s8] ss:$16 sps:$4 sm:$0xff]   ;;  %v1034_v42 = vld [vmem:[%s1157_s8 + $0x4] ss:$16 sps:$4 sm:$0xff]   ;;  %v1035_v43 = vld [vmem:[%s1157_s8 + $0x8] ss:$16 sps:$4 sm:$0xff]  }
  0x32   : > { %937 = vmatprep.subr.bf16.mxu1 %v1013_v22  ;;  %v1037_v44 = vld [vmem:[%s1157_s8 + $0xc] ss:$16 sps:$4 sm:$0xff]   ;;  %636 = vmatprep.mubr.bf16.mxu0 %v1034_v42  ;;  %v1038_v45 = vld [vmem:[%s1157_s8 + $0x24] ss:$16 sps:$4 sm:$0xff]   ;;  %v1042_v47 = vld [vmem:[%s1157_s8 + $0x20] ss:$16 sps:$4 sm:$0xff]  }
  0x33   : > { %685 = vmatprep.mubr.bf16.mxu1 %v1037_v44  ;;  %v1040_v46 = vld [vmem:[%s1157_s8 + $0x2c] ss:$16 sps:$4 sm:$0xff]   ;;  %v1043_v48 = vld [vmem:[%s1157_s8 + $0x28] ss:$16 sps:$4 sm:$0xff]   ;;  %v297_v1 = vld [vmem:[#allocation2] sm:$0xff] }
  0x34   : > { %910 = vmatpush3.bf16.msra.mxu0 %v1014_v23  ;;  %v299_v18 = vld [vmem:[#allocation2 + $0x8] sm:$0xff] }
  0x35   : > { %938 = vmatpush3.bf16.msra.mxu1 %v1015_v24  ;;  %911 = vmatprep.subr.bf16.mxu0 %v1016_v25 }
  0x36   : > { %939 = vmatprep.subr.bf16.mxu1 %v1017_v26 }
  0x38   : > { %912 = vmatpush3.bf16.msra.mxu0 %v1018_v27 }
  0x39   : > { %940 = vmatpush3.bf16.msra.mxu1 %v1019_v28  ;;  %913 = vmatprep.subr.bf16.mxu0 %v1020_v29 }
  0x3a   : > { %941 = vmatprep.subr.bf16.mxu1 %v1021_v30 }
  0x3c   : > { %914 = vmatpush3.bf16.msra.mxu0 %v1022_v31 }
  0x3d   : > { %942 = vmatpush3.bf16.msra.mxu1 %v1023_v32  ;;  %915 = vmatprep.subr.bf16.mxu0 %v1024_v33 }
  0x3e   : > { %943 = vmatprep.subr.bf16.mxu1 %v1025_v34 }
  0x40   : > { %916 = vmatpush3.bf16.msra.mxu0 %v1026_v35 }
  0x41   : > { %944 = vmatpush3.bf16.msra.mxu1 %v1027_v36  ;;  %917 = vmatprep.subr.bf16.mxu0 %v1028_v37 }
  0x42   : > { %945 = vmatprep.subr.bf16.mxu1 %v1029_v38 }
  0x44   : > { %918 = vmatpush3.bf16.msra.mxu0 %v1030_v39 }
  0x45   : > { %946 = vmatpush3.bf16.msra.mxu1 %v1031_v40 }
  0x47   : > { %637 = vmatmul.mubr.bf16.vlgmr.msra.gmra.mxu0 %v1032_v41 }
  0x48   : > { %686 = vmatmul.mubr.bf16.vlgmr.msra.gmra.mxu1 %v1035_v43  ;;  %644 = vmatprep.mubr.bf16.mxu0 %v1038_v45 }
  0x49   : > { %693 = vmatprep.mubr.bf16.mxu1 %v1040_v46 }
  0x4f   : > { %645 = vmatmul.mubr.bf16.gmra.mxu0 %v1042_v47 }
  0x50   : > { %694 = vmatmul.mubr.bf16.gmra.mxu1 %v1043_v48 }
 0x107   : > { %v919_v49 = vpop.f32.mrf.mxu0 }
 0x108   : > { %v947_v50 = vpop.f32.mrf.mxu1 }
 0x109   : > { %v920_v51 = vpop.f32.mrf.mxu0 }
 0x10a   : > { %v921_v52 = vadd.f32 %v920_v51, %v919_v49  ;;  %v948_v53 = vpop.f32.mrf.mxu1 }
 0x10b   : > { %v949_v54 = vadd.f32 %v948_v53, %v947_v50  ;;  %v922_v55 = vpop.f32.mrf.mxu0 }
 0x10c   : > { %v950_v57 = vpop.f32.mrf.mxu1 }
 0x10d   : > { %v688_v58 = vadd.f32 %v949_v54, %v921_v52  ;;  %v923_v59 = vpop.f32.mrf.mxu0 }
 0x10e   : > { %v924_v60 = vadd.f32 %v923_v59, %v922_v55  ;;  %v951_v61 = vpop.f32.mrf.mxu1 }
 0x10f   : > { %v702_v62 = vadd.f32 %v688_v58, %v296_v56  ;;  %v952_v63 = vadd.f32 %v951_v61, %v950_v57  ;;  %v925_v0 = vpop.f32.mrf.mxu0 }
 0x110   : > { %v953_v2 = vpop.f32.mrf.mxu1 }
 0x111   : > { %706 = vst [vmem:[#allocation2 + $0x10] sm:$0xff] %v702_v62  ;;  %v691_v3 = vadd.f32 %v952_v63, %v924_v60  ;;  %v926_v4 = vpop.f32.mrf.mxu0 }
 0x112   : > { %v927_v5 = vadd.f32 %v926_v4, %v925_v0  ;;  %v954_v6 = vpop.f32.mrf.mxu1 }
 0x113   : > { %v703_v7 = vadd.f32 %v691_v3, %v297_v1  ;;  %v955_v8 = vadd.f32 %v954_v6, %v953_v2  ;;  %v928_v9 = vpop.f32.mrf.mxu0 }
 0x114   : > { %v956_v11 = vpop.f32.mrf.mxu1 }
 0x115   : > { %707 = vst [vmem:[#allocation2] sm:$0xff] %v703_v7  ;;  %v696_v12 = vadd.f32 %v955_v8, %v927_v5  ;;  %v929_v13 = vpop.f32.mrf.mxu0 }
 0x116   : > { %v930_v14 = vadd.f32 %v929_v13, %v928_v9  ;;  %v957_v15 = vpop.f32.mrf.mxu1 }
 0x117   : > { %v704_v16 = vadd.f32 %v696_v12, %v298_v10  ;;  %v958_v17 = vadd.f32 %v957_v15, %v956_v11 }
 0x119   : > { %708 = vst [vmem:[#allocation2 + $0x18] sm:$0xff] %v704_v16  ;;  %v699_v19 = vadd.f32 %v958_v17, %v930_v14  ;;  %713 = sbr.rel (%p896_p11) target bundleno = 296 (0x128), region = 63 }
 0x11b   : > { %v705_v20 = vadd.f32 %v699_v19, %v299_v18 }
 0x11d   : > { %709 = vst [vmem:[#allocation2 + $0x8] sm:$0xff] %v705_v20 }
 0x11e   : > { %v714_v21 = vld [vmem:[#allocation2 + $0x10] sm:$0xff]  ;;  %v897_v22 = vld [vmem:[%s1233_s2] ss:$0 sm:$0xff] }
 0x11f   : > { %v715_v23 = vld [vmem:[#allocation2] sm:$0xff]  ;;  %v725_v24 = vadd.f32 %v897_v22, %v714_v21 }
 0x120   : > { %v726_v25 = vadd.f32 %v897_v22, %v715_v23  ;;  %v716_v26 = vld [vmem:[#allocation2 + $0x18] sm:$0xff] }
 0x121   : > { %v727_v28 = vadd.f32 %v897_v22, %v716_v26  ;;  %729 = vst [vmem:[%s1234_s3] sm:$0xff] %v725_v24 }
 0x122   : > { %730 = vst [vmem:[%s1234_s3 + $0x8] sm:$0xff] %v726_v25 }
 0x123   : > { %731 = vst [vmem:[%s1234_s3 + $0x10] sm:$0xff] %v727_v28 }
 0x124   : > { %v717_v27 = vld [vmem:[#allocation2 + $0x8] sm:$0xff] }
 0x125   : > { %v728_v29 = vadd.f32 %v897_v22, %v717_v27 }
 0x127   : > { %732 = vst [vmem:[%s1234_s3 + $0x18] sm:$0xff] %v728_v29 }
 0x128 PF: > { %s13_s16 = sadd.s32 1, %s1082_s16   ;;  %s1235_s12 = smov %s1070_s13 }
 0x129   : > { %p10_p12 = scmp.ge.s32.totalorder %s13_s16, 4   ;;  %s1236_s13 = smov %s1140_s20 }
 0x12a   : > { %s1237_s14 = smov %s1078_s15  ;;  %s1238_s15 = smov %s1240_s17 }
 0x12b   :  { %12 = sbr.rel (!%p10_p12) target bundleno = 3 (0x3), region = 104 }

// kernel: unet_generator_forward.25
= control target key start
LH: loop header
LB: loop body
LE: loop exit
PB: predicated region body
PF: predicated region fallthrough
CT: control target
= control target key end

     0   :  { %v57_v0 = vmov 0.0   ;;  %s103_s1 = inlined_call_operand.vmem [shape: f32[1,128], index: 1, kind: output, shape index: {0}]   ;;  %s104_s2 = inlined_call_operand.vmem [shape: f32[1,128], index: 2, kind: output, shape index: {1}]   ;;  %s105_s0 = inlined_call_operand.vmem [shape: f32[32,128], index: 0, kind: input, shape index: {}]  }
   0x1   :  { %14 = vst [vmem:[%s103_s1] sm:$0x1] %v57_v0  ;;  %15 = vst [vmem:[%s104_s2] sm:$0x1] %v57_v0  ;;  %v16_v1 = vld [vmem:[%s105_s0] sm:$0xff]  ;;  %v17_v2 = vld [vmem:[%s105_s0 + $0x8] sm:$0xff] }
   0x2   :  { %v18_v3 = vld [vmem:[%s105_s0 + $0x10] sm:$0xff]  ;;  %v19_v4 = vld [vmem:[%s105_s0 + $0x18] sm:$0xff]  ;;  %v21_v5 = vadd.f32 %v17_v2, %v16_v1  ;;  %v33_v6 = vmul.f32 %v16_v1, %v16_v1  ;;  %v34_v7 = vmul.f32 %v17_v2, %v17_v2 }
   0x3   :  { %v35_v8 = vmul.f32 %v18_v3, %v18_v3  ;;  %v36_v10 = vmul.f32 %v19_v4, %v19_v4 }
   0x4   :  { %v22_v9 = vadd.f32 %v21_v5, %v18_v3  ;;  %v37_v11 = vadd.f32 %v34_v7, %v33_v6 }
   0x6   :  { %v23_v12 = vadd.f32 %v22_v9, %v19_v4  ;;  %v38_v13 = vadd.f32 %v37_v11, %v35_v8 }
   0x8   :  { %v24_v14 = vrot.slane %v23_v12, 4  ;;  %v39_v15 = vadd.f32 %v38_v13, %v36_v10  ;;  %v20_v24 = vld [vmem:[%s103_s1] sm:$0x1] }
   0x9   :  { %v32_v27 = vld [vmem:[%s104_s2] sm:$0x1] }
   0xa   :  { %v25_v16 = vadd.f32 %v24_v14, %v23_v12  ;;  %v40_v17 = vrot.slane %v39_v15, 4 }
   0xc   :  { %v26_v18 = vrot.slane %v25_v16, 2  ;;  %v41_v19 = vadd.f32 %v40_v17, %v39_v15 }
   0xe   :  { %v27_v20 = vadd.f32 %v26_v18, %v25_v16  ;;  %v42_v21 = vrot.slane %v41_v19, 2 }
  0x10   :  { %v28_v22 = vrot.slane %v27_v20, 1  ;;  %v43_v23 = vadd.f32 %v42_v21, %v41_v19 }
  0x12   :  { %v29_v25 = vadd.f32 %v28_v22, %v27_v20  ;;  %v44_v26 = vrot.slane %v43_v23, 1 }
  0x14   :  { %v30_v28 = vadd.f32 %v29_v25, %v20_v24  ;;  %v45_v29 = vadd.f32 %v44_v26, %v43_v23 }
  0x16   :  { %31 = vst [vmem:[%s103_s1] sm:$0x1] %v30_v28  ;;  %v46_v30 = vadd.f32 %v45_v29, %v32_v27 }
  0x18   :  { %47 = vst [vmem:[%s104_s2] sm:$0x1] %v46_v30 }

// kernel: unet_generator_forward.26
= control target key start
LH: loop header
LB: loop body
LE: loop exit
PB: predicated region body
PF: predicated region fallthrough
CT: control target
= control target key end

     0   :  { %v26_v7 = vlaneseq  ;;  %s111_s1 = inlined_call_operand.vmem [shape: f32[1,128], index: 1, kind: input, shape index: {}]   ;;  %s112_s2 = inlined_call_operand.vmem [shape: f32[1,128], index: 2, kind: input, shape index: {}]   ;;  %s113_s0 = inlined_call_operand.vmem [shape: f32[32,128], index: 0, kind: input, shape index: {}]   ;;  %s114_s3 = inlined_call_operand.vmem [shape: f32[32,128], index: 3, kind: output, shape index: {}]  }
   0x1   :  { %v14_v0 = vld [vmem:[%s111_s1] sm:$0x1]  ;;  %v22_v13 = vld [vmem:[%s113_s0 + $0x8] sm:$0xff]  ;;  %v23_v14 = vld [vmem:[%s113_s0 + $0x10] sm:$0xff] }
   0x2   :  { %v16_v1 = vld [vmem:[%s112_s2] sm:$0x1]  ;;  %v15_v2 = vmul.f32 0.03125, %v14_v0  ;;  %v27_v9 = vshrl.u32 %v26_v7, 7  ;;  %v24_v15 = vld [vmem:[%s113_s0 + $0x18] sm:$0xff] }
   0x3   :  { %v17_v3 = vmul.f32 0.03125, %v16_v1  ;;  %v21_v11 = vld [vmem:[%s113_s0] sm:$0xff] }
   0x4   :  { %v18_v4 = vmul.f32 %v15_v2, %v15_v2  ;;  %v28_v10 = vsub.s32 0, %v27_v9 }
   0x6   :  { %v19_v5 = vsub.f32 %v17_v3, %v18_v4  ;;  %v29_v12 = vrot.slane %v15_v2, %v28_v10 }
   0x8   :  { %v20_v6 = vmax.f32 %v19_v5, 0.0  ;;  %v31_v16 = vsub.f32 %v21_v11, %v29_v12  ;;  %v32_v17 = vsub.f32 %v22_v13, %v29_v12  ;;  %v33_v18 = vsub.f32 %v23_v14, %v29_v12 }
   0x9   :  { %v34_v19 = vsub.f32 %v24_v15, %v29_v12 }
   0xa   :  { %v35_v8 = vadd.f32 1e-05, %v20_v6 }
   0xc   :  { %59 = vrsqrt.f32 %v35_v8 }
  0x19   :  { %v60_v20 = vpop.eup %59 }
  0x1a   :  { %v41_v21 = vrot.slane %v60_v20, %v28_v10 }
  0x1c   :  { %v43_v22 = vmul.f32 %v41_v21, %v31_v16  ;;  %v44_v23 = vmul.f32 %v41_v21, %v32_v17  ;;  %v45_v24 = vmul.f32 %v41_v21, %v33_v18  ;;  %v46_v25 = vmul.f32 %v41_v21, %v34_v19 }
  0x1e   :  { %v47_v26 = vmax.f32 %v43_v22, 0.0  ;;  %v48_v27 = vmax.f32 %v44_v23, 0.0  ;;  %v49_v28 = vmax.f32 %v45_v24, 0.0  ;;  %v50_v29 = vmax.f32 %v46_v25, 0.0 }
  0x20   :  { %51 = vst [vmem:[%s114_s3] sm:$0xff] %v47_v26  ;;  %52 = vst [vmem:[%s114_s3 + $0x8] sm:$0xff] %v48_v27 }
  0x21   :  { %53 = vst [vmem:[%s114_s3 + $0x10] sm:$0xff] %v49_v28  ;;  %54 = vst [vmem:[%s114_s3 + $0x18] sm:$0xff] %v50_v29 }

// kernel: unet_generator_forward.28
= control target key start
LH: loop header
LB: loop body
LE: loop exit
PB: predicated region body
PF: predicated region fallthrough
CT: control target
= control target key end

     0   :  { %v14_v0 = vlaneseq  ;;  %v104_v6 = vmov 0.0   ;;  %v105_v11 = vmov 1966171168   ;;  %s157_s0 = inlined_call_operand.vmem [shape: f32[8,256], index: 0, kind: input, shape index: {}]   ;;  %s158_s1 = inlined_call_operand.vmem [shape: f32[1,256], index: 1, kind: output, shape index: {0}]   ;;  %s159_s2 = inlined_call_operand.vmem [shape: f32[1,256], index: 2, kind: output, shape index: {1}]  }
   0x1   :  { %v20_v1 = vld [vmem:[%s157_s0] sm:$0xff]  ;;  %v21_v2 = vld [vmem:[%s157_s0 + $0x8] sm:$0xff]  ;;  %v39_v12 = vunpack.c.l.s4 %v105_v11 }
   0x2   :  { %vm127_vm0 = vcmp.lt.s32.totalorder %v14_v0, 256  ;;  %v23_v4 = vrot.slane %v20_v1, 4  ;;  %v29_v5 = vrot.slane %v21_v2, 4  ;;  %v60_v7 = vmul.f32 %v20_v1, %v20_v1 }
   0x3   :  { %18 = vst.msk [vmem:[%s158_s1] sm:$0x3] %vm127_vm0, %v104_v6  ;;  %19 = vst.msk [vmem:[%s159_s2] sm:$0x3] %vm127_vm0, %v104_v6  ;;  %v61_v8 = vmul.f32 %v21_v2, %v21_v2  ;;  %v40_v21 = vunpack.c.0.s8 %v39_v12  ;;  %v42_v22 = vshrl.u32 %v14_v0, 7 }
   0x4   :  { %v24_v9 = vadd.f32 %v23_v4, %v20_v1  ;;  %v30_v10 = vadd.f32 %v29_v5, %v21_v2  ;;  %v62_v13 = vrot.slane %v60_v7, 4 }
   0x5   :  { %v68_v14 = vrot.slane %v61_v8, 4  ;;  %v43_v31 = vsub.s32 %v40_v21, %v42_v22 }
   0x6   :  { %v25_v15 = vrot.slane %v24_v9, 2  ;;  %v31_v16 = vrot.slane %v30_v10, 2  ;;  %v63_v17 = vadd.f32 %v62_v13, %v60_v7 }
   0x7   :  { %v69_v18 = vadd.f32 %v68_v14, %v61_v8 }
   0x8   :  { %v26_v19 = vadd.f32 %v25_v15, %v24_v9  ;;  %v32_v20 = vadd.f32 %v31_v16, %v30_v10  ;;  %v64_v23 = vrot.slane %v63_v17, 2 }
   0x9   :  { %v70_v24 = vrot.slane %v69_v18, 2 }
   0xa   :  { %v27_v25 = vrot.slane %v26_v19, 1  ;;  %v33_v26 = vrot.slane %v32_v20, 1  ;;  %v65_v27 = vadd.f32 %v64_v23, %v63_v17  ;;  %v22_v38 = vld [vmem:[%s158_s1] sm:$0x3] }
   0xb   :  { %v71_v28 = vadd.f32 %v70_v24, %v69_v18  ;;  %v59_v43 = vld [vmem:[%s159_s2] sm:$0x3] }
   0xc   :  { %v28_v29 = vadd.f32 %v27_v25, %v26_v19  ;;  %v34_v30 = vadd.f32 %v33_v26, %v32_v20  ;;  %v66_v32 = vrot.slane %v65_v27, 1 }
   0xd   :  { %v72_v33 = vrot.slane %v71_v28, 1 }
   0xe   :  { %v37_v34 = vcombine.low %v28_v29, %v34_v30  ;;  %v67_v35 = vadd.f32 %v66_v32, %v65_v27 }
   0xf   :  { %v73_v36 = vadd.f32 %v72_v33, %v71_v28 }
  0x10   :  { %v44_v37 = vrot.slane %v37_v34, %v43_v31 }
  0x11   :  { %v76_v39 = vcombine.low %v67_v35, %v73_v36 }
  0x12   :  { %v51_v40 = vrot.slane %v44_v37, %v43_v31 }
  0x13   :  { %v83_v41 = vrot.slane %v76_v39, %v43_v31 }
  0x14   :  { %v53_v42 = vadd.f32 %v51_v40, %v22_v38 }
  0x15   :  { %v90_v44 = vrot.slane %v83_v41, %v43_v31 }
  0x16   :  { %58 = vst.msk [vmem:[%s158_s1] sm:$0x3] %vm127_vm0, %v53_v42 }
  0x17   :  { %v92_v45 = vadd.f32 %v90_v44, %v59_v43 }
  0x19   :  { %93 = vst.msk [vmem:[%s159_s2] sm:$0x3] %vm127_vm0, %v92_v45 }

// kernel: unet_generator_forward.27
= control target key start
LH: loop header
LB: loop body
LE: loop exit
PB: predicated region body
PF: predicated region fallthrough
CT: control target
= control target key end

     0   :  { %s1311_s12 = smov 0   ;;  %s1313_s13 = smov 0   ;;  %s1591_s0 = inlined_call_operand.vmem [shape: bf16[8,2048], index: 0, kind: input, shape index: {}]   ;;  %s1592_s1 = inlined_call_operand.vmem [shape: bf16[2048,256], index: 1, kind: input, shape index: {}]   ;;  %s1593_s2 = inlined_call_operand.vmem [shape: f32[1,256], index: 2, kind: input, shape index: {}]   ;;  %s1594_s3 = inlined_call_operand.vmem [shape: f32[8,256], index: 3, kind: output, shape index: {}]  }
   0x1   :  { %s1315_s14 = smov 0   ;;  %s1317_s15 = smov 0  }
   0x2   :  { %s1319_s16 = smov 0   ;;  %s1321_s17 = smov 0  }
   0x3   :  { %s1323_s18 = smov 0  }
   0x4 LB: > { %s25_s19 = sadd.s32 1, %s1280_s16  ;;  %s28_s20 = sadd.s32 1, %s1284_s17  ;;  %s1288_s18 = sphi %s1323_s18, %s13_s18   ;;  %s1284_s17 = sphi %s1321_s17, %s1600_s17   ;;  %s1280_s16 = sphi %s1319_s16, %s1599_s16   ;;  %s1276_s15 = sphi %s1317_s15, %s1598_s15   ;;  %s1272_s14 = sphi %s1315_s14, %s1597_s14   ;;  %s1268_s13 = sphi %s1313_s13, %s1596_s13   ;;  %s1264_s12 = sphi %s1311_s12, %s1595_s12  }
   0x5   : > { %p26_p0 = scmp.ge.s32.totalorder %s25_s19, 4  ;;  %p76_p1 = scmp.ne.s32.totalorder %s1268_s13, %s1264_s12 }
   0x6   : > { %p77_p2 = scmp.eq.s32.totalorder %s1288_s18, 0  ;;  %s69_s24 = sadd.s32 1, %s1268_s13 }
   0x7   : > { %s1602_s19 = smov (%p26_p0, %s25_s19), 0  ;;  %s1604_s20 = smov (!%p26_p0, %s28_s20), %s1284_s17 }
   0x8   : > { %p78_p3 = por %p77_p2, %p76_p1  ;;  %p30_p4 = scmp.ge.s32.totalorder %s1604_s20, 2 }
   0x9   : > { %s64_s21 = ssub.s32 %s1280_s16, %s1602_s19  ;;  %p1045_p6 = scmp.ge.s32.totalorder %s1288_s18, 8 }
   0xa   : > { %s1606_s20 = smov (%p30_p4, %s1604_s20), 0 }
   0xb   : > { %s65_s22 = ssub.s32 %s1284_s17, %s1606_s20  ;;  %156 = sbr.rel (%p1045_p6) target bundleno = 64 (0x40), region = 16 }
   0xc   : > { %s66_s23 = sor.u32 %s65_s22, %s64_s21 }
   0xd   : > { %p67_p5 = scmp.eq.s32.totalorder %s66_s23, 0 }
   0xf   : > { %s1362_s25 = scalar_select %p67_p5, %s1268_s13, %s69_s24  }
  0x10   : > { %172 = sbr.rel (!%p78_p3) target bundleno = 64 (0x40), region = 24  ;;  %s174_s26 = sand.u32 (%p78_p3), 1, %s1268_s13  }
  0x11   : > { %s1096_s27 = sshll.u32 (%p78_p3), %s1280_s16, 7  ;;  %s1046_s28 = sshll.u32 (%p78_p3), %s174_s26, 8 }
  0x12   : > { %s179_s29 = sadd.s32 (%p78_p3), %s1284_s17, %s1096_s27  ;;  %s1376_s7 = scalar_lea.vmem (%p78_p3), [#allocation3], %s1046_s28 }
  0x13   : > { %s1049_s30 = sshll.u32 (%p78_p3), %s179_s29, 2 }
  0x14   : > { %s1371_s6 = scalar_lea.vmem (%p78_p3), %s1592_s1, %s1049_s30 }
  0x15   : > { %v198_v0 = vld [vmem:[%s1371_s6] sm:$0xf]  ;;  %v200_v1 = vld [vmem:[%s1371_s6 + $0x8] sm:$0xf]  ;;  %v202_v2 = vld [vmem:[%s1371_s6 + $0x10] sm:$0xf] }
  0x16   : > { %199 = vst [vmem:[%s1376_s7] sm:$0xf] %v198_v0  ;;  %201 = vst [vmem:[%s1376_s7 + $0x4] sm:$0xf] %v200_v1  ;;  %v204_v3 = vld [vmem:[%s1371_s6 + $0x18] sm:$0xf] }
  0x17   : > { %203 = vst [vmem:[%s1376_s7 + $0x8] sm:$0xf] %v202_v2  ;;  %v206_v4 = vld [vmem:[%s1371_s6 + $0x20] sm:$0xf]  ;;  %v208_v5 = vld [vmem:[%s1371_s6 + $0x28] sm:$0xf] }
  0x18   : > { %205 = vst [vmem:[%s1376_s7 + $0xc] sm:$0xf] %v204_v3  ;;  %207 = vst [vmem:[%s1376_s7 + $0x10] sm:$0xf] %v206_v4  ;;  %v210_v6 = vld [vmem:[%s1371_s6 + $0x30] sm:$0xf] }
  0x19   : > { %209 = vst [vmem:[%s1376_s7 + $0x14] sm:$0xf] %v208_v5  ;;  %v212_v7 = vld [vmem:[%s1371_s6 + $0x38] sm:$0xf]  ;;  %v214_v8 = vld [vmem:[%s1371_s6 + $0x40] sm:$0xf] }
  0x1a   : > { %211 = vst [vmem:[%s1376_s7 + $0x18] sm:$0xf] %v210_v6  ;;  %213 = vst [vmem:[%s1376_s7 + $0x1c] sm:$0xf] %v212_v7  ;;  %v216_v9 = vld [vmem:[%s1371_s6 + $0x48] sm:$0xf] }
  0x1b   : > { %215 = vst [vmem:[%s1376_s7 + $0x20] sm:$0xf] %v214_v8  ;;  %v218_v10 = vld [vmem:[%s1371_s6 + $0x50] sm:$0xf]  ;;  %v220_v11 = vld [vmem:[%s1371_s6 + $0x58] sm:$0xf] }
  0x1c   : > { %217 = vst [vmem:[%s1376_s7 + $0x24] sm:$0xf] %v216_v9  ;;  %219 = vst [vmem:[%s1376_s7 + $0x28] sm:$0xf] %v218_v10  ;;  %v222_v12 = vld [vmem:[%s1371_s6 + $0x60] sm:$0xf] }
  0x1d   : > { %221 = vst [vmem:[%s1376_s7 + $0x2c] sm:$0xf] %v220_v11  ;;  %v224_v13 = vld [vmem:[%s1371_s6 + $0x68] sm:$0xf]  ;;  %v226_v14 = vld [vmem:[%s1371_s6 + $0x70] sm:$0xf] }
  0x1e   : > { %223 = vst [vmem:[%s1376_s7 + $0x30] sm:$0xf] %v222_v12  ;;  %225 = vst [vmem:[%s1376_s7 + $0x34] sm:$0xf] %v224_v13  ;;  %v228_v15 = vld [vmem:[%s1371_s6 + $0x78] sm:$0xf] }
  0x1f   : > { %227 = vst [vmem:[%s1376_s7 + $0x38] sm:$0xf] %v226_v14  ;;  %v230_v16 = vld [vmem:[%s1371_s6 + $0x80] sm:$0xf]  ;;  %v232_v17 = vld [vmem:[%s1371_s6 + $0x88] sm:$0xf] }
  0x20   : > { %229 = vst [vmem:[%s1376_s7 + $0x3c] sm:$0xf] %v228_v15  ;;  %231 = vst [vmem:[%s1376_s7 + $0x40] sm:$0xf] %v230_v16  ;;  %v234_v18 = vld [vmem:[%s1371_s6 + $0x90] sm:$0xf] }
  0x21   : > { %233 = vst [vmem:[%s1376_s7 + $0x44] sm:$0xf] %v232_v17  ;;  %v236_v19 = vld [vmem:[%s1371_s6 + $0x98] sm:$0xf]  ;;  %v238_v20 = vld [vmem:[%s1371_s6 + $0xa0] sm:$0xf] }
  0x22   : > { %235 = vst [vmem:[%s1376_s7 + $0x48] sm:$0xf] %v234_v18  ;;  %237 = vst [vmem:[%s1376_s7 + $0x4c] sm:$0xf] %v236_v19  ;;  %v240_v21 = vld [vmem:[%s1371_s6 + $0xa8] sm:$0xf] }
  0x23   : > { %239 = vst [vmem:[%s1376_s7 + $0x50] sm:$0xf] %v238_v20  ;;  %v242_v22 = vld [vmem:[%s1371_s6 + $0xb0] sm:$0xf]  ;;  %v244_v23 = vld [vmem:[%s1371_s6 + $0xb8] sm:$0xf] }
  0x24   : > { %241 = vst [vmem:[%s1376_s7 + $0x54] sm:$0xf] %v240_v21  ;;  %243 = vst [vmem:[%s1376_s7 + $0x58] sm:$0xf] %v242_v22  ;;  %v246_v24 = vld [vmem:[%s1371_s6 + $0xc0] sm:$0xf] }
  0x25   : > { %245 = vst [vmem:[%s1376_s7 + $0x5c] sm:$0xf] %v244_v23  ;;  %v248_v25 = vld [vmem:[%s1371_s6 + $0xc8] sm:$0xf]  ;;  %v250_v26 = vld [vmem:[%s1371_s6 + $0xd0] sm:$0xf] }
  0x26   : > { %247 = vst [vmem:[%s1376_s7 + $0x60] sm:$0xf] %v246_v24  ;;  %249 = vst [vmem:[%s1376_s7 + $0x64] sm:$0xf] %v248_v25  ;;  %v252_v27 = vld [vmem:[%s1371_s6 + $0xd8] sm:$0xf] }
  0x27   : > { %251 = vst [vmem:[%s1376_s7 + $0x68] sm:$0xf] %v250_v26  ;;  %v254_v28 = vld [vmem:[%s1371_s6 + $0xe0] sm:$0xf]  ;;  %v256_v29 = vld [vmem:[%s1371_s6 + $0xe8] sm:$0xf] }
  0x28   : > { %253 = vst [vmem:[%s1376_s7 + $0x6c] sm:$0xf] %v252_v27  ;;  %255 = vst [vmem:[%s1376_s7 + $0x70] sm:$0xf] %v254_v28  ;;  %v258_v30 = vld [vmem:[%s1371_s6 + $0xf0] sm:$0xf] }
  0x29   : > { %257 = vst [vmem:[%s1376_s7 + $0x74] sm:$0xf] %v256_v29  ;;  %v260_v31 = vld [vmem:[%s1371_s6 + $0xf8] sm:$0xf]  ;;  %v262_v32 = vld [vmem:[%s1371_s6 + $0x100] sm:$0xf] }
  0x2a   : > { %259 = vst [vmem:[%s1376_s7 + $0x78] sm:$0xf] %v258_v30  ;;  %261 = vst [vmem:[%s1376_s7 + $0x7c] sm:$0xf] %v260_v31  ;;  %v264_v33 = vld [vmem:[%s1371_s6 + $0x108] sm:$0xf] }
  0x2b   : > { %263 = vst [vmem:[%s1376_s7 + $0x80] sm:$0xf] %v262_v32  ;;  %v266_v34 = vld [vmem:[%s1371_s6 + $0x110] sm:$0xf]  ;;  %v268_v35 = vld [vmem:[%s1371_s6 + $0x118] sm:$0xf] }
  0x2c   : > { %265 = vst [vmem:[%s1376_s7 + $0x84] sm:$0xf] %v264_v33  ;;  %267 = vst [vmem:[%s1376_s7 + $0x88] sm:$0xf] %v266_v34  ;;  %v270_v36 = vld [vmem:[%s1371_s6 + $0x120] sm:$0xf] }
  0x2d   : > { %269 = vst [vmem:[%s1376_s7 + $0x8c] sm:$0xf] %v268_v35  ;;  %v272_v37 = vld [vmem:[%s1371_s6 + $0x128] sm:$0xf]  ;;  %v274_v38 = vld [vmem:[%s1371_s6 + $0x130] sm:$0xf] }
  0x2e   : > { %271 = vst [vmem:[%s1376_s7 + $0x90] sm:$0xf] %v270_v36  ;;  %273 = vst [vmem:[%s1376_s7 + $0x94] sm:$0xf] %v272_v37  ;;  %v276_v39 = vld [vmem:[%s1371_s6 + $0x138] sm:$0xf] }
  0x2f   : > { %275 = vst [vmem:[%s1376_s7 + $0x98] sm:$0xf] %v274_v38  ;;  %v278_v40 = vld [vmem:[%s1371_s6 + $0x140] sm:$0xf]  ;;  %v280_v41 = vld [vmem:[%s1371_s6 + $0x148] sm:$0xf] }
  0x30   : > { %277 = vst [vmem:[%s1376_s7 + $0x9c] sm:$0xf] %v276_v39  ;;  %279 = vst [vmem:[%s1376_s7 + $0xa0] sm:$0xf] %v278_v40  ;;  %v282_v42 = vld [vmem:[%s1371_s6 + $0x150] sm:$0xf] }
  0x31   : > { %281 = vst [vmem:[%s1376_s7 + $0xa4] sm:$0xf] %v280_v41  ;;  %v284_v43 = vld [vmem:[%s1371_s6 + $0x158] sm:$0xf]  ;;  %v286_v44 = vld [vmem:[%s1371_s6 + $0x160] sm:$0xf] }
  0x32   : > { %283 = vst [vmem:[%s1376_s7 + $0xa8] sm:$0xf] %v282_v42  ;;  %285 = vst [vmem:[%s1376_s7 + $0xac] sm:$0xf] %v284_v43  ;;  %v288_v45 = vld [vmem:[%s1371_s6 + $0x168] sm:$0xf] }
  0x33   : > { %287 = vst [vmem:[%s1376_s7 + $0xb0] sm:$0xf] %v286_v44  ;;  %v290_v46 = vld [vmem:[%s1371_s6 + $0x170] sm:$0xf]  ;;  %v292_v47 = vld [vmem:[%s1371_s6 + $0x178] sm:$0xf] }
  0x34   : > { %289 = vst [vmem:[%s1376_s7 + $0xb4] sm:$0xf] %v288_v45  ;;  %291 = vst [vmem:[%s1376_s7 + $0xb8] sm:$0xf] %v290_v46  ;;  %v294_v48 = vld [vmem:[%s1371_s6 + $0x180] sm:$0xf] }
  0x35   : > { %293 = vst [vmem:[%s1376_s7 + $0xbc] sm:$0xf] %v292_v47  ;;  %v296_v49 = vld [vmem:[%s1371_s6 + $0x188] sm:$0xf]  ;;  %v298_v50 = vld [vmem:[%s1371_s6 + $0x190] sm:$0xf] }
  0x36   : > { %295 = vst [vmem:[%s1376_s7 + $0xc0] sm:$0xf] %v294_v48  ;;  %297 = vst [vmem:[%s1376_s7 + $0xc4] sm:$0xf] %v296_v49  ;;  %v300_v51 = vld [vmem:[%s1371_s6 + $0x198] sm:$0xf] }
  0x37   : > { %299 = vst [vmem:[%s1376_s7 + $0xc8] sm:$0xf] %v298_v50  ;;  %v302_v52 = vld [vmem:[%s1371_s6 + $0x1a0] sm:$0xf]  ;;  %v304_v53 = vld [vmem:[%s1371_s6 + $0x1a8] sm:$0xf] }
  0x38   : > { %301 = vst [vmem:[%s1376_s7 + $0xcc] sm:$0xf] %v300_v51  ;;  %303 = vst [vmem:[%s1376_s7 + $0xd0] sm:$0xf] %v302_v52  ;;  %v306_v54 = vld [vmem:[%s1371_s6 + $0x1b0] sm:$0xf] }
  0x39   : > { %305 = vst [vmem:[%s1376_s7 + $0xd4] sm:$0xf] %v304_v53  ;;  %v308_v55 = vld [vmem:[%s1371_s6 + $0x1b8] sm:$0xf]  ;;  %v310_v56 = vld [vmem:[%s1371_s6 + $0x1c0] sm:$0xf] }
  0x3a   : > { %307 = vst [vmem:[%s1376_s7 + $0xd8] sm:$0xf] %v306_v54  ;;  %309 = vst [vmem:[%s1376_s7 + $0xdc] sm:$0xf] %v308_v55  ;;  %v312_v57 = vld [vmem:[%s1371_s6 + $0x1c8] sm:$0xf] }
  0x3b   : > { %311 = vst [vmem:[%s1376_s7 + $0xe0] sm:$0xf] %v310_v56  ;;  %v314_v58 = vld [vmem:[%s1371_s6 + $0x1d0] sm:$0xf]  ;;  %v316_v59 = vld [vmem:[%s1371_s6 + $0x1d8] sm:$0xf] }
  0x3c   : > { %313 = vst [vmem:[%s1376_s7 + $0xe4] sm:$0xf] %v312_v57  ;;  %315 = vst [vmem:[%s1376_s7 + $0xe8] sm:$0xf] %v314_v58  ;;  %v318_v60 = vld [vmem:[%s1371_s6 + $0x1e0] sm:$0xf] }
  0x3d   : > { %317 = vst [vmem:[%s1376_s7 + $0xec] sm:$0xf] %v316_v59  ;;  %v320_v61 = vld [vmem:[%s1371_s6 + $0x1e8] sm:$0xf]  ;;  %v322_v62 = vld [vmem:[%s1371_s6 + $0x1f0] sm:$0xf] }
  0x3e   : > { %319 = vst [vmem:[%s1376_s7 + $0xf0] sm:$0xf] %v318_v60  ;;  %321 = vst [vmem:[%s1376_s7 + $0xf4] sm:$0xf] %v320_v61  ;;  %v324_v63 = vld [vmem:[%s1371_s6 + $0x1f8] sm:$0xf] }
  0x3f   : > { %323 = vst [vmem:[%s1376_s7 + $0xf8] sm:$0xf] %v322_v62  ;;  %325 = vst [vmem:[%s1376_s7 + $0xfc] sm:$0xf] %v324_v63 }
  0x40 PF: > { %p1050_p7 = scmp.ge.s32.totalorder %s1288_s18, 1  ;;  %p482_p8 = scmp.lt.s32.totalorder %s1288_s18, 9 }
  0x42   : > { %p483_p9 = pnand %p1050_p7, %p482_p8 }
  0x43   : > { %s489_s8 = sand.u32 (!%p483_p9), 1, %s1264_s12   ;;  %s1052_s9 = sshll.u32 (!%p483_p9), %s1272_s14, 2 }
  0x44   : > { %486 = sbr.rel (%p483_p9) target bundleno = 330 (0x14a), region = 69  ;;  %s1051_s10 = sshll.u32 (!%p483_p9), %s489_s8, 8 }
  0x45   : > { %p530_p10 = scmp.lt.s32.totalorder (!%p483_p9), %s1052_s9, 15  ;;  %p538_p11 = scmp.lt.s32.totalorder (!%p483_p9), %s1276_s15, 1 }
  0x46   : > { %s1526_s4 = scalar_lea.vmem (!%p483_p9), [#allocation3], %s1051_s10  ;;  %p1055_p12 = scmp.ne.s32.totalorder (!%p483_p9), %s1272_s14, 0 }
  0x49   : > { %s1608_s9 = smov (!%p530_p10, %s1052_s9), 15  ;;  %s1610_s15 = smov (!%p538_p11, %s1276_s15), 1 }
  0x4a   : > { %s1053_s11 = sshll.u32 %s1608_s9, 2  ;;  %s540_s27 = scalar_lea.vmem %s1593_s2, %s1610_s15 }
  0x4b   : > { %s1514_s23 = scalar_lea.vmem %s1591_s0, %s1053_s11  ;;  %s1054_s12 = sshll.u32 %s1610_s15, 3 }
  0x4c   : > { %s1524_s30 = scalar_lea.vmem %s1594_s3, %s1054_s12  ;;  %553 = sbr.rel (%p1055_p12) target bundleno = 83 (0x53), region = 77 }
  0x51   : > { %v1290_v0 = vmov 0.0  }
  0x52   : > { %554 = vst [vmem:[#allocation2] sm:$0xff] %v1290_v0 }
  0x53 PF: > { %v1198_v1 = vld [vmem:[%s1526_s4 + $0x78] sm:$0xff]   ;;  %v1202_v5 = vld [vmem:[%s1526_s4 + $0x70] sm:$0xff]   ;;  %v1206_v9 = vld [vmem:[%s1526_s4 + $0x68] sm:$0xff]   ;;  %p1092_p13 = scmp.ne.s32.totalorder %s1272_s14, 3 }
  0x54   : > { %v1199_v2 = vld [vmem:[%s1526_s4 + $0xf8] sm:$0xff]   ;;  %1097 = vmatprep.subr.bf16.mxu0 %v1198_v1  ;;  %v1203_v6 = vld [vmem:[%s1526_s4 + $0xf0] sm:$0xff]   ;;  %v1207_v10 = vld [vmem:[%s1526_s4 + $0xe8] sm:$0xff]  }
  0x55   : > { %v1200_v3 = vld [vmem:[%s1526_s4 + $0x38] sm:$0xff]   ;;  %1119 = vmatprep.subr.bf16.mxu1 %v1199_v2  ;;  %v1204_v7 = vld [vmem:[%s1526_s4 + $0x30] sm:$0xff]   ;;  %v1208_v11 = vld [vmem:[%s1526_s4 + $0x28] sm:$0xff]  }
  0x56   : > { %v1201_v4 = vld [vmem:[%s1526_s4 + $0xb8] sm:$0xff]   ;;  %1098 = vmatpush3.bf16.msra.mxu0 %v1200_v3  ;;  %v1205_v8 = vld [vmem:[%s1526_s4 + $0xb0] sm:$0xff]   ;;  %v1209_v12 = vld [vmem:[%s1526_s4 + $0xa8] sm:$0xff]  }
  0x57   : > { %1120 = vmatpush3.bf16.msra.mxu1 %v1201_v4  ;;  %1099 = vmatprep.subr.bf16.mxu0 %v1202_v5  ;;  %v1210_v13 = vld [vmem:[%s1526_s4 + $0x60] sm:$0xff]   ;;  %v1214_v17 = vld [vmem:[%s1526_s4 + $0x58] sm:$0xff]   ;;  %v1218_v21 = vld [vmem:[%s1526_s4 + $0x50] sm:$0xff]  }
  0x58   : > { %1121 = vmatprep.subr.bf16.mxu1 %v1203_v6  ;;  %v1211_v14 = vld [vmem:[%s1526_s4 + $0xe0] sm:$0xff]   ;;  %v1215_v18 = vld [vmem:[%s1526_s4 + $0xd8] sm:$0xff]   ;;  %v1219_v22 = vld [vmem:[%s1526_s4 + $0xd0] sm:$0xff]  }
  0x59   : > { %v1212_v15 = vld [vmem:[%s1526_s4 + $0x20] sm:$0xff]   ;;  %v1216_v19 = vld [vmem:[%s1526_s4 + $0x18] sm:$0xff]   ;;  %v1220_v23 = vld [vmem:[%s1526_s4 + $0x10] sm:$0xff]  }
  0x5a   : > { %1100 = vmatpush3.bf16.msra.mxu0 %v1204_v7  ;;  %v1213_v16 = vld [vmem:[%s1526_s4 + $0xa0] sm:$0xff]   ;;  %v1217_v20 = vld [vmem:[%s1526_s4 + $0x98] sm:$0xff]   ;;  %v1221_v24 = vld [vmem:[%s1526_s4 + $0x90] sm:$0xff]  }
  0x5b   : > { %1122 = vmatpush3.bf16.msra.mxu1 %v1205_v8  ;;  %1101 = vmatprep.subr.bf16.mxu0 %v1206_v9  ;;  %v1222_v25 = vld [vmem:[%s1526_s4 + $0x48] sm:$0xff]   ;;  %v1226_v29 = vld [vmem:[%s1526_s4 + $0x40] sm:$0xff]   ;;  %v556_v33 = vld [vmem:[%s1514_s23] sm:$0xff] }
  0x5c   : > { %1123 = vmatprep.subr.bf16.mxu1 %v1207_v10  ;;  %v1223_v26 = vld [vmem:[%s1526_s4 + $0xc8] sm:$0xff]   ;;  %v1227_v30 = vld [vmem:[%s1526_s4 + $0xc0] sm:$0xff]   ;;  %v1056_v35 = vcombine.low %v556_v33, %v556_v33  ;;  %v1057_v36 = vcombine.high %v556_v33, %v556_v33  ;;  %v555_v45 = vld [vmem:[#allocation2] sm:$0xff] }
  0x5d   : > { %v1224_v27 = vld [vmem:[%s1526_s4 + $0x8] sm:$0xff]   ;;  %v1228_v31 = vld [vmem:[%s1526_s4] sm:$0xff]  }
  0x5e   : > { %1102 = vmatpush3.bf16.msra.mxu0 %v1208_v11  ;;  %v1225_v28 = vld [vmem:[%s1526_s4 + $0x88] sm:$0xff]   ;;  %v1229_v32 = vld [vmem:[%s1526_s4 + $0x80] sm:$0xff]   ;;  %860 = vmatprep.mubr.bf16.mxu0 %v1057_v36 }
  0x5f   : > { %1124 = vmatpush3.bf16.msra.mxu1 %v1209_v12  ;;  %1103 = vmatprep.subr.bf16.mxu0 %v1210_v13  ;;  %v557_v34 = vld [vmem:[%s1514_s23 + $0x8] sm:$0xff] }
  0x60   : > { %1125 = vmatprep.subr.bf16.mxu1 %v1211_v14  ;;  %v1058_v37 = vcombine.low %v557_v34, %v557_v34  ;;  %v1059_v38 = vcombine.high %v557_v34, %v557_v34 }
  0x62   : > { %1104 = vmatpush3.bf16.msra.mxu0 %v1212_v15  ;;  %900 = vmatprep.mubr.bf16.mxu1 %v1059_v38 }
  0x63   : > { %1126 = vmatpush3.bf16.msra.mxu1 %v1213_v16  ;;  %1105 = vmatprep.subr.bf16.mxu0 %v1214_v17 }
  0x64   : > { %1127 = vmatprep.subr.bf16.mxu1 %v1215_v18 }
  0x66   : > { %1106 = vmatpush3.bf16.msra.mxu0 %v1216_v19 }
  0x67   : > { %1128 = vmatpush3.bf16.msra.mxu1 %v1217_v20  ;;  %1107 = vmatprep.subr.bf16.mxu0 %v1218_v21 }
  0x68   : > { %1129 = vmatprep.subr.bf16.mxu1 %v1219_v22 }
  0x6a   : > { %1108 = vmatpush3.bf16.msra.mxu0 %v1220_v23 }
  0x6b   : > { %1130 = vmatpush3.bf16.msra.mxu1 %v1221_v24  ;;  %1109 = vmatprep.subr.bf16.mxu0 %v1222_v25 }
  0x6c   : > { %1131 = vmatprep.subr.bf16.mxu1 %v1223_v26 }
  0x6e   : > { %1110 = vmatpush3.bf16.msra.mxu0 %v1224_v27 }
  0x6f   : > { %1132 = vmatpush3.bf16.msra.mxu1 %v1225_v28  ;;  %1111 = vmatprep.subr.bf16.mxu0 %v1226_v29 }
  0x70   : > { %1133 = vmatprep.subr.bf16.mxu1 %v1227_v30 }
  0x72   : > { %1112 = vmatpush3.bf16.msra.mxu0 %v1228_v31 }
  0x73   : > { %1134 = vmatpush3.bf16.msra.mxu1 %v1229_v32 }
  0x75   : > { %861 = vmatmul.mubr.bf16.vlgmr.msra.gmra.mxu0 %v1056_v35 }
  0x76   : > { %901 = vmatmul.mubr.bf16.vlgmr.msra.gmra.mxu1 %v1058_v37 }
 0x135   : > { %v1113_v39 = vpop.f32.mrf.mxu0 }
 0x136   : > { %v1135_v40 = vpop.f32.mrf.mxu1 }
 0x137   : > { %v1114_v41 = vpop.f32.mrf.mxu0 }
 0x138   : > { %v1136_v42 = vpop.f32.mrf.mxu1  ;;  %v1115_v43 = vadd.f32 %v1114_v41, %v1113_v39 }
 0x139   : > { %v1137_v44 = vadd.f32 %v1136_v42, %v1135_v40  ;;  %v1116_v46 = vpop.f32.mrf.mxu0 }
 0x13a   : > { %v1138_v47 = vpop.f32.mrf.mxu1 }
 0x13b   : > { %v903_v48 = vadd.f32 %v1137_v44, %v1115_v43  ;;  %v1117_v49 = vpop.f32.mrf.mxu0  ;;  %913 = sbr.rel (%p1092_p13) target bundleno = 330 (0x14a), region = 81 }
 0x13c   : > { %v1139_v50 = vpop.f32.mrf.mxu1 }
 0x13d   : > { %v908_v51 = vadd.f32 %v903_v48, %v555_v45 }
 0x13f   : > { %909 = vst [vmem:[#allocation2] sm:$0xff] %v908_v51 }
 0x140   : > { %v1093_v53 = vld [vmem:[%s540_s27] ss:$0 sm:$0xff] }
 0x146   : > { %v914_v52 = vld [vmem:[#allocation2] sm:$0xff] }
 0x147   : > { %v922_v54 = vadd.f32 %v1093_v53, %v914_v52 }
 0x149   : > { %923 = vst [vmem:[%s1524_s30] sm:$0xff] %v922_v54 }
 0x14a PF: > { %s13_s18 = sadd.s32 1, %s1288_s18   ;;  %s1595_s12 = smov %s1268_s13 }
 0x14b   : > { %p10_p0 = scmp.ge.s32.totalorder %s13_s18, 10   ;;  %s1596_s13 = smov %s1362_s25 }
 0x14c   : > { %s1597_s14 = smov %s1280_s16  ;;  %s1598_s15 = smov %s1284_s17 }
 0x14d   : > { %s1599_s16 = smov %s1602_s19  ;;  %s1600_s17 = smov %s1606_s20 }
 0x14e   :  { %12 = sbr.rel (!%p10_p0) target bundleno = 4 (0x4), region = 122 }

// kernel: unet_generator_forward.29
= control target key start
LH: loop header
LB: loop body
LE: loop exit
PB: predicated region body
PF: predicated region fallthrough
CT: control target
= control target key end

     0   :  { %v24_v7 = vlaneseq  ;;  %s99_s1 = inlined_call_operand.vmem [shape: f32[1,256], index: 1, kind: input, shape index: {}]   ;;  %s100_s2 = inlined_call_operand.vmem [shape: f32[1,256], index: 2, kind: input, shape index: {}]   ;;  %s101_s0 = inlined_call_operand.vmem [shape: f32[8,256], index: 0, kind: input, shape index: {}]   ;;  %s102_s3 = inlined_call_operand.vmem [shape: f32[8,256], index: 3, kind: output, shape index: {}]  }
   0x1   :  { %v14_v0 = vld [vmem:[%s99_s1] sm:$0x3]  ;;  %v22_v15 = vld [vmem:[%s101_s0 + $0x8] sm:$0xff] }
   0x2   :  { %v16_v1 = vld [vmem:[%s100_s2] sm:$0x3]  ;;  %v15_v2 = vmul.f32 0.125, %v14_v0  ;;  %v25_v9 = vshrl.u32 %v24_v7, 7 }
   0x3   :  { %v17_v3 = vmul.f32 0.125, %v16_v1  ;;  %v21_v14 = vld [vmem:[%s101_s0] sm:$0xff] }
   0x4   :  { %v18_v4 = vmul.f32 %v15_v2, %v15_v2  ;;  %v26_v10 = vsub.s32 0, %v25_v9  ;;  %v30_v11 = vsub.s32 1, %v25_v9 }
   0x6   :  { %v19_v5 = vsub.f32 %v17_v3, %v18_v4  ;;  %v27_v12 = vrot.slane %v15_v2, %v26_v10  ;;  %v31_v13 = vrot.slane %v15_v2, %v30_v11 }
   0x8   :  { %v20_v6 = vmax.f32 %v19_v5, 0.0  ;;  %v34_v16 = vsub.f32 %v21_v14, %v27_v12  ;;  %v35_v17 = vsub.f32 %v22_v15, %v31_v13 }
   0xa   :  { %v36_v8 = vadd.f32 1e-05, %v20_v6 }
   0xc   :  { %59 = vrsqrt.f32 %v36_v8 }
  0x19   :  { %v60_v18 = vpop.eup %59 }
  0x1a   :  { %v42_v19 = vrot.slane %v60_v18, %v26_v10  ;;  %v46_v20 = vrot.slane %v60_v18, %v30_v11 }
  0x1c   :  { %v49_v21 = vmul.f32 %v42_v19, %v34_v16  ;;  %v50_v22 = vmul.f32 %v46_v20, %v35_v17 }
  0x1e   :  { %v51_v23 = vmax.f32 %v49_v21, 0.0  ;;  %v52_v24 = vmax.f32 %v50_v22, 0.0 }
  0x20   :  { %53 = vst [vmem:[%s102_s3] sm:$0xff] %v51_v23  ;;  %54 = vst [vmem:[%s102_s3 + $0x8] sm:$0xff] %v52_v24 }

// kernel: unet_generator_forward.30
= control target key start
LH: loop header
LB: loop body
LE: loop exit
PB: predicated region body
PF: predicated region fallthrough
CT: control target
= control target key end

     0   :  { %s940_s12 = smov 0   ;;  %s942_s13 = smov 0   ;;  %s1023_s0 = inlined_call_operand.vmem [shape: bf16[8,1024], index: 0, kind: input, shape index: {}]   ;;  %s1024_s1 = inlined_call_operand.vmem [shape: bf16[1024,128], index: 1, kind: input, shape index: {}]   ;;  %s1025_s2 = inlined_call_operand.vmem [shape: f32[1,128], index: 2, kind: input, shape index: {}]   ;;  %s1026_s3 = inlined_call_operand.vmem [shape: f32[8,128], index: 3, kind: output, shape index: {}]  }
   0x1   :  { %s944_s14 = smov 0  }
   0x2 LB: > { %s25_s15 = sadd.s32 1, %s913_s13  ;;  %p743_p0 = scmp.ge.s32.totalorder %s917_s14, 1  ;;  %s917_s14 = sphi %s944_s14, %s13_s14   ;;  %s913_s13 = sphi %s942_s13, %s1028_s13   ;;  %s909_s12 = sphi %s940_s12, %s1027_s12  }
   0x3   : > { %p26_p1 = scmp.ge.s32.totalorder %s25_s15, 2  ;;  %p189_p2 = scmp.lt.s32.totalorder %s917_s14, 3 }
   0x5   : > { %s1030_s15 = smov (%p26_p1, %s25_s15), 0  ;;  %p190_p3 = pnand %p743_p0, %p189_p2 }
   0x6   : > { %s744_s16 = sshll.u32 (!%p190_p3), %s909_s12, 2  ;;  %s746_s17 = sshll.u32 (!%p190_p3), %s909_s12, 6 }
   0x7   : > { %193 = sbr.rel (%p190_p3) target bundleno = 269 (0x10d), region = 32  ;;  %p233_p4 = scmp.lt.s32.totalorder (!%p190_p3), %s744_s16, 7 }
   0x8   : > { %p241_p5 = scmp.lt.s32.totalorder (!%p190_p3), %s746_s17, 127  ;;  %p748_p6 = scmp.ne.s32.totalorder (!%p190_p3), %s909_s12, 0 }
   0xc   : > { %s1032_s16 = smov (!%p233_p4, %s744_s16), 7  ;;  %s1034_s17 = smov (!%p241_p5, %s746_s17), 127 }
   0xd   : > { %s745_s18 = sshll.u32 %s1032_s16, 2  ;;  %s747_s22 = sshll.u32 %s1034_s17, 2 }
   0xe   : > { %s965_s21 = scalar_lea.vmem %s1023_s0, %s745_s18  ;;  %s970_s25 = scalar_lea.vmem %s1024_s1, %s747_s22 }
   0xf   : > { %263 = sbr.rel (%p748_p6) target bundleno = 22 (0x16), region = 36 }
  0x14   : > { %v919_v0 = vmov 0.0  }
  0x15   : > { %264 = vst [vmem:[#allocation2] sm:$0xff] %v919_v0 }
  0x16 PF: > { %v859_v1 = vld [vmem:[%s970_s25 + $0x78] sm:$0xff]   ;;  %v863_v5 = vld [vmem:[%s970_s25 + $0x70] sm:$0xff]   ;;  %v867_v9 = vld [vmem:[%s970_s25 + $0x68] sm:$0xff]   ;;  %p785_p7 = scmp.ne.s32.totalorder %s909_s12, 1 }
  0x17   : > { %v860_v2 = vld [vmem:[%s970_s25 + $0xf8] sm:$0xff]   ;;  %790 = vmatprep.subr.bf16.mxu0 %v859_v1  ;;  %v864_v6 = vld [vmem:[%s970_s25 + $0xf0] sm:$0xff]   ;;  %v868_v10 = vld [vmem:[%s970_s25 + $0xe8] sm:$0xff]  }
  0x18   : > { %v861_v3 = vld [vmem:[%s970_s25 + $0x38] sm:$0xff]   ;;  %812 = vmatprep.subr.bf16.mxu1 %v860_v2  ;;  %v865_v7 = vld [vmem:[%s970_s25 + $0x30] sm:$0xff]   ;;  %v869_v11 = vld [vmem:[%s970_s25 + $0x28] sm:$0xff]  }
  0x19   : > { %v862_v4 = vld [vmem:[%s970_s25 + $0xb8] sm:$0xff]   ;;  %791 = vmatpush3.bf16.msra.mxu0 %v861_v3  ;;  %v866_v8 = vld [vmem:[%s970_s25 + $0xb0] sm:$0xff]   ;;  %v870_v12 = vld [vmem:[%s970_s25 + $0xa8] sm:$0xff]  }
  0x1a   : > { %813 = vmatpush3.bf16.msra.mxu1 %v862_v4  ;;  %792 = vmatprep.subr.bf16.mxu0 %v863_v5  ;;  %v871_v13 = vld [vmem:[%s970_s25 + $0x60] sm:$0xff]   ;;  %v875_v17 = vld [vmem:[%s970_s25 + $0x58] sm:$0xff]   ;;  %v879_v21 = vld [vmem:[%s970_s25 + $0x50] sm:$0xff]  }
  0x1b   : > { %814 = vmatprep.subr.bf16.mxu1 %v864_v6  ;;  %v872_v14 = vld [vmem:[%s970_s25 + $0xe0] sm:$0xff]   ;;  %v876_v18 = vld [vmem:[%s970_s25 + $0xd8] sm:$0xff]   ;;  %v880_v22 = vld [vmem:[%s970_s25 + $0xd0] sm:$0xff]  }
  0x1c   : > { %v873_v15 = vld [vmem:[%s970_s25 + $0x20] sm:$0xff]   ;;  %v877_v19 = vld [vmem:[%s970_s25 + $0x18] sm:$0xff]   ;;  %v881_v23 = vld [vmem:[%s970_s25 + $0x10] sm:$0xff]  }
  0x1d   : > { %793 = vmatpush3.bf16.msra.mxu0 %v865_v7  ;;  %v874_v16 = vld [vmem:[%s970_s25 + $0xa0] sm:$0xff]   ;;  %v878_v20 = vld [vmem:[%s970_s25 + $0x98] sm:$0xff]   ;;  %v882_v24 = vld [vmem:[%s970_s25 + $0x90] sm:$0xff]  }
  0x1e   : > { %815 = vmatpush3.bf16.msra.mxu1 %v866_v8  ;;  %794 = vmatprep.subr.bf16.mxu0 %v867_v9  ;;  %v883_v25 = vld [vmem:[%s970_s25 + $0x48] sm:$0xff]   ;;  %v887_v29 = vld [vmem:[%s970_s25 + $0x40] sm:$0xff]  }
  0x1f   : > { %816 = vmatprep.subr.bf16.mxu1 %v868_v10  ;;  %v884_v26 = vld [vmem:[%s970_s25 + $0xc8] sm:$0xff]   ;;  %v888_v30 = vld [vmem:[%s970_s25 + $0xc0] sm:$0xff]  }
  0x20   : > { %v885_v27 = vld [vmem:[%s970_s25 + $0x8] sm:$0xff]   ;;  %v889_v31 = vld [vmem:[%s970_s25] sm:$0xff]  }
  0x21   : > { %795 = vmatpush3.bf16.msra.mxu0 %v869_v11  ;;  %v886_v28 = vld [vmem:[%s970_s25 + $0x88] sm:$0xff]   ;;  %v890_v32 = vld [vmem:[%s970_s25 + $0x80] sm:$0xff]  }
  0x22   : > { %817 = vmatpush3.bf16.msra.mxu1 %v870_v12  ;;  %796 = vmatprep.subr.bf16.mxu0 %v871_v13  ;;  %v266_v33 = vld [vmem:[%s965_s21] sm:$0xff]  ;;  %v267_v34 = vld [vmem:[%s965_s21 + $0x8] sm:$0xff] }
  0x23   : > { %818 = vmatprep.subr.bf16.mxu1 %v872_v14  ;;  %v749_v35 = vcombine.low %v266_v33, %v266_v33  ;;  %v750_v36 = vcombine.high %v266_v33, %v266_v33  ;;  %v751_v37 = vcombine.low %v267_v34, %v267_v34  ;;  %v752_v38 = vcombine.high %v267_v34, %v267_v34  ;;  %v265_v45 = vld [vmem:[#allocation2] sm:$0xff] }
  0x25   : > { %797 = vmatpush3.bf16.msra.mxu0 %v873_v15  ;;  %570 = vmatprep.mubr.bf16.mxu0 %v750_v36 }
  0x26   : > { %819 = vmatpush3.bf16.msra.mxu1 %v874_v16  ;;  %798 = vmatprep.subr.bf16.mxu0 %v875_v17 }
  0x27   : > { %820 = vmatprep.subr.bf16.mxu1 %v876_v18  ;;  %610 = vmatprep.mubr.bf16.mxu1 %v752_v38 }
  0x29   : > { %799 = vmatpush3.bf16.msra.mxu0 %v877_v19 }
  0x2a   : > { %821 = vmatpush3.bf16.msra.mxu1 %v878_v20  ;;  %800 = vmatprep.subr.bf16.mxu0 %v879_v21 }
  0x2b   : > { %822 = vmatprep.subr.bf16.mxu1 %v880_v22 }
  0x2d   : > { %801 = vmatpush3.bf16.msra.mxu0 %v881_v23 }
  0x2e   : > { %823 = vmatpush3.bf16.msra.mxu1 %v882_v24  ;;  %802 = vmatprep.subr.bf16.mxu0 %v883_v25 }
  0x2f   : > { %824 = vmatprep.subr.bf16.mxu1 %v884_v26 }
  0x31   : > { %803 = vmatpush3.bf16.msra.mxu0 %v885_v27 }
  0x32   : > { %825 = vmatpush3.bf16.msra.mxu1 %v886_v28  ;;  %804 = vmatprep.subr.bf16.mxu0 %v887_v29 }
  0x33   : > { %826 = vmatprep.subr.bf16.mxu1 %v888_v30 }
  0x35   : > { %805 = vmatpush3.bf16.msra.mxu0 %v889_v31 }
  0x36   : > { %827 = vmatpush3.bf16.msra.mxu1 %v890_v32 }
  0x38   : > { %571 = vmatmul.mubr.bf16.vlgmr.msra.gmra.mxu0 %v749_v35 }
  0x39   : > { %611 = vmatmul.mubr.bf16.vlgmr.msra.gmra.mxu1 %v751_v37 }
  0xf8   : > { %v806_v39 = vpop.f32.mrf.mxu0 }
  0xf9   : > { %v828_v40 = vpop.f32.mrf.mxu1 }
  0xfa   : > { %v807_v41 = vpop.f32.mrf.mxu0 }
  0xfb   : > { %v829_v42 = vpop.f32.mrf.mxu1  ;;  %v808_v43 = vadd.f32 %v807_v41, %v806_v39 }
  0xfc   : > { %v830_v44 = vadd.f32 %v829_v42, %v828_v40  ;;  %v809_v46 = vpop.f32.mrf.mxu0 }
  0xfd   : > { %v831_v47 = vpop.f32.mrf.mxu1 }
  0xfe   : > { %v613_v48 = vadd.f32 %v830_v44, %v808_v43  ;;  %v810_v49 = vpop.f32.mrf.mxu0  ;;  %623 = sbr.rel (%p785_p7) target bundleno = 269 (0x10d), region = 40 }
  0xff   : > { %v832_v50 = vpop.f32.mrf.mxu1 }
 0x100   : > { %v618_v51 = vadd.f32 %v613_v48, %v265_v45 }
 0x102   : > { %619 = vst [vmem:[#allocation2] sm:$0xff] %v618_v51 }
 0x103   : > { %v786_v53 = vld [vmem:[%s1025_s2] ss:$0 sm:$0xff] }
 0x109   : > { %v624_v52 = vld [vmem:[#allocation2] sm:$0xff] }
 0x10a   : > { %v632_v54 = vadd.f32 %v786_v53, %v624_v52 }
 0x10c   : > { %633 = vst [vmem:[%s1026_s3] sm:$0xff] %v632_v54 }
 0x10d PF: > { %s13_s14 = sadd.s32 1, %s917_s14   ;;  %s1027_s12 = smov %s913_s13 }
 0x10e   : > { %p10_p8 = scmp.ge.s32.totalorder %s13_s14, 4   ;;  %s1028_s13 = smov %s1030_s15 }
 0x110   :  { %12 = sbr.rel (!%p10_p8) target bundleno = 2 (0x2), region = 76 }

// kernel: unet_generator_forward.40
= control target key start
LH: loop header
LB: loop body
LE: loop exit
PB: predicated region body
PF: predicated region fallthrough
CT: control target
= control target key end

     0   :  { %v105_v0 = vmov 0.0   ;;  %s187_s1 = inlined_call_operand.vmem [shape: f32[1,128], index: 1, kind: output, shape index: {0}]   ;;  %s188_s2 = inlined_call_operand.vmem [shape: f32[1,128], index: 2, kind: output, shape index: {1}]   ;;  %s189_s0 = inlined_call_operand.vmem [shape: f32[128,128], index: 0, kind: input, shape index: {}]  }
   0x1   :  { %14 = vst [vmem:[%s187_s1] sm:$0x1] %v105_v0  ;;  %15 = vst [vmem:[%s188_s2] sm:$0x1] %v105_v0  ;;  %v16_v1 = vld [vmem:[%s189_s0] sm:$0xff]  ;;  %v17_v2 = vld [vmem:[%s189_s0 + $0x8] sm:$0xff] }
   0x2   :  { %v18_v3 = vld [vmem:[%s189_s0 + $0x10] sm:$0xff]  ;;  %v19_v4 = vld [vmem:[%s189_s0 + $0x18] sm:$0xff]  ;;  %v33_v5 = vadd.f32 %v17_v2, %v16_v1  ;;  %v57_v6 = vmul.f32 %v16_v1, %v16_v1  ;;  %v58_v7 = vmul.f32 %v17_v2, %v17_v2  ;;  %v20_v9 = vld [vmem:[%s189_s0 + $0x20] sm:$0xff] }
   0x3   :  { %v59_v8 = vmul.f32 %v18_v3, %v18_v3  ;;  %v60_v11 = vmul.f32 %v19_v4, %v19_v4  ;;  %v21_v13 = vld [vmem:[%s189_s0 + $0x28] sm:$0xff]  ;;  %v61_v15 = vmul.f32 %v20_v9, %v20_v9  ;;  %v22_v17 = vld [vmem:[%s189_s0 + $0x30] sm:$0xff]  ;;  %v23_v21 = vld [vmem:[%s189_s0 + $0x38] sm:$0xff] }
   0x4   :  { %v34_v10 = vadd.f32 %v33_v5, %v18_v3  ;;  %v73_v12 = vadd.f32 %v58_v7, %v57_v6  ;;  %v62_v19 = vmul.f32 %v21_v13, %v21_v13  ;;  %v63_v23 = vmul.f32 %v22_v17, %v22_v17  ;;  %v24_v25 = vld [vmem:[%s189_s0 + $0x40] sm:$0xff]  ;;  %v25_v29 = vld [vmem:[%s189_s0 + $0x48] sm:$0xff]  ;;  %v26_v33 = vld [vmem:[%s189_s0 + $0x50] sm:$0xff] }
   0x5   :  { %v64_v27 = vmul.f32 %v23_v21, %v23_v21  ;;  %v65_v31 = vmul.f32 %v24_v25, %v24_v25  ;;  %v66_v35 = vmul.f32 %v25_v29, %v25_v29  ;;  %v27_v37 = vld [vmem:[%s189_s0 + $0x58] sm:$0xff]  ;;  %v67_v39 = vmul.f32 %v26_v33, %v26_v33  ;;  %v28_v41 = vld [vmem:[%s189_s0 + $0x60] sm:$0xff]  ;;  %v29_v45 = vld [vmem:[%s189_s0 + $0x68] sm:$0xff] }
   0x6   :  { %v35_v14 = vadd.f32 %v34_v10, %v19_v4  ;;  %v74_v16 = vadd.f32 %v73_v12, %v59_v8  ;;  %v68_v43 = vmul.f32 %v27_v37, %v27_v37  ;;  %v69_v47 = vmul.f32 %v28_v41, %v28_v41  ;;  %v30_v49 = vld [vmem:[%s189_s0 + $0x70] sm:$0xff]  ;;  %v31_v53 = vld [vmem:[%s189_s0 + $0x78] sm:$0xff] }
   0x7   :  { %v70_v51 = vmul.f32 %v29_v45, %v29_v45  ;;  %v71_v55 = vmul.f32 %v30_v49, %v30_v49  ;;  %v72_v58 = vmul.f32 %v31_v53, %v31_v53 }
   0x8   :  { %v36_v18 = vadd.f32 %v35_v14, %v20_v9  ;;  %v75_v20 = vadd.f32 %v74_v16, %v60_v11  ;;  %v32_v7 = vld [vmem:[%s187_s1] sm:$0x1] }
   0x9   :  { %v56_v12 = vld [vmem:[%s188_s2] sm:$0x1] }
   0xa   :  { %v37_v22 = vadd.f32 %v36_v18, %v21_v13  ;;  %v76_v24 = vadd.f32 %v75_v20, %v61_v15 }
   0xc   :  { %v38_v26 = vadd.f32 %v37_v22, %v22_v17  ;;  %v77_v28 = vadd.f32 %v76_v24, %v62_v19 }
   0xe   :  { %v39_v30 = vadd.f32 %v38_v26, %v23_v21  ;;  %v78_v32 = vadd.f32 %v77_v28, %v63_v23 }
  0x10   :  { %v40_v34 = vadd.f32 %v39_v30, %v24_v25  ;;  %v79_v36 = vadd.f32 %v78_v32, %v64_v27 }
  0x12   :  { %v41_v38 = vadd.f32 %v40_v34, %v25_v29  ;;  %v80_v40 = vadd.f32 %v79_v36, %v65_v31 }
  0x14   :  { %v42_v42 = vadd.f32 %v41_v38, %v26_v33  ;;  %v81_v44 = vadd.f32 %v80_v40, %v66_v35 }
  0x16   :  { %v43_v46 = vadd.f32 %v42_v42, %v27_v37  ;;  %v82_v48 = vadd.f32 %v81_v44, %v67_v39 }
  0x18   :  { %v44_v50 = vadd.f32 %v43_v46, %v28_v41  ;;  %v83_v52 = vadd.f32 %v82_v48, %v68_v43 }
  0x1a   :  { %v45_v54 = vadd.f32 %v44_v50, %v29_v45  ;;  %v84_v56 = vadd.f32 %v83_v52, %v69_v47 }
  0x1c   :  { %v46_v57 = vadd.f32 %v45_v54, %v30_v49  ;;  %v85_v59 = vadd.f32 %v84_v56, %v70_v51 }
  0x1e   :  { %v47_v60 = vadd.f32 %v46_v57, %v31_v53  ;;  %v86_v61 = vadd.f32 %v85_v59, %v71_v55 }
  0x20   :  { %v48_v62 = vrot.slane %v47_v60, 4  ;;  %v87_v63 = vadd.f32 %v86_v61, %v72_v58 }
  0x22   :  { %v49_v0 = vadd.f32 %v48_v62, %v47_v60  ;;  %v88_v1 = vrot.slane %v87_v63, 4 }
  0x24   :  { %v50_v2 = vrot.slane %v49_v0, 2  ;;  %v89_v3 = vadd.f32 %v88_v1, %v87_v63 }
  0x26   :  { %v51_v4 = vadd.f32 %v50_v2, %v49_v0  ;;  %v90_v5 = vrot.slane %v89_v3, 2 }
  0x28   :  { %v52_v6 = vrot.slane %v51_v4, 1  ;;  %v91_v8 = vadd.f32 %v90_v5, %v89_v3 }
  0x2a   :  { %v53_v9 = vadd.f32 %v52_v6, %v51_v4  ;;  %v92_v10 = vrot.slane %v91_v8, 1 }
  0x2c   :  { %v54_v11 = vadd.f32 %v53_v9, %v32_v7  ;;  %v93_v13 = vadd.f32 %v92_v10, %v91_v8 }
  0x2e   :  { %55 = vst [vmem:[%s187_s1] sm:$0x1] %v54_v11  ;;  %v94_v14 = vadd.f32 %v93_v13, %v56_v12 }
  0x30   :  { %95 = vst [vmem:[%s188_s2] sm:$0x1] %v94_v14 }

// kernel: unet_generator_forward.36
= control target key start
LH: loop header
LB: loop body
LE: loop exit
PB: predicated region body
PF: predicated region fallthrough
CT: control target
= control target key end

     0   :  { %s759_s1 = inlined_call_operand.vmem [shape: bf16[512,128], index: 1, kind: input, shape index: {}]   ;;  %s760_s0 = inlined_call_operand.vmem [shape: bf16[32,512], index: 0, kind: input, shape index: {}]   ;;  %s761_s2 = inlined_call_operand.vmem [shape: f32[1,128], index: 2, kind: input, shape index: {}]   ;;  %s762_s3 = inlined_call_operand.vmem [shape: f32[32,128], index: 3, kind: output, shape index: {}]  }
   0x1   :  { %v560_v0 = vld [vmem:[%s759_s1 + $0x78] sm:$0xff]   ;;  %v564_v4 = vld [vmem:[%s759_s1 + $0x70] sm:$0xff]   ;;  %v568_v8 = vld [vmem:[%s759_s1 + $0x68] sm:$0xff]  }
   0x2   :  { %v561_v1 = vld [vmem:[%s759_s1 + $0xf8] sm:$0xff]   ;;  %504 = vmatprep.subr.bf16.mxu0 %v560_v0  ;;  %v565_v5 = vld [vmem:[%s759_s1 + $0xf0] sm:$0xff]   ;;  %v569_v9 = vld [vmem:[%s759_s1 + $0xe8] sm:$0xff]  }
   0x3   :  { %v562_v2 = vld [vmem:[%s759_s1 + $0x38] sm:$0xff]   ;;  %532 = vmatprep.subr.bf16.mxu1 %v561_v1  ;;  %v566_v6 = vld [vmem:[%s759_s1 + $0x30] sm:$0xff]   ;;  %v570_v10 = vld [vmem:[%s759_s1 + $0x28] sm:$0xff]  }
   0x4   :  { %v563_v3 = vld [vmem:[%s759_s1 + $0xb8] sm:$0xff]   ;;  %505 = vmatpush3.bf16.msra.mxu0 %v562_v2  ;;  %v567_v7 = vld [vmem:[%s759_s1 + $0xb0] sm:$0xff]   ;;  %v571_v11 = vld [vmem:[%s759_s1 + $0xa8] sm:$0xff]  }
   0x5   :  { %533 = vmatpush3.bf16.msra.mxu1 %v563_v3  ;;  %506 = vmatprep.subr.bf16.mxu0 %v564_v4  ;;  %v572_v12 = vld [vmem:[%s759_s1 + $0x60] sm:$0xff]   ;;  %v576_v16 = vld [vmem:[%s759_s1 + $0x58] sm:$0xff]   ;;  %v580_v20 = vld [vmem:[%s759_s1 + $0x50] sm:$0xff]  }
   0x6   :  { %534 = vmatprep.subr.bf16.mxu1 %v565_v5  ;;  %v573_v13 = vld [vmem:[%s759_s1 + $0xe0] sm:$0xff]   ;;  %v577_v17 = vld [vmem:[%s759_s1 + $0xd8] sm:$0xff]   ;;  %v581_v21 = vld [vmem:[%s759_s1 + $0xd0] sm:$0xff]  }
   0x7   :  { %v574_v14 = vld [vmem:[%s759_s1 + $0x20] sm:$0xff]   ;;  %v578_v18 = vld [vmem:[%s759_s1 + $0x18] sm:$0xff]   ;;  %v582_v22 = vld [vmem:[%s759_s1 + $0x10] sm:$0xff]  }
   0x8   :  { %507 = vmatpush3.bf16.msra.mxu0 %v566_v6  ;;  %v575_v15 = vld [vmem:[%s759_s1 + $0xa0] sm:$0xff]   ;;  %v579_v19 = vld [vmem:[%s759_s1 + $0x98] sm:$0xff]   ;;  %v583_v23 = vld [vmem:[%s759_s1 + $0x90] sm:$0xff]  }
   0x9   :  { %535 = vmatpush3.bf16.msra.mxu1 %v567_v7  ;;  %508 = vmatprep.subr.bf16.mxu0 %v568_v8  ;;  %v584_v24 = vld [vmem:[%s759_s1 + $0x48] sm:$0xff]   ;;  %v588_v28 = vld [vmem:[%s759_s1 + $0x40] sm:$0xff]  }
   0xa   :  { %536 = vmatprep.subr.bf16.mxu1 %v569_v9  ;;  %v585_v25 = vld [vmem:[%s759_s1 + $0xc8] sm:$0xff]   ;;  %v589_v29 = vld [vmem:[%s759_s1 + $0xc0] sm:$0xff]  }
   0xb   :  { %v586_v26 = vld [vmem:[%s759_s1 + $0x8] sm:$0xff]   ;;  %v590_v30 = vld [vmem:[%s759_s1] sm:$0xff]  }
   0xc   :  { %509 = vmatpush3.bf16.msra.mxu0 %v570_v10  ;;  %v587_v27 = vld [vmem:[%s759_s1 + $0x88] sm:$0xff]   ;;  %v591_v31 = vld [vmem:[%s759_s1 + $0x80] sm:$0xff]  }
   0xd   :  { %537 = vmatpush3.bf16.msra.mxu1 %v571_v11  ;;  %510 = vmatprep.subr.bf16.mxu0 %v572_v12  ;;  %v592_v32 = vld [vmem:[%s760_s0] ss:$16 sps:$4 sm:$0xff]   ;;  %v594_v33 = vld [vmem:[%s760_s0 + $0x4] ss:$16 sps:$4 sm:$0xff]   ;;  %v595_v34 = vld [vmem:[%s760_s0 + $0x8] ss:$16 sps:$4 sm:$0xff]  }
   0xe   :  { %538 = vmatprep.subr.bf16.mxu1 %v573_v13  ;;  %v597_v35 = vld [vmem:[%s760_s0 + $0xc] ss:$16 sps:$4 sm:$0xff]   ;;  %363 = vmatprep.mubr.bf16.mxu0 %v594_v33  ;;  %v598_v36 = vld [vmem:[%s760_s0 + $0x24] ss:$16 sps:$4 sm:$0xff]   ;;  %v602_v38 = vld [vmem:[%s760_s0 + $0x20] ss:$16 sps:$4 sm:$0xff]  }
   0xf   :  { %412 = vmatprep.mubr.bf16.mxu1 %v597_v35  ;;  %v600_v37 = vld [vmem:[%s760_s0 + $0x2c] ss:$16 sps:$4 sm:$0xff]   ;;  %v603_v39 = vld [vmem:[%s760_s0 + $0x28] ss:$16 sps:$4 sm:$0xff]   ;;  %v503_v47 = vld [vmem:[%s761_s2] ss:$0 sm:$0xff] }
  0x10   :  { %511 = vmatpush3.bf16.msra.mxu0 %v574_v14 }
  0x11   :  { %539 = vmatpush3.bf16.msra.mxu1 %v575_v15  ;;  %512 = vmatprep.subr.bf16.mxu0 %v576_v16 }
  0x12   :  { %540 = vmatprep.subr.bf16.mxu1 %v577_v17 }
  0x14   :  { %513 = vmatpush3.bf16.msra.mxu0 %v578_v18 }
  0x15   :  { %541 = vmatpush3.bf16.msra.mxu1 %v579_v19  ;;  %514 = vmatprep.subr.bf16.mxu0 %v580_v20 }
  0x16   :  { %542 = vmatprep.subr.bf16.mxu1 %v581_v21 }
  0x18   :  { %515 = vmatpush3.bf16.msra.mxu0 %v582_v22 }
  0x19   :  { %543 = vmatpush3.bf16.msra.mxu1 %v583_v23  ;;  %516 = vmatprep.subr.bf16.mxu0 %v584_v24 }
  0x1a   :  { %544 = vmatprep.subr.bf16.mxu1 %v585_v25 }
  0x1c   :  { %517 = vmatpush3.bf16.msra.mxu0 %v586_v26 }
  0x1d   :  { %545 = vmatpush3.bf16.msra.mxu1 %v587_v27  ;;  %518 = vmatprep.subr.bf16.mxu0 %v588_v28 }
  0x1e   :  { %546 = vmatprep.subr.bf16.mxu1 %v589_v29 }
  0x20   :  { %519 = vmatpush3.bf16.msra.mxu0 %v590_v30 }
  0x21   :  { %547 = vmatpush3.bf16.msra.mxu1 %v591_v31 }
  0x23   :  { %364 = vmatmul.mubr.bf16.vlgmr.msra.gmra.mxu0 %v592_v32 }
  0x24   :  { %413 = vmatmul.mubr.bf16.vlgmr.msra.gmra.mxu1 %v595_v34  ;;  %371 = vmatprep.mubr.bf16.mxu0 %v598_v36 }
  0x25   :  { %420 = vmatprep.mubr.bf16.mxu1 %v600_v37 }
  0x2b   :  { %372 = vmatmul.mubr.bf16.gmra.mxu0 %v602_v38 }
  0x2c   :  { %421 = vmatmul.mubr.bf16.gmra.mxu1 %v603_v39 }
  0xe3   :  { %v520_v40 = vpop.f32.mrf.mxu0 }
  0xe4   :  { %v548_v41 = vpop.f32.mrf.mxu1 }
  0xe5   :  { %v521_v42 = vpop.f32.mrf.mxu0 }
  0xe6   :  { %v522_v43 = vadd.f32 %v521_v42, %v520_v40  ;;  %v549_v44 = vpop.f32.mrf.mxu1 }
  0xe7   :  { %v550_v45 = vadd.f32 %v549_v44, %v548_v41  ;;  %v523_v46 = vpop.f32.mrf.mxu0 }
  0xe8   :  { %v551_v48 = vpop.f32.mrf.mxu1 }
  0xe9   :  { %v415_v49 = vadd.f32 %v550_v45, %v522_v43  ;;  %v524_v50 = vpop.f32.mrf.mxu0 }
  0xea   :  { %v525_v51 = vadd.f32 %v524_v50, %v523_v46  ;;  %v552_v52 = vpop.f32.mrf.mxu1 }
  0xeb   :  { %v451_v53 = vadd.f32 %v503_v47, %v415_v49  ;;  %v553_v54 = vadd.f32 %v552_v52, %v551_v48  ;;  %v526_v55 = vpop.f32.mrf.mxu0 }
  0xec   :  { %v554_v56 = vpop.f32.mrf.mxu1 }
  0xed   :  { %455 = vst [vmem:[%s762_s3] sm:$0xff] %v451_v53  ;;  %v418_v57 = vadd.f32 %v553_v54, %v525_v51  ;;  %v527_v58 = vpop.f32.mrf.mxu0 }
  0xee   :  { %v528_v59 = vadd.f32 %v527_v58, %v526_v55  ;;  %v555_v60 = vpop.f32.mrf.mxu1 }
  0xef   :  { %v452_v61 = vadd.f32 %v503_v47, %v418_v57  ;;  %v556_v62 = vadd.f32 %v555_v60, %v554_v56  ;;  %v529_v63 = vpop.f32.mrf.mxu0 }
  0xf0   :  { %v557_v0 = vpop.f32.mrf.mxu1 }
  0xf1   :  { %456 = vst [vmem:[%s762_s3 + $0x8] sm:$0xff] %v452_v61  ;;  %v423_v1 = vadd.f32 %v556_v62, %v528_v59  ;;  %v530_v2 = vpop.f32.mrf.mxu0 }
  0xf2   :  { %v531_v3 = vadd.f32 %v530_v2, %v529_v63  ;;  %v558_v4 = vpop.f32.mrf.mxu1 }
  0xf3   :  { %v453_v5 = vadd.f32 %v503_v47, %v423_v1  ;;  %v559_v6 = vadd.f32 %v558_v4, %v557_v0 }
  0xf5   :  { %457 = vst [vmem:[%s762_s3 + $0x10] sm:$0xff] %v453_v5  ;;  %v426_v7 = vadd.f32 %v559_v6, %v531_v3 }
  0xf7   :  { %v454_v8 = vadd.f32 %v503_v47, %v426_v7 }
  0xf9   :  { %458 = vst [vmem:[%s762_s3 + $0x18] sm:$0xff] %v454_v8 }

// kernel: unet_generator_forward.41
= control target key start
LH: loop header
LB: loop body
LE: loop exit
PB: predicated region body
PF: predicated region fallthrough
CT: control target
= control target key end

     0   :  { %v38_v6 = vlaneseq  ;;  %s261_s1 = inlined_call_operand.vmem [shape: f32[1,128], index: 1, kind: input, shape index: {}]   ;;  %s262_s2 = inlined_call_operand.vmem [shape: f32[1,128], index: 2, kind: input, shape index: {}]   ;;  %s263_s0 = inlined_call_operand.vmem [shape: f32[128,128], index: 0, kind: input, shape index: {}]   ;;  %s264_s3 = inlined_call_operand.vmem [shape: f32[128,128], index: 3, kind: output, shape index: {}]  }
   0x1   :  { %v14_v0 = vld [vmem:[%s261_s1] sm:$0x1]  ;;  %v22_v13 = vld [vmem:[%s263_s0 + $0x8] sm:$0xff]  ;;  %v23_v14 = vld [vmem:[%s263_s0 + $0x10] sm:$0xff] }
   0x2   :  { %v16_v1 = vld [vmem:[%s262_s2] sm:$0x1]  ;;  %v15_v2 = vmul.f32 0.0078125, %v14_v0  ;;  %v39_v9 = vshrl.u32 %v38_v6, 7  ;;  %v24_v15 = vld [vmem:[%s263_s0 + $0x18] sm:$0xff]  ;;  %v26_v17 = vld [vmem:[%s263_s0 + $0x28] sm:$0xff] }
   0x3   :  { %v17_v3 = vmul.f32 0.0078125, %v16_v1  ;;  %v21_v11 = vld [vmem:[%s263_s0] sm:$0xff]  ;;  %v27_v18 = vld [vmem:[%s263_s0 + $0x30] sm:$0xff]  ;;  %v28_v19 = vld [vmem:[%s263_s0 + $0x38] sm:$0xff] }
   0x4   :  { %v18_v4 = vmul.f32 %v15_v2, %v15_v2  ;;  %v40_v10 = vsub.s32 0, %v39_v9  ;;  %v25_v16 = vld [vmem:[%s263_s0 + $0x20] sm:$0xff]  ;;  %v30_v21 = vld [vmem:[%s263_s0 + $0x48] sm:$0xff]  ;;  %v31_v23 = vld [vmem:[%s263_s0 + $0x50] sm:$0xff] }
   0x5   :  { %v29_v20 = vld [vmem:[%s263_s0 + $0x40] sm:$0xff]  ;;  %v32_v24 = vld [vmem:[%s263_s0 + $0x58] sm:$0xff]  ;;  %v34_v30 = vld [vmem:[%s263_s0 + $0x68] sm:$0xff] }
   0x6   :  { %v19_v5 = vsub.f32 %v17_v3, %v18_v4  ;;  %v150_v12 = vrot.slane %v15_v2, %v40_v10  ;;  %v33_v25 = vld [vmem:[%s263_s0 + $0x60] sm:$0xff]  ;;  %v35_v31 = vld [vmem:[%s263_s0 + $0x70] sm:$0xff]  ;;  %v36_v32 = vld [vmem:[%s263_s0 + $0x78] sm:$0xff] }
   0x8   :  { %v20_v7 = vmax.f32 %v19_v5, 0.0  ;;  %v43_v22 = vsub.f32 %v21_v11, %v150_v12  ;;  %v44_v26 = vsub.f32 %v22_v13, %v150_v12  ;;  %v45_v27 = vsub.f32 %v23_v14, %v150_v12 }
   0x9   :  { %v46_v28 = vsub.f32 %v24_v15, %v150_v12  ;;  %v47_v29 = vsub.f32 %v25_v16, %v150_v12  ;;  %v48_v34 = vsub.f32 %v26_v17, %v150_v12  ;;  %v49_v35 = vsub.f32 %v27_v18, %v150_v12 }
   0xa   :  { %v59_v8 = vadd.f32 1e-05, %v20_v7  ;;  %v50_v36 = vsub.f32 %v28_v19, %v150_v12  ;;  %v51_v37 = vsub.f32 %v29_v20, %v150_v12  ;;  %v52_v39 = vsub.f32 %v30_v21, %v150_v12 }
   0xb   :  { %v53_v40 = vsub.f32 %v31_v23, %v150_v12  ;;  %v54_v41 = vsub.f32 %v32_v24, %v150_v12  ;;  %v55_v42 = vsub.f32 %v33_v25, %v150_v12  ;;  %v56_v43 = vsub.f32 %v34_v30, %v150_v12 }
   0xc   :  { %119 = vrsqrt.f32 %v59_v8  ;;  %v57_v44 = vsub.f32 %v35_v31, %v150_v12  ;;  %v58_v45 = vsub.f32 %v36_v32, %v150_v12 }
  0x19   :  { %v120_v33 = vpop.eup %119 }
  0x1a   :  { %v65_v38 = vrot.slane %v120_v33, %v40_v10 }
  0x1c   :  { %v67_v46 = vmul.f32 %v65_v38, %v43_v22  ;;  %v68_v47 = vmul.f32 %v65_v38, %v44_v26  ;;  %v69_v48 = vmul.f32 %v65_v38, %v45_v27  ;;  %v70_v49 = vmul.f32 %v65_v38, %v46_v28 }
  0x1d   :  { %v71_v50 = vmul.f32 %v65_v38, %v47_v29  ;;  %v72_v51 = vmul.f32 %v65_v38, %v48_v34  ;;  %v73_v52 = vmul.f32 %v65_v38, %v49_v35  ;;  %v74_v53 = vmul.f32 %v65_v38, %v50_v36 }
  0x1e   :  { %v83_v54 = vmax.f32 %v67_v46, 0.0  ;;  %v84_v55 = vmax.f32 %v68_v47, 0.0  ;;  %v85_v56 = vmax.f32 %v69_v48, 0.0  ;;  %v86_v57 = vmax.f32 %v70_v49, 0.0 }
  0x1f   :  { %v87_v58 = vmax.f32 %v71_v50, 0.0  ;;  %v88_v59 = vmax.f32 %v72_v51, 0.0  ;;  %v89_v60 = vmax.f32 %v73_v52, 0.0  ;;  %v90_v61 = vmax.f32 %v74_v53, 0.0 }
  0x20   :  { %99 = vst [vmem:[%s264_s3] sm:$0xff] %v83_v54  ;;  %100 = vst [vmem:[%s264_s3 + $0x8] sm:$0xff] %v84_v55  ;;  %v75_v62 = vmul.f32 %v65_v38, %v51_v37  ;;  %v76_v63 = vmul.f32 %v65_v38, %v52_v39  ;;  %v77_v0 = vmul.f32 %v65_v38, %v53_v40 }
  0x21   :  { %101 = vst [vmem:[%s264_s3 + $0x10] sm:$0xff] %v85_v56  ;;  %102 = vst [vmem:[%s264_s3 + $0x18] sm:$0xff] %v86_v57  ;;  %v78_v1 = vmul.f32 %v65_v38, %v54_v41  ;;  %v79_v2 = vmul.f32 %v65_v38, %v55_v42  ;;  %v80_v3 = vmul.f32 %v65_v38, %v56_v43 }
  0x22   :  { %103 = vst [vmem:[%s264_s3 + $0x20] sm:$0xff] %v87_v58  ;;  %104 = vst [vmem:[%s264_s3 + $0x28] sm:$0xff] %v88_v59  ;;  %v81_v4 = vmul.f32 %v65_v38, %v57_v44  ;;  %v82_v5 = vmul.f32 %v65_v38, %v58_v45  ;;  %v91_v6 = vmax.f32 %v75_v62, 0.0  ;;  %v92_v7 = vmax.f32 %v76_v63, 0.0 }
  0x23   :  { %105 = vst [vmem:[%s264_s3 + $0x30] sm:$0xff] %v89_v60  ;;  %106 = vst [vmem:[%s264_s3 + $0x38] sm:$0xff] %v90_v61  ;;  %v93_v8 = vmax.f32 %v77_v0, 0.0  ;;  %v94_v9 = vmax.f32 %v78_v1, 0.0  ;;  %v95_v10 = vmax.f32 %v79_v2, 0.0  ;;  %v96_v11 = vmax.f32 %v80_v3, 0.0 }
  0x24   :  { %v97_v12 = vmax.f32 %v81_v4, 0.0  ;;  %v98_v13 = vmax.f32 %v82_v5, 0.0  ;;  %107 = vst [vmem:[%s264_s3 + $0x40] sm:$0xff] %v91_v6  ;;  %108 = vst [vmem:[%s264_s3 + $0x48] sm:$0xff] %v92_v7 }
  0x25   :  { %109 = vst [vmem:[%s264_s3 + $0x50] sm:$0xff] %v93_v8  ;;  %110 = vst [vmem:[%s264_s3 + $0x58] sm:$0xff] %v94_v9 }
  0x26   :  { %111 = vst [vmem:[%s264_s3 + $0x60] sm:$0xff] %v95_v10  ;;  %112 = vst [vmem:[%s264_s3 + $0x68] sm:$0xff] %v96_v11 }
  0x27   :  { %113 = vst [vmem:[%s264_s3 + $0x70] sm:$0xff] %v97_v12  ;;  %114 = vst [vmem:[%s264_s3 + $0x78] sm:$0xff] %v98_v13 }

// kernel: unet_generator_forward.44
= control target key start
LH: loop header
LB: loop body
LE: loop exit
PB: predicated region body
PF: predicated region fallthrough
CT: control target
= control target key end

     0   :  { %s980_s1 = inlined_call_operand.vmem [shape: bf16[256,128], index: 1, kind: input, shape index: {}]   ;;  %s981_s0 = inlined_call_operand.vmem [shape: bf16[128,256], index: 0, kind: input, shape index: {}]   ;;  %s982_s2 = inlined_call_operand.vmem [shape: f32[1,128], index: 2, kind: input, shape index: {}]   ;;  %s983_s3 = inlined_call_operand.vmem [shape: f32[128,128], index: 3, kind: output, shape index: {}]  }
   0x1   :  { %v691_v0 = vld [vmem:[%s980_s1 + $0x78] sm:$0xff]   ;;  %v693_v2 = vld [vmem:[%s980_s1 + $0x70] sm:$0xff]   ;;  %v695_v4 = vld [vmem:[%s980_s1 + $0x68] sm:$0xff]  }
   0x2   :  { %v692_v1 = vld [vmem:[%s980_s1 + $0x38] sm:$0xff]   ;;  %611 = vmatprep.subr.bf16.mxu0 %v691_v0  ;;  %675 = vmatprep.subr.bf16.mxu1 %v691_v0  ;;  %v694_v3 = vld [vmem:[%s980_s1 + $0x30] sm:$0xff]   ;;  %v696_v5 = vld [vmem:[%s980_s1 + $0x28] sm:$0xff]  }
   0x3   :  { %612 = vmatpush3.bf16.msra.mxu0 %v692_v1  ;;  %683 = vmatpush3.bf16.msra.mxu1 %v692_v1  ;;  %v697_v6 = vld [vmem:[%s980_s1 + $0x60] sm:$0xff]   ;;  %v699_v8 = vld [vmem:[%s980_s1 + $0x58] sm:$0xff]   ;;  %v701_v10 = vld [vmem:[%s980_s1 + $0x50] sm:$0xff]  }
   0x4   :  { %613 = vmatprep.subr.bf16.mxu0 %v693_v2  ;;  %676 = vmatprep.subr.bf16.mxu1 %v693_v2  ;;  %v698_v7 = vld [vmem:[%s980_s1 + $0x20] sm:$0xff]   ;;  %v700_v9 = vld [vmem:[%s980_s1 + $0x18] sm:$0xff]   ;;  %v702_v13 = vld [vmem:[%s980_s1 + $0x10] sm:$0xff]  }
   0x5   :  { %v709_v11 = vld [vmem:[%s981_s0 + $0x4] ss:$8 sps:$4 sm:$0xff]   ;;  %v707_v18 = vld [vmem:[%s981_s0] ss:$8 sps:$4 sm:$0xff]   ;;  %v713_v20 = vld [vmem:[%s981_s0 + $0x14] ss:$8 sps:$4 sm:$0xff]  }
   0x6   :  { %v712_v12 = vld [vmem:[%s981_s0 + $0x44] ss:$8 sps:$4 sm:$0xff]   ;;  %307 = vmatprep.mubr.bf16.mxu0 %v709_v11  ;;  %v710_v19 = vld [vmem:[%s981_s0 + $0x40] ss:$8 sps:$4 sm:$0xff]   ;;  %v715_v21 = vld [vmem:[%s981_s0 + $0x54] ss:$8 sps:$4 sm:$0xff]  }
   0x7   :  { %614 = vmatpush3.bf16.msra.mxu0 %v694_v3  ;;  %684 = vmatpush3.bf16.msra.mxu1 %v694_v3  ;;  %v703_v14 = vld [vmem:[%s980_s1 + $0x48] sm:$0xff]   ;;  %v705_v16 = vld [vmem:[%s980_s1 + $0x40] sm:$0xff]   ;;  %v717_v22 = vld [vmem:[%s981_s0 + $0x10] ss:$8 sps:$4 sm:$0xff]  }
   0x8   :  { %615 = vmatprep.subr.bf16.mxu0 %v695_v4  ;;  %677 = vmatprep.subr.bf16.mxu1 %v695_v4  ;;  %v704_v15 = vld [vmem:[%s980_s1 + $0x8] sm:$0xff]   ;;  %v706_v17 = vld [vmem:[%s980_s1] sm:$0xff]   ;;  %v718_v23 = vld [vmem:[%s981_s0 + $0x50] ss:$8 sps:$4 sm:$0xff]  }
   0x9   :  { %339 = vmatprep.mubr.bf16.mxu1 %v712_v12  ;;  %v719_v24 = vld [vmem:[%s981_s0 + $0x24] ss:$8 sps:$4 sm:$0xff]   ;;  %v723_v26 = vld [vmem:[%s981_s0 + $0x20] ss:$8 sps:$4 sm:$0xff]   ;;  %v725_v28 = vld [vmem:[%s981_s0 + $0x34] ss:$8 sps:$4 sm:$0xff]  }
   0xa   :  { %v721_v25 = vld [vmem:[%s981_s0 + $0x64] ss:$8 sps:$4 sm:$0xff]   ;;  %v724_v27 = vld [vmem:[%s981_s0 + $0x60] ss:$8 sps:$4 sm:$0xff]   ;;  %v727_v29 = vld [vmem:[%s981_s0 + $0x74] ss:$8 sps:$4 sm:$0xff]  }
   0xb   :  { %616 = vmatpush3.bf16.msra.mxu0 %v696_v5  ;;  %685 = vmatpush3.bf16.msra.mxu1 %v696_v5  ;;  %v729_v30 = vld [vmem:[%s981_s0 + $0x30] ss:$8 sps:$4 sm:$0xff]   ;;  %v914_v35 = vld [vmem:[%s982_s2] ss:$0 sm:$0xff] }
   0xc   :  { %617 = vmatprep.subr.bf16.mxu0 %v697_v6  ;;  %678 = vmatprep.subr.bf16.mxu1 %v697_v6  ;;  %v730_v31 = vld [vmem:[%s981_s0 + $0x70] ss:$8 sps:$4 sm:$0xff]  }
   0xf   :  { %618 = vmatpush3.bf16.msra.mxu0 %v698_v7  ;;  %686 = vmatpush3.bf16.msra.mxu1 %v698_v7 }
  0x10   :  { %619 = vmatprep.subr.bf16.mxu0 %v699_v8  ;;  %679 = vmatprep.subr.bf16.mxu1 %v699_v8 }
  0x13   :  { %620 = vmatpush3.bf16.msra.mxu0 %v700_v9  ;;  %687 = vmatpush3.bf16.msra.mxu1 %v700_v9 }
  0x14   :  { %621 = vmatprep.subr.bf16.mxu0 %v701_v10  ;;  %680 = vmatprep.subr.bf16.mxu1 %v701_v10 }
  0x17   :  { %622 = vmatpush3.bf16.msra.mxu0 %v702_v13  ;;  %688 = vmatpush3.bf16.msra.mxu1 %v702_v13 }
  0x18   :  { %623 = vmatprep.subr.bf16.mxu0 %v703_v14  ;;  %681 = vmatprep.subr.bf16.mxu1 %v703_v14 }
  0x1b   :  { %624 = vmatpush3.bf16.msra.mxu0 %v704_v15  ;;  %689 = vmatpush3.bf16.msra.mxu1 %v704_v15 }
  0x1c   :  { %625 = vmatprep.subr.bf16.mxu0 %v705_v16  ;;  %682 = vmatprep.subr.bf16.mxu1 %v705_v16 }
  0x1f   :  { %626 = vmatpush3.bf16.msra.mxu0 %v706_v17  ;;  %690 = vmatpush3.bf16.msra.mxu1 %v706_v17 }
  0x22   :  { %308 = vmatmul.mubr.bf16.vlgmr.msra.gmra.mxu0 %v707_v18  ;;  %340 = vmatmul.mubr.bf16.vlgmr.msra.gmra.mxu1 %v710_v19 }
  0x23   :  { %315 = vmatprep.mubr.bf16.mxu0 %v713_v20  ;;  %347 = vmatprep.mubr.bf16.mxu1 %v715_v21 }
  0x2a   :  { %316 = vmatmul.mubr.bf16.gmra.mxu0 %v717_v22  ;;  %348 = vmatmul.mubr.bf16.gmra.mxu1 %v718_v23 }
  0x2b   :  { %323 = vmatprep.mubr.bf16.mxu0 %v719_v24  ;;  %355 = vmatprep.mubr.bf16.mxu1 %v721_v25 }
  0x32   :  { %324 = vmatmul.mubr.bf16.gmra.mxu0 %v723_v26  ;;  %356 = vmatmul.mubr.bf16.gmra.mxu1 %v724_v27 }
  0x33   :  { %331 = vmatprep.mubr.bf16.mxu0 %v725_v28  ;;  %363 = vmatprep.mubr.bf16.mxu1 %v727_v29 }
  0x3a   :  { %332 = vmatmul.mubr.bf16.gmra.mxu0 %v729_v30  ;;  %364 = vmatmul.mubr.bf16.gmra.mxu1 %v730_v31 }
  0xe2   :  { %v627_v32 = vpop.f32.mrf.mxu0  ;;  %v651_v33 = vpop.f32.mrf.mxu1 }
  0xe4   :  { %v628_v34 = vpop.f32.mrf.mxu0  ;;  %v652_v36 = vpop.f32.mrf.mxu1 }
  0xe5   :  { %v629_v37 = vadd.f32 %v628_v34, %v627_v32  ;;  %v653_v38 = vadd.f32 %v652_v36, %v651_v33 }
  0xe6   :  { %v630_v39 = vpop.f32.mrf.mxu0  ;;  %v654_v40 = vpop.f32.mrf.mxu1 }
  0xe7   :  { %v430_v41 = vadd.f32 %v629_v37, %v914_v35  ;;  %v438_v42 = vadd.f32 %v653_v38, %v914_v35 }
  0xe8   :  { %v631_v43 = vpop.f32.mrf.mxu0  ;;  %v655_v44 = vpop.f32.mrf.mxu1 }
  0xe9   :  { %v595_v45 = vmul.f32 -1.442695, %v430_v41  ;;  %v603_v46 = vmul.f32 -1.442695, %v438_v42  ;;  %v632_v47 = vadd.f32 %v631_v43, %v630_v39  ;;  %v656_v48 = vadd.f32 %v655_v44, %v654_v40 }
  0xea   :  { %v633_v49 = vpop.f32.mrf.mxu0  ;;  %v657_v50 = vpop.f32.mrf.mxu1 }
  0xeb   :  { %731 = vpow2.f32 %v595_v45  ;;  %v431_v51 = vadd.f32 %v632_v47, %v914_v35  ;;  %v439_v52 = vadd.f32 %v656_v48, %v914_v35 }
  0xec   :  { %733 = vpow2.f32 %v603_v46  ;;  %v634_v53 = vpop.f32.mrf.mxu0  ;;  %v658_v54 = vpop.f32.mrf.mxu1 }
  0xed   :  { %v596_v55 = vmul.f32 -1.442695, %v431_v51  ;;  %v604_v56 = vmul.f32 -1.442695, %v439_v52  ;;  %v635_v57 = vadd.f32 %v634_v53, %v633_v49  ;;  %v659_v58 = vadd.f32 %v658_v54, %v657_v50 }
  0xee   :  { %v636_v59 = vpop.f32.mrf.mxu0  ;;  %v660_v60 = vpop.f32.mrf.mxu1 }
  0xef   :  { %735 = vpow2.f32 %v596_v55  ;;  %v432_v61 = vadd.f32 %v635_v57, %v914_v35  ;;  %v440_v62 = vadd.f32 %v659_v58, %v914_v35 }
  0xf0   :  { %737 = vpow2.f32 %v604_v56  ;;  %v637_v63 = vpop.f32.mrf.mxu0  ;;  %v661_v0 = vpop.f32.mrf.mxu1 }
  0xf1   :  { %v597_v1 = vmul.f32 -1.442695, %v432_v61  ;;  %v605_v2 = vmul.f32 -1.442695, %v440_v62  ;;  %v638_v3 = vadd.f32 %v637_v63, %v636_v59  ;;  %v662_v4 = vadd.f32 %v661_v0, %v660_v60 }
  0xf2   :  { %v639_v5 = vpop.f32.mrf.mxu0  ;;  %v663_v6 = vpop.f32.mrf.mxu1 }
  0xf3   :  { %739 = vpow2.f32 %v597_v1  ;;  %v433_v7 = vadd.f32 %v638_v3, %v914_v35  ;;  %v441_v8 = vadd.f32 %v662_v4, %v914_v35 }
  0xf4   :  { %741 = vpow2.f32 %v605_v2  ;;  %v640_v9 = vpop.f32.mrf.mxu0  ;;  %v664_v10 = vpop.f32.mrf.mxu1 }
  0xf5   :  { %v598_v11 = vmul.f32 -1.442695, %v433_v7  ;;  %v606_v12 = vmul.f32 -1.442695, %v441_v8  ;;  %v641_v13 = vadd.f32 %v640_v9, %v639_v5  ;;  %v665_v14 = vadd.f32 %v664_v10, %v663_v6 }
  0xf6   :  { %v642_v15 = vpop.f32.mrf.mxu0  ;;  %v666_v16 = vpop.f32.mrf.mxu1 }
  0xf7   :  { %743 = vpow2.f32 %v598_v11  ;;  %v434_v17 = vadd.f32 %v641_v13, %v914_v35  ;;  %v442_v18 = vadd.f32 %v665_v14, %v914_v35 }
  0xf8   :  { %v732_v19 = vpop.eup %731  ;;  %745 = vpow2.f32 %v606_v12  ;;  %v643_v20 = vpop.f32.mrf.mxu0 }
  0xf9   :  { %v667_v21 = vpop.f32.mrf.mxu1  ;;  %v734_v22 = vpop.eup %733  ;;  %v494_v23 = vadd.f32 1.0, %v732_v19  ;;  %v599_v24 = vmul.f32 -1.442695, %v434_v17  ;;  %v644_v25 = vadd.f32 %v643_v20, %v642_v15  ;;  %v607_v27 = vmul.f32 -1.442695, %v442_v18 }
  0xfa   :  { %v502_v26 = vadd.f32 1.0, %v734_v22  ;;  %v668_v28 = vadd.f32 %v667_v21, %v666_v16  ;;  %v645_v29 = vpop.f32.mrf.mxu0 }
  0xfb   :  { %v669_v30 = vpop.f32.mrf.mxu1  ;;  %747 = vrcp.f32 %v494_v23  ;;  %v435_v31 = vadd.f32 %v644_v25, %v914_v35 }
  0xfc   :  { %v736_v32 = vpop.eup %735  ;;  %749 = vrcp.f32 %v502_v26  ;;  %v443_v33 = vadd.f32 %v668_v28, %v914_v35  ;;  %v646_v34 = vpop.f32.mrf.mxu0 }
  0xfd   :  { %v670_v36 = vpop.f32.mrf.mxu1  ;;  %v738_v37 = vpop.eup %737  ;;  %v495_v38 = vadd.f32 1.0, %v736_v32  ;;  %751 = vpow2.f32 %v599_v24  ;;  %v600_v39 = vmul.f32 -1.442695, %v435_v31  ;;  %v647_v40 = vadd.f32 %v646_v34, %v645_v29 }
  0xfe   :  { %v503_v41 = vadd.f32 1.0, %v738_v37  ;;  %753 = vpow2.f32 %v607_v27  ;;  %v608_v42 = vmul.f32 -1.442695, %v443_v33  ;;  %v671_v43 = vadd.f32 %v670_v36, %v669_v30  ;;  %v648_v44 = vpop.f32.mrf.mxu0 }
  0xff   :  { %v672_v45 = vpop.f32.mrf.mxu1  ;;  %755 = vrcp.f32 %v495_v38  ;;  %v436_v46 = vadd.f32 %v647_v40, %v914_v35 }
 0x100   :  { %v740_v47 = vpop.eup %739  ;;  %757 = vrcp.f32 %v503_v41  ;;  %v444_v48 = vadd.f32 %v671_v43, %v914_v35  ;;  %v649_v49 = vpop.f32.mrf.mxu0 }
 0x101   :  { %v673_v50 = vpop.f32.mrf.mxu1  ;;  %v742_v51 = vpop.eup %741  ;;  %v496_v52 = vadd.f32 1.0, %v740_v47  ;;  %759 = vpow2.f32 %v600_v39  ;;  %v601_v53 = vmul.f32 -1.442695, %v436_v46  ;;  %v650_v54 = vadd.f32 %v649_v49, %v648_v44 }
 0x102   :  { %v504_v55 = vadd.f32 1.0, %v742_v51  ;;  %761 = vpow2.f32 %v608_v42  ;;  %v609_v56 = vmul.f32 -1.442695, %v444_v48  ;;  %v674_v57 = vadd.f32 %v673_v50, %v672_v45 }
 0x103   :  { %763 = vrcp.f32 %v496_v52  ;;  %v437_v58 = vadd.f32 %v650_v54, %v914_v35 }
 0x104   :  { %v744_v59 = vpop.eup %743  ;;  %765 = vrcp.f32 %v504_v55  ;;  %v445_v60 = vadd.f32 %v674_v57, %v914_v35 }
 0x105   :  { %v746_v61 = vpop.eup %745  ;;  %v497_v62 = vadd.f32 1.0, %v744_v59  ;;  %767 = vpow2.f32 %v601_v53  ;;  %v602_v63 = vmul.f32 -1.442695, %v437_v58 }
 0x106   :  { %v505_v0 = vadd.f32 1.0, %v746_v61  ;;  %769 = vpow2.f32 %v609_v56  ;;  %v610_v1 = vmul.f32 -1.442695, %v445_v60 }
 0x107   :  { %771 = vrcp.f32 %v497_v62 }
 0x108   :  { %v748_v2 = vpop.eup %747  ;;  %773 = vrcp.f32 %v505_v0 }
 0x109   :  { %v750_v3 = vpop.eup %749  ;;  %542 = vst [vmem:[%s983_s3] sm:$0xff] %v748_v2  ;;  %775 = vpow2.f32 %v602_v63 }
 0x10a   :  { %v752_v4 = vpop.eup %751  ;;  %550 = vst [vmem:[%s983_s3 + $0x40] sm:$0xff] %v750_v3  ;;  %777 = vpow2.f32 %v610_v1 }
 0x10b   :  { %v754_v35 = vpop.eup %753  ;;  %v498_v5 = vadd.f32 1.0, %v752_v4 }
 0x10c   :  { %v756_v6 = vpop.eup %755  ;;  %v506_v7 = vadd.f32 1.0, %v754_v35 }
 0x10d   :  { %v758_v8 = vpop.eup %757  ;;  %543 = vst [vmem:[%s983_s3 + $0x8] sm:$0xff] %v756_v6  ;;  %779 = vrcp.f32 %v498_v5 }
 0x10e   :  { %v760_v9 = vpop.eup %759  ;;  %551 = vst [vmem:[%s983_s3 + $0x48] sm:$0xff] %v758_v8  ;;  %781 = vrcp.f32 %v506_v7 }
 0x10f   :  { %v762_v10 = vpop.eup %761  ;;  %v499_v11 = vadd.f32 1.0, %v760_v9 }
 0x110   :  { %v764_v12 = vpop.eup %763  ;;  %v507_v13 = vadd.f32 1.0, %v762_v10 }
 0x111   :  { %v766_v14 = vpop.eup %765  ;;  %544 = vst [vmem:[%s983_s3 + $0x10] sm:$0xff] %v764_v12  ;;  %783 = vrcp.f32 %v499_v11 }
 0x112   :  { %v768_v15 = vpop.eup %767  ;;  %552 = vst [vmem:[%s983_s3 + $0x50] sm:$0xff] %v766_v14  ;;  %785 = vrcp.f32 %v507_v13 }
 0x113   :  { %v770_v16 = vpop.eup %769  ;;  %v500_v17 = vadd.f32 1.0, %v768_v15 }
 0x114   :  { %v772_v18 = vpop.eup %771  ;;  %v508_v19 = vadd.f32 1.0, %v770_v16 }
 0x115   :  { %v774_v20 = vpop.eup %773  ;;  %545 = vst [vmem:[%s983_s3 + $0x18] sm:$0xff] %v772_v18  ;;  %787 = vrcp.f32 %v500_v17 }
 0x116   :  { %v776_v21 = vpop.eup %775  ;;  %553 = vst [vmem:[%s983_s3 + $0x58] sm:$0xff] %v774_v20  ;;  %789 = vrcp.f32 %v508_v19 }
 0x117   :  { %v778_v22 = vpop.eup %777  ;;  %v501_v23 = vadd.f32 1.0, %v776_v21 }
 0x118   :  { %v509_v24 = vadd.f32 1.0, %v778_v22 }
 0x119   :  { %791 = vrcp.f32 %v501_v23 }
 0x11a   :  { %v780_v25 = vpop.eup %779  ;;  %793 = vrcp.f32 %v509_v24 }
 0x11b   :  { %v782_v26 = vpop.eup %781  ;;  %546 = vst [vmem:[%s983_s3 + $0x20] sm:$0xff] %v780_v25 }
 0x11c   :  { %554 = vst [vmem:[%s983_s3 + $0x60] sm:$0xff] %v782_v26 }
 0x11e   :  { %v784_v27 = vpop.eup %783 }
 0x11f   :  { %v786_v28 = vpop.eup %785  ;;  %547 = vst [vmem:[%s983_s3 + $0x28] sm:$0xff] %v784_v27 }
 0x120   :  { %555 = vst [vmem:[%s983_s3 + $0x68] sm:$0xff] %v786_v28 }
 0x122   :  { %v788_v29 = vpop.eup %787 }
 0x123   :  { %v790_v30 = vpop.eup %789  ;;  %548 = vst [vmem:[%s983_s3 + $0x30] sm:$0xff] %v788_v29 }
 0x124   :  { %556 = vst [vmem:[%s983_s3 + $0x70] sm:$0xff] %v790_v30 }
 0x126   :  { %v792_v31 = vpop.eup %791 }
 0x127   :  { %v794_v32 = vpop.eup %793  ;;  %549 = vst [vmem:[%s983_s3 + $0x38] sm:$0xff] %v792_v31 }
 0x128   :  { %557 = vst [vmem:[%s983_s3 + $0x78] sm:$0xff] %v794_v32 }

</bundles_post_ra>
